<compile_context>
chip_gen: v7x
topology: tpu7x:2x2x1
jax: 0.10.0
libtpu: 0.0.40
codegen_flags: <defaults>
</compile_context>

<pallas_src>
import jax
import jax.numpy as jnp
from jax import lax
from jax.experimental import pallas as pl
from jax.experimental.pallas import tpu as pltpu

PADID = 0
UNKID = 1
SMOOTHING = 0.0

NB = 8            # sequences per grid step (fills f32 sublane dim)
MET_LANES = 128   # lane-dense metrics block width


# ----------------------------------------------------------------------------
# shared in-kernel helpers
# ----------------------------------------------------------------------------
def _encode_block(xemb, xm, wenc_bf):
    """enc = tanh(emb @ Wenc); z = masked mean over tokens (VPU/XLU reduce)."""
    nb, s, d = xemb.shape
    xf = xemb.reshape(nb * s, d).astype(jnp.bfloat16)
    xenc = jnp.tanh(
        jnp.dot(xf, wenc_bf, preferred_element_type=jnp.float32)
    ).reshape(nb, s, d)
    denom = jnp.maximum(jnp.sum(xm, axis=-1, keepdims=True), 1.0)        # (nb,1)
    xz = jnp.sum(xenc * xm[:, :, None], axis=1) * pl.reciprocal(denom, approx=True)
    return xenc, xz                                                       # (nb,s,d),(nb,d)


def _attend(q, k, v, m):
    """masked softmax attention; q:(nb,Tq,D) k,v:(nb,Tk,D) m:(nb,Tk) f32."""
    s = jnp.einsum('btd,bsd->bts', q.astype(jnp.bfloat16), k.astype(jnp.bfloat16),
                   preferred_element_type=jnp.float32)
    s = jnp.where(m[:, None, :] > 0, s, jnp.float32(-1e9))
    s = s - jnp.max(s, axis=-1, keepdims=True)
    p = jnp.exp(s)
    p = p * pl.reciprocal(jnp.sum(p, axis=-1, keepdims=True), approx=True)
    return jnp.einsum('bts,bsd->btd', p.astype(jnp.bfloat16), v.astype(jnp.bfloat16),
                      preferred_element_type=jnp.float32)


# ----------------------------------------------------------------------------
# Kernel 1: fused memory_encoder + memory_decoder over the support set
# ----------------------------------------------------------------------------
def mem_kernel(xemb_ref, xmask_ref, yemb_ref, wenc_ref, wdk_ref,
               keys_ref, enc_ref):
    xemb = xemb_ref[...]                  # (NB, Sx, D) f32
    xm = xmask_ref[...]                   # (NB, Sx)    f32
    yemb = yemb_ref[...]                  # (NB, T, D)  f32

    xenc, xz = _encode_block(xemb, xm, wenc_ref[...])
    att = _attend(yemb, xenc, xenc, xm)                          # (NB, T, D)
    h = jnp.tanh(yemb + att + xz[:, None, :])

    nb, t, d = h.shape
    kd = jnp.dot(h.reshape(nb * t, d).astype(jnp.bfloat16), wdk_ref[...],
                 preferred_element_type=jnp.float32)             # (NB*T, 2D)
    keys_ref[...] = kd[:, :d].reshape(nb, t, d)
    enc_ref[...] = kd[:, d:].reshape(nb, t, d)


def _pad_rows(a, n):
    p = n - a.shape[0]
    if p == 0:
        return a
    return jnp.pad(a, [(0, p)] + [(0, 0)] * (a.ndim - 1))


def memory_path(xemb, xmask, yemb, wenc_bf, wdk_bf):
    N, Sx, D = xemb.shape
    T = yemb.shape[1]
    Np = pl.cdiv(N, NB) * NB
    xemb = _pad_rows(xemb, Np)
    xmask = _pad_rows(xmask, Np)
    yemb = _pad_rows(yemb, Np)
    keys, enc = pl.pallas_call(
        mem_kernel,
        out_shape=(jax.ShapeDtypeStruct((Np, T, D), jnp.float32),
                   jax.ShapeDtypeStruct((Np, T, D), jnp.float32)),
        grid_spec=pltpu.PrefetchScalarGridSpec(
            num_scalar_prefetch=0, grid=(Np // NB,),
            in_specs=[pl.BlockSpec((NB, Sx, D), lambda i: (i, 0, 0)),
                      pl.BlockSpec((NB, Sx), lambda i: (i, 0)),
                      pl.BlockSpec((NB, T, D), lambda i: (i, 0, 0)),
                      pl.BlockSpec((D, D), lambda i: (0, 0)),
                      pl.BlockSpec((D, 2 * D), lambda i: (0, 0))],
            out_specs=[pl.BlockSpec((NB, T, D), lambda i: (i, 0, 0)),
                       pl.BlockSpec((NB, T, D), lambda i: (i, 0, 0))]),
        compiler_params=pltpu.CompilerParams(dimension_semantics=("parallel",)),
    )(xemb, xmask, yemb, wenc_bf, wdk_bf)
    return keys[:N], enc[:N]


# ----------------------------------------------------------------------------
# Kernel 2: fused encoder + memory-augmented decoder + softmax/argmax + metrics
# ----------------------------------------------------------------------------
def dec_kernel(xemb_ref, xmask_ref, demb_ref, memk_ref, meme_ref, memm_ref,
               gold_ref, wenc_ref, wout_ref, probs_ref, pred_ref, met_ref):
    xemb = xemb_ref[...]                  # (NB, Sx, D)
    xm = xmask_ref[...]                   # (NB, Sx)
    demb = demb_ref[...]                  # (NB, T, D)
    memk = memk_ref[...]                  # (NB, MT, D)
    meme = meme_ref[...]                  # (NB, MT, D)
    mm = memm_ref[...]                    # (NB, MT)
    gold = gold_ref[...]                  # (NB, T) int32

    xenc, xz = _encode_block(xemb, xm, wenc_ref[...])
    ax = _attend(demb, xenc, xenc, xm)
    am = _attend(demb, memk, meme, mm)
    h = jnp.tanh(demb + ax + am + xz[:, None, :])

    nb, t, d = h.shape
    v = wout_ref.shape[1]
    logits = jnp.dot(h.reshape(nb * t, d).astype(jnp.bfloat16), wout_ref[...],
                     preferred_element_type=jnp.float32).reshape(nb, t, v)

    mx = jnp.max(logits, axis=-1, keepdims=True)
    e = jnp.exp(logits - mx)
    se = jnp.sum(e, axis=-1, keepdims=True)
    probs_ref[...] = e * pl.reciprocal(se, approx=True)
    logp = (logits - mx) - jnp.log(se)                           # stable log-softmax

    iota_v = lax.broadcasted_iota(jnp.int32, (nb, t, v), 2)
    pred = jnp.min(jnp.where(logits >= mx, iota_v, v), axis=-1)  # (nb, t) int32
    pred_ref[...] = pred

    gmask = (gold != PADID).astype(jnp.float32)                  # (nb, t)
    onehot = (iota_v == gold[:, :, None]).astype(jnp.float32)    # (nb, t, v)
    gold_lp = jnp.sum(onehot * logp, axis=-1)                    # (nb, t)
    unif_lp = jnp.mean(logp, axis=-1)                            # (nb, t)
    nll = -((1.0 - SMOOTHING) * gold_lp + SMOOTHING * unif_lp)

    loss = jnp.sum(nll * gmask, axis=-1, keepdims=True)          # (nb, 1)
    ntok = jnp.sum(gmask, axis=-1, keepdims=True)                # (nb, 1)
    same = ((pred == gold) & (pred != UNKID)).astype(jnp.float32)
    ncorr = jnp.sum(same * gmask, axis=-1, keepdims=True)        # (nb, 1)
    ok = jnp.where(gmask > 0, same, 1.0)
    seqc = jnp.min(ok, axis=-1, keepdims=True)                   # (nb, 1)

    lane = lax.broadcasted_iota(jnp.int32, (nb, MET_LANES), 1)
    met = (jnp.where(lane == 0, loss, 0.0)
           + jnp.where(lane == 1, ntok, 0.0)
           + jnp.where(lane == 2, ncorr, 0.0)
           + jnp.where(lane == 3, seqc, 0.0))
    met_ref[...] = met


def decode_path(xemb, xmask, demb, memk, meme, memm, gold, wenc_bf, wout_bf):
    B, Sx, D = xemb.shape
    T = demb.shape[1]
    MT = memk.shape[1]
    V = wout_bf.shape[1]
    Bp = pl.cdiv(B, NB) * NB
    xemb = _pad_rows(xemb, Bp)
    xmask = _pad_rows(xmask, Bp)
    demb = _pad_rows(demb, Bp)
    memk = _pad_rows(memk, Bp)
    meme = _pad_rows(meme, Bp)
    memm = _pad_rows(memm, Bp)
    gold = _pad_rows(gold, Bp)
    probs, pred, met = pl.pallas_call(
        dec_kernel,
        out_shape=(jax.ShapeDtypeStruct((Bp, T, V), jnp.float32),
                   jax.ShapeDtypeStruct((Bp, T), jnp.int32),
                   jax.ShapeDtypeStruct((Bp, MET_LANES), jnp.float32)),
        grid_spec=pltpu.PrefetchScalarGridSpec(
            num_scalar_prefetch=0, grid=(Bp // NB,),
            in_specs=[pl.BlockSpec((NB, Sx, D), lambda i: (i, 0, 0)),
                      pl.BlockSpec((NB, Sx), lambda i: (i, 0)),
                      pl.BlockSpec((NB, T, D), lambda i: (i, 0, 0)),
                      pl.BlockSpec((NB, MT, D), lambda i: (i, 0, 0)),
                      pl.BlockSpec((NB, MT, D), lambda i: (i, 0, 0)),
                      pl.BlockSpec((NB, MT), lambda i: (i, 0)),
                      pl.BlockSpec((NB, T), lambda i: (i, 0)),
                      pl.BlockSpec((D, D), lambda i: (0, 0)),
                      pl.BlockSpec((D, V), lambda i: (0, 0))],
            out_specs=[pl.BlockSpec((NB, T, V), lambda i: (i, 0, 0)),
                       pl.BlockSpec((NB, T), lambda i: (i, 0)),
                       pl.BlockSpec((NB, MET_LANES), lambda i: (i, 0))]),
        compiler_params=pltpu.CompilerParams(dimension_semantics=("parallel",)),
    )(xemb, xmask, demb, memk, meme, memm, gold, wenc_bf, wout_bf)
    return probs[:B], pred[:B], met[:B]


# ----------------------------------------------------------------------------
# TrainModel.forward glue (mirrors MetaSeqMemNN.forward + metric merge)
# ----------------------------------------------------------------------------
def init_params(V, D):
    kp = jax.random.PRNGKey(1234)
    ke, k1, k2, k3, k4 = jax.random.split(kp, 5)
    E = jax.random.normal(ke, (V, D), jnp.float32) * 0.1
    Wenc = jax.random.normal(k1, (D, D), jnp.float32) / jnp.sqrt(D)
    Wdec = jax.random.normal(k2, (D, D), jnp.float32) / jnp.sqrt(D)
    Wkey = jax.random.normal(k3, (D, D), jnp.float32) / jnp.sqrt(D)
    Wout = jax.random.normal(k4, (D, V), jnp.float32) / jnp.sqrt(D)
    return E, Wenc, Wdec, Wkey, Wout


def train_model_forward(params, x, y, xsup, ysup, supmask):
    E, Wenc, Wdec, Wkey, Wout = params
    D = E.shape[1]
    B, M, Sx = xsup.shape
    Sy = ysup.shape[-1]
    T = Sy - 1

    # bf16 weights for the MXU (f32 accumulation in-kernel)
    wenc_bf = Wenc.astype(jnp.bfloat16)
    wdk_bf = jnp.concatenate([Wkey, Wdec], axis=-1).astype(jnp.bfloat16)  # (D, 2D)
    wout_bf = Wout.astype(jnp.bfloat16)

    # --- memory path: encoder + inner decoder over support set (flattened B*M)
    xmem = xsup.reshape(B * M, Sx)
    ymem = ysup.reshape(B * M, Sy)
    xmem_mask = (xmem != 0).astype(jnp.float32)                        # (BM, Sx)
    xmem_emb = jnp.take(E, xmem, axis=0)                               # (BM, Sx, D)
    ymem_in = jnp.concatenate([ymem[:, :1], ymem[:, 1:-1]], axis=1)    # (BM, T)
    ymem_in_emb = jnp.take(E, ymem_in, axis=0)
    ymem_keys, ymem_enc = memory_path(xmem_emb, xmem_mask, ymem_in_emb,
                                      wenc_bf, wdk_bf)

    ymem_mask = (ymem != 0).reshape(B, M, Sy)[:, :, 1:]                # (B, M, T)
    memmask = ymem_mask.astype(jnp.float32) * supmask[:, :, None].astype(jnp.float32)
    memkeys = ymem_keys.reshape(B, M * T, D)
    memencs = ymem_enc.reshape(B, M * T, D)
    memm = memmask.reshape(B, M * T)
    # NOTE: memids (=ymem[:,:,1:]) is only used by copy mechanisms -> unused here.

    # --- main path: encoder + decoder (teacher forcing) + fused metrics
    xmask = (x != 0).astype(jnp.float32)                               # (B, Sx)
    xemb = jnp.take(E, x, axis=0)
    dec_in = jnp.concatenate([y[:, :1], y[:, 1:-1]], axis=1)           # (B, T)
    demb = jnp.take(E, dec_in, axis=0)
    gold = y[:, 1:].astype(jnp.int32)                                  # (B, T)

    probs, predactions, met = decode_path(xemb, xmask, demb, memkeys, memencs,
                                          memm, gold, wenc_bf, wout_bf)

    tot_tok = jnp.maximum(jnp.sum(met[:, 1]), 1.0)
    ce = jnp.sum(met[:, 0]) / tot_tok
    elem_acc = jnp.sum(met[:, 2]) / tot_tok
    seq_acc = jnp.mean(met[:, 3])
    # merge_metric_dicts equivalent:
    outputs = {"loss": ce, "ce": ce, "elem_acc": elem_acc, "seq_acc": seq_acc}
    # TODO(synk): tree_acc (TreeAccuracy / tensor2tree) needs Python tree parsing.

    return outputs, (probs, predactions)


if __name__ == "__main__":
    B, M, Sx, Sy, D, V = 2, 4, 8, 9, 32, 32
    key = jax.random.PRNGKey(0)
    k1, k2, k3, k4, k5 = jax.random.split(key, 5)
    x = jax.random.randint(k1, (B, Sx), 2, V)
    y = jax.random.randint(k2, (B, Sy), 2, V)
    xsup = jax.random.randint(k3, (B, M, Sx), 2, V)
    ysup = jax.random.randint(k4, (B, M, Sy), 2, V)
    # introduce some padding (token id 0) to exercise the masks
    x = x.at[:, -2:].set(0)
    y = y.at[:, -1].set(0)
    xsup = xsup.at[:, :, -1].set(0)
    ysup = ysup.at[:, :, -1].set(0)
    supmask = jax.random.bernoulli(k5, 0.75, (B, M))
    supmask = supmask.at[:, 0].set(True)

    params = init_params(V, D)
    fwd = jax.jit(train_model_forward)
    outputs, (probs, predactions) = fwd(params, x, y, xsup, ysup, supmask)
    jax.block_until_ready((outputs, probs, predactions))
    print("KERNEL_OK")
</pallas_src>

<mosaic_0001>
module attributes {stable_mosaic.version = 11 : i64} {
  func.func @mem_kernel(%arg0: i32, %arg1: memref<8x8x32xf32, #tpu.memory_space<vmem>>, %arg2: memref<8x8xf32, #tpu.memory_space<vmem>>, %arg3: memref<8x8x32xf32, #tpu.memory_space<vmem>>, %arg4: memref<32x32xbf16, #tpu.memory_space<vmem>>, %arg5: memref<32x64xbf16, #tpu.memory_space<vmem>>, %arg6: memref<8x8x32xf32, #tpu.memory_space<vmem>>, %arg7: memref<8x8x32xf32, #tpu.memory_space<vmem>>) attributes {dimension_semantics = [#tpu.dimension_semantics<parallel>], iteration_bounds = array<i64: 1>, scalar_prefetch = 0 : i64, scratch_operands = 0 : i64, tpu.core_type = #tpu.core_type<tc>, window_params = [{transform_indices = @transform_0, window_bounds = array<i64: 8, 8, 32>}, {transform_indices = @transform_1, window_bounds = array<i64: 8, 8>}, {transform_indices = @transform_2, window_bounds = array<i64: 8, 8, 32>}, {pipeline_mode = #tpu.pipeline_mode<synchronous>, transform_indices = @transform_3, window_bounds = array<i64: 32, 32>}, {pipeline_mode = #tpu.pipeline_mode<synchronous>, transform_indices = @transform_4, window_bounds = array<i64: 32, 64>}, {transform_indices = @transform_5, window_bounds = array<i64: 8, 8, 32>}, {transform_indices = @transform_6, window_bounds = array<i64: 8, 8, 32>}]} {
    %c0 = arith.constant 0 : index
    %c0_0 = arith.constant 0 : index
    %c0_1 = arith.constant 0 : index
    %0 = vector.load %arg1[%c0, %c0_0, %c0_1] : memref<8x8x32xf32, #tpu.memory_space<vmem>>, vector<8x8x32xf32>
    %c0_2 = arith.constant 0 : index
    %c0_3 = arith.constant 0 : index
    %1 = vector.load %arg2[%c0_2, %c0_3] : memref<8x8xf32, #tpu.memory_space<vmem>>, vector<8x8xf32>
    %c0_4 = arith.constant 0 : index
    %c0_5 = arith.constant 0 : index
    %c0_6 = arith.constant 0 : index
    %2 = vector.load %arg3[%c0_4, %c0_5, %c0_6] : memref<8x8x32xf32, #tpu.memory_space<vmem>>, vector<8x8x32xf32>
    %c0_7 = arith.constant 0 : index
    %c0_8 = arith.constant 0 : index
    %3 = vector.load %arg4[%c0_7, %c0_8] : memref<32x32xbf16, #tpu.memory_space<vmem>>, vector<32x32xbf16>
    %4 = vector.shape_cast %0 : vector<8x8x32xf32> to vector<64x32xf32>
    %5 = arith.truncf %4 : vector<64x32xf32> to vector<64x32xbf16>
    %cst = arith.constant dense<0.000000e+00> : vector<64x32xf32>
    %6 = tpu.matmul %5, %3, %cst {dimension_numbers = #tpu.dot_dimension_numbers<[1], [0], [0], [1], [0, 0, 1, 1], [], []>} : vector<64x32xbf16>, vector<32x32xbf16>, vector<64x32xf32> -> vector<64x32xf32>
    %7 = math.tanh %6 : vector<64x32xf32>
    %8 = vector.shape_cast %7 : vector<64x32xf32> to vector<8x8x32xf32>
    %cst_9 = arith.constant dense<0.000000e+00> : vector<8xf32>
    %9 = vector.multi_reduction <add>, %1, %cst_9 [1] : vector<8x8xf32> to vector<8xf32>
    %10 = vector.shape_cast %9 : vector<8xf32> to vector<8x1xf32>
    %cst_10 = arith.constant 1.000000e+00 : f32
    %11 = vector.broadcast %cst_10 : f32 to vector<8x1xf32>
    %12 = arith.maximumf %10, %11 : vector<8x1xf32>
    %13 = vector.shape_cast %1 : vector<8x8xf32> to vector<8x8x1xf32>
    %14 = vector.broadcast %13 : vector<8x8x1xf32> to vector<8x8x32xf32>
    %15 = arith.mulf %8, %14 : vector<8x8x32xf32>
    %cst_11 = arith.constant dense<0.000000e+00> : vector<8x32xf32>
    %16 = vector.multi_reduction <add>, %15, %cst_11 [1] : vector<8x8x32xf32> to vector<8x32xf32>
    %17 = tpu.reciprocal %12 {approx = true} : vector<8x1xf32> -> vector<8x1xf32>
    %18 = vector.broadcast %17 : vector<8x1xf32> to vector<8x32xf32>
    %19 = arith.mulf %16, %18 : vector<8x32xf32>
    %20 = arith.truncf %2 : vector<8x8x32xf32> to vector<8x8x32xbf16>
    %21 = arith.truncf %8 : vector<8x8x32xf32> to vector<8x8x32xbf16>
    "tpu.trace_start"() <{level = 10 : i32, message = "btd,bsd->bts"}> : () -> ()
    %cst_12 = arith.constant dense<0.000000e+00> : vector<8x8x8xf32>
    %22 = tpu.matmul %20, %21, %cst_12 {dimension_numbers = #tpu.dot_dimension_numbers<[2], [2], [1], [1], [0, 0, 0, 1, 1, 1], [0], [0]>} : vector<8x8x32xbf16>, vector<8x8x32xbf16>, vector<8x8x8xf32> -> vector<8x8x8xf32>
    "tpu.trace_stop"() : () -> ()
    %23 = vector.shape_cast %1 : vector<8x8xf32> to vector<8x1x8xf32>
    %cst_13 = arith.constant 0.000000e+00 : f32
    %24 = vector.broadcast %cst_13 : f32 to vector<8x1x8xf32>
    %25 = arith.cmpf ogt, %23, %24 : vector<8x1x8xf32>
    %cst_14 = arith.constant -1.000000e+09 : f32
    %26 = vector.shape_cast %25 : vector<8x1x8xi1> to vector<8x1x8xi1>
    %27 = vector.broadcast %26 : vector<8x1x8xi1> to vector<8x8x8xi1>
    %28 = vector.broadcast %cst_14 : f32 to vector<8x8x8xf32>
    %29 = arith.select %27, %22, %28 : vector<8x8x8xi1>, vector<8x8x8xf32>
    %cst_15 = arith.constant dense<0xFF800000> : vector<8x8xf32>
    %30 = vector.multi_reduction <maximumf>, %29, %cst_15 [2] : vector<8x8x8xf32> to vector<8x8xf32>
    %31 = vector.shape_cast %30 : vector<8x8xf32> to vector<8x8x1xf32>
    %32 = vector.broadcast %31 : vector<8x8x1xf32> to vector<8x8x8xf32>
    %33 = arith.subf %29, %32 : vector<8x8x8xf32>
    %34 = math.exp %33 : vector<8x8x8xf32>
    %cst_16 = arith.constant dense<0.000000e+00> : vector<8x8xf32>
    %35 = vector.multi_reduction <add>, %34, %cst_16 [2] : vector<8x8x8xf32> to vector<8x8xf32>
    %36 = vector.shape_cast %35 : vector<8x8xf32> to vector<8x8x1xf32>
    %37 = tpu.reciprocal %36 {approx = true} : vector<8x8x1xf32> -> vector<8x8x1xf32>
    %38 = vector.broadcast %37 : vector<8x8x1xf32> to vector<8x8x8xf32>
    %39 = arith.mulf %34, %38 : vector<8x8x8xf32>
    %40 = arith.truncf %39 : vector<8x8x8xf32> to vector<8x8x8xbf16>
    %41 = arith.truncf %8 : vector<8x8x32xf32> to vector<8x8x32xbf16>
    "tpu.trace_start"() <{level = 10 : i32, message = "bts,bsd->btd"}> : () -> ()
    %cst_17 = arith.constant dense<0.000000e+00> : vector<8x8x32xf32>
    %42 = tpu.matmul %40, %41, %cst_17 {dimension_numbers = #tpu.dot_dimension_numbers<[2], [1], [1], [2], [0, 0, 0, 1, 1, 2], [0], [0]>} : vector<8x8x8xbf16>, vector<8x8x32xbf16>, vector<8x8x32xf32> -> vector<8x8x32xf32>
    "tpu.trace_stop"() : () -> ()
    %43 = arith.addf %2, %42 : vector<8x8x32xf32>
    %44 = vector.shape_cast %19 : vector<8x32xf32> to vector<8x1x32xf32>
    %45 = vector.broadcast %44 : vector<8x1x32xf32> to vector<8x8x32xf32>
    %46 = arith.addf %43, %45 : vector<8x8x32xf32>
    %47 = math.tanh %46 : vector<8x8x32xf32>
    %48 = vector.shape_cast %47 : vector<8x8x32xf32> to vector<64x32xf32>
    %49 = arith.truncf %48 : vector<64x32xf32> to vector<64x32xbf16>
    %c0_18 = arith.constant 0 : index
    %c0_19 = arith.constant 0 : index
    %50 = vector.load %arg5[%c0_18, %c0_19] : memref<32x64xbf16, #tpu.memory_space<vmem>>, vector<32x64xbf16>
    %cst_20 = arith.constant dense<0.000000e+00> : vector<64x64xf32>
    %51 = tpu.matmul %49, %50, %cst_20 {dimension_numbers = #tpu.dot_dimension_numbers<[1], [0], [0], [1], [0, 0, 1, 1], [], []>} : vector<64x32xbf16>, vector<32x64xbf16>, vector<64x64xf32> -> vector<64x64xf32>
    %52 = vector.extract_strided_slice %51 {offsets = [0, 0], sizes = [64, 32], strides = [1, 1]} : vector<64x64xf32> to vector<64x32xf32>
    %53 = vector.shape_cast %52 : vector<64x32xf32> to vector<8x8x32xf32>
    %c0_21 = arith.constant 0 : index
    %c0_22 = arith.constant 0 : index
    %c0_23 = arith.constant 0 : index
    %54 = vector.load %arg6[%c0_21, %c0_22, %c0_23] : memref<8x8x32xf32, #tpu.memory_space<vmem>>, vector<8x8x32xf32>
    tpu.vector_store %arg6[%c0_21, %c0_22, %c0_23], %53 {strides = array<i32>} : memref<8x8x32xf32, #tpu.memory_space<vmem>>, vector<8x8x32xf32>,
    %55 = vector.extract_strided_slice %51 {offsets = [0, 32], sizes = [64, 32], strides = [1, 1]} : vector<64x64xf32> to vector<64x32xf32>
    %56 = vector.shape_cast %55 : vector<64x32xf32> to vector<8x8x32xf32>
    %c0_24 = arith.constant 0 : index
    %c0_25 = arith.constant 0 : index
    %c0_26 = arith.constant 0 : index
    %57 = vector.load %arg7[%c0_24, %c0_25, %c0_26] : memref<8x8x32xf32, #tpu.memory_space<vmem>>, vector<8x8x32xf32>
    tpu.vector_store %arg7[%c0_24, %c0_25, %c0_26], %56 {strides = array<i32>} : memref<8x8x32xf32, #tpu.memory_space<vmem>>, vector<8x8x32xf32>,
    return
  }
  func.func @transform_0(%arg0: i32) -> (i32, i32, i32) {
    %c0_i32 = arith.constant 0 : i32
    %c0_i32_0 = arith.constant 0 : i32
    %c0_i32_1 = arith.constant 0 : i32
    return %arg0, %c0_i32, %c0_i32_0 : i32, i32, i32
  }
  func.func @transform_1(%arg0: i32) -> (i32, i32) {
    %c0_i32 = arith.constant 0 : i32
    %c0_i32_0 = arith.constant 0 : i32
    return %arg0, %c0_i32 : i32, i32
  }
  func.func @transform_2(%arg0: i32) -> (i32, i32, i32) {
    %c0_i32 = arith.constant 0 : i32
    %c0_i32_0 = arith.constant 0 : i32
    %c0_i32_1 = arith.constant 0 : i32
    return %arg0, %c0_i32, %c0_i32_0 : i32, i32, i32
  }
  func.func @transform_3(%arg0: i32) -> (i32, i32) {
    %c0_i32 = arith.constant 0 : i32
    %c0_i32_0 = arith.constant 0 : i32
    %c0_i32_1 = arith.constant 0 : i32
    return %c0_i32, %c0_i32_0 : i32, i32
  }
  func.func @transform_4(%arg0: i32) -> (i32, i32) {
    %c0_i32 = arith.constant 0 : i32
    %c0_i32_0 = arith.constant 0 : i32
    %c0_i32_1 = arith.constant 0 : i32
    return %c0_i32, %c0_i32_0 : i32, i32
  }
  func.func @transform_5(%arg0: i32) -> (i32, i32, i32) {
    %c0_i32 = arith.constant 0 : i32
    %c0_i32_0 = arith.constant 0 : i32
    %c0_i32_1 = arith.constant 0 : i32
    return %arg0, %c0_i32, %c0_i32_0 : i32, i32, i32
  }
  func.func @transform_6(%arg0: i32) -> (i32, i32, i32) {
    %c0_i32 = arith.constant 0 : i32
    %c0_i32_0 = arith.constant 0 : i32
    %c0_i32_1 = arith.constant 0 : i32
    return %arg0, %c0_i32, %c0_i32_0 : i32, i32, i32
  }
}

module attributes {stable_mosaic.version = 11 : i64} {
  func.func @dec_kernel(%arg0: i32, %arg1: memref<8x8x32xf32, #tpu.memory_space<vmem>>, %arg2: memref<8x8xf32, #tpu.memory_space<vmem>>, %arg3: memref<8x8x32xf32, #tpu.memory_space<vmem>>, %arg4: memref<8x32x32xf32, #tpu.memory_space<vmem>>, %arg5: memref<8x32x32xf32, #tpu.memory_space<vmem>>, %arg6: memref<8x32xf32, #tpu.memory_space<vmem>>, %arg7: memref<8x8xi32, #tpu.memory_space<vmem>>, %arg8: memref<32x32xbf16, #tpu.memory_space<vmem>>, %arg9: memref<32x32xbf16, #tpu.memory_space<vmem>>, %arg10: memref<8x8x32xf32, #tpu.memory_space<vmem>>, %arg11: memref<8x8xi32, #tpu.memory_space<vmem>>, %arg12: memref<8x128xf32, #tpu.memory_space<vmem>>) attributes {dimension_semantics = [#tpu.dimension_semantics<parallel>], iteration_bounds = array<i64: 1>, scalar_prefetch = 0 : i64, scratch_operands = 0 : i64, tpu.core_type = #tpu.core_type<tc>, window_params = [{transform_indices = @transform_0, window_bounds = array<i64: 8, 8, 32>}, {transform_indices = @transform_1, window_bounds = array<i64: 8, 8>}, {transform_indices = @transform_2, window_bounds = array<i64: 8, 8, 32>}, {transform_indices = @transform_3, window_bounds = array<i64: 8, 32, 32>}, {transform_indices = @transform_4, window_bounds = array<i64: 8, 32, 32>}, {transform_indices = @transform_5, window_bounds = array<i64: 8, 32>}, {transform_indices = @transform_6, window_bounds = array<i64: 8, 8>}, {pipeline_mode = #tpu.pipeline_mode<synchronous>, transform_indices = @transform_7, window_bounds = array<i64: 32, 32>}, {pipeline_mode = #tpu.pipeline_mode<synchronous>, transform_indices = @transform_8, window_bounds = array<i64: 32, 32>}, {transform_indices = @transform_9, window_bounds = array<i64: 8, 8, 32>}, {transform_indices = @transform_10, window_bounds = array<i64: 8, 8>}, {transform_indices = @transform_11, window_bounds = array<i64: 8, 128>}]} {
    %c0 = arith.constant 0 : index
    %c0_0 = arith.constant 0 : index
    %c0_1 = arith.constant 0 : index
    %0 = vector.load %arg1[%c0, %c0_0, %c0_1] : memref<8x8x32xf32, #tpu.memory_space<vmem>>, vector<8x8x32xf32>
    %c0_2 = arith.constant 0 : index
    %c0_3 = arith.constant 0 : index
    %1 = vector.load %arg2[%c0_2, %c0_3] : memref<8x8xf32, #tpu.memory_space<vmem>>, vector<8x8xf32>
    %c0_4 = arith.constant 0 : index
    %c0_5 = arith.constant 0 : index
    %c0_6 = arith.constant 0 : index
    %2 = vector.load %arg3[%c0_4, %c0_5, %c0_6] : memref<8x8x32xf32, #tpu.memory_space<vmem>>, vector<8x8x32xf32>
    %c0_7 = arith.constant 0 : index
    %c0_8 = arith.constant 0 : index
    %c0_9 = arith.constant 0 : index
    %3 = vector.load %arg4[%c0_7, %c0_8, %c0_9] : memref<8x32x32xf32, #tpu.memory_space<vmem>>, vector<8x32x32xf32>
    %c0_10 = arith.constant 0 : index
    %c0_11 = arith.constant 0 : index
    %c0_12 = arith.constant 0 : index
    %4 = vector.load %arg5[%c0_10, %c0_11, %c0_12] : memref<8x32x32xf32, #tpu.memory_space<vmem>>, vector<8x32x32xf32>
    %c0_13 = arith.constant 0 : index
    %c0_14 = arith.constant 0 : index
    %5 = vector.load %arg6[%c0_13, %c0_14] : memref<8x32xf32, #tpu.memory_space<vmem>>, vector<8x32xf32>
    %c0_15 = arith.constant 0 : index
    %c0_16 = arith.constant 0 : index
    %6 = vector.load %arg7[%c0_15, %c0_16] : memref<8x8xi32, #tpu.memory_space<vmem>>, vector<8x8xi32>
    %c0_17 = arith.constant 0 : index
    %c0_18 = arith.constant 0 : index
    %7 = vector.load %arg8[%c0_17, %c0_18] : memref<32x32xbf16, #tpu.memory_space<vmem>>, vector<32x32xbf16>
    %8 = vector.shape_cast %0 : vector<8x8x32xf32> to vector<64x32xf32>
    %9 = arith.truncf %8 : vector<64x32xf32> to vector<64x32xbf16>
    %cst = arith.constant dense<0.000000e+00> : vector<64x32xf32>
    %10 = tpu.matmul %9, %7, %cst {dimension_numbers = #tpu.dot_dimension_numbers<[1], [0], [0], [1], [0, 0, 1, 1], [], []>} : vector<64x32xbf16>, vector<32x32xbf16>, vector<64x32xf32> -> vector<64x32xf32>
    %11 = math.tanh %10 : vector<64x32xf32>
    %12 = vector.shape_cast %11 : vector<64x32xf32> to vector<8x8x32xf32>
    %cst_19 = arith.constant dense<0.000000e+00> : vector<8xf32>
    %13 = vector.multi_reduction <add>, %1, %cst_19 [1] : vector<8x8xf32> to vector<8xf32>
    %14 = vector.shape_cast %13 : vector<8xf32> to vector<8x1xf32>
    %cst_20 = arith.constant 1.000000e+00 : f32
    %15 = vector.broadcast %cst_20 : f32 to vector<8x1xf32>
    %16 = arith.maximumf %14, %15 : vector<8x1xf32>
    %17 = vector.shape_cast %1 : vector<8x8xf32> to vector<8x8x1xf32>
    %18 = vector.broadcast %17 : vector<8x8x1xf32> to vector<8x8x32xf32>
    %19 = arith.mulf %12, %18 : vector<8x8x32xf32>
    %cst_21 = arith.constant dense<0.000000e+00> : vector<8x32xf32>
    %20 = vector.multi_reduction <add>, %19, %cst_21 [1] : vector<8x8x32xf32> to vector<8x32xf32>
    %21 = tpu.reciprocal %16 {approx = true} : vector<8x1xf32> -> vector<8x1xf32>
    %22 = vector.broadcast %21 : vector<8x1xf32> to vector<8x32xf32>
    %23 = arith.mulf %20, %22 : vector<8x32xf32>
    %24 = arith.truncf %2 : vector<8x8x32xf32> to vector<8x8x32xbf16>
    %25 = arith.truncf %12 : vector<8x8x32xf32> to vector<8x8x32xbf16>
    "tpu.trace_start"() <{level = 10 : i32, message = "btd,bsd->bts"}> : () -> ()
    %cst_22 = arith.constant dense<0.000000e+00> : vector<8x8x8xf32>
    %26 = tpu.matmul %24, %25, %cst_22 {dimension_numbers = #tpu.dot_dimension_numbers<[2], [2], [1], [1], [0, 0, 0, 1, 1, 1], [0], [0]>} : vector<8x8x32xbf16>, vector<8x8x32xbf16>, vector<8x8x8xf32> -> vector<8x8x8xf32>
    "tpu.trace_stop"() : () -> ()
    %27 = vector.shape_cast %1 : vector<8x8xf32> to vector<8x1x8xf32>
    %cst_23 = arith.constant 0.000000e+00 : f32
    %28 = vector.broadcast %cst_23 : f32 to vector<8x1x8xf32>
    %29 = arith.cmpf ogt, %27, %28 : vector<8x1x8xf32>
    %cst_24 = arith.constant -1.000000e+09 : f32
    %30 = vector.shape_cast %29 : vector<8x1x8xi1> to vector<8x1x8xi1>
    %31 = vector.broadcast %30 : vector<8x1x8xi1> to vector<8x8x8xi1>
    %32 = vector.broadcast %cst_24 : f32 to vector<8x8x8xf32>
    %33 = arith.select %31, %26, %32 : vector<8x8x8xi1>, vector<8x8x8xf32>
    %cst_25 = arith.constant dense<0xFF800000> : vector<8x8xf32>
    %34 = vector.multi_reduction <maximumf>, %33, %cst_25 [2] : vector<8x8x8xf32> to vector<8x8xf32>
    %35 = vector.shape_cast %34 : vector<8x8xf32> to vector<8x8x1xf32>
    %36 = vector.broadcast %35 : vector<8x8x1xf32> to vector<8x8x8xf32>
    %37 = arith.subf %33, %36 : vector<8x8x8xf32>
    %38 = math.exp %37 : vector<8x8x8xf32>
    %cst_26 = arith.constant dense<0.000000e+00> : vector<8x8xf32>
    %39 = vector.multi_reduction <add>, %38, %cst_26 [2] : vector<8x8x8xf32> to vector<8x8xf32>
    %40 = vector.shape_cast %39 : vector<8x8xf32> to vector<8x8x1xf32>
    %41 = tpu.reciprocal %40 {approx = true} : vector<8x8x1xf32> -> vector<8x8x1xf32>
    %42 = vector.broadcast %41 : vector<8x8x1xf32> to vector<8x8x8xf32>
    %43 = arith.mulf %38, %42 : vector<8x8x8xf32>
    %44 = arith.truncf %43 : vector<8x8x8xf32> to vector<8x8x8xbf16>
    %45 = arith.truncf %12 : vector<8x8x32xf32> to vector<8x8x32xbf16>
    "tpu.trace_start"() <{level = 10 : i32, message = "bts,bsd->btd"}> : () -> ()
    %cst_27 = arith.constant dense<0.000000e+00> : vector<8x8x32xf32>
    %46 = tpu.matmul %44, %45, %cst_27 {dimension_numbers = #tpu.dot_dimension_numbers<[2], [1], [1], [2], [0, 0, 0, 1, 1, 2], [0], [0]>} : vector<8x8x8xbf16>, vector<8x8x32xbf16>, vector<8x8x32xf32> -> vector<8x8x32xf32>
    "tpu.trace_stop"() : () -> ()
    %47 = arith.truncf %2 : vector<8x8x32xf32> to vector<8x8x32xbf16>
    %48 = arith.truncf %3 : vector<8x32x32xf32> to vector<8x32x32xbf16>
    "tpu.trace_start"() <{level = 10 : i32, message = "btd,bsd->bts"}> : () -> ()
    %cst_28 = arith.constant dense<0.000000e+00> : vector<8x8x32xf32>
    %49 = tpu.matmul %47, %48, %cst_28 {dimension_numbers = #tpu.dot_dimension_numbers<[2], [2], [1], [1], [0, 0, 0, 1, 1, 1], [0], [0]>} : vector<8x8x32xbf16>, vector<8x32x32xbf16>, vector<8x8x32xf32> -> vector<8x8x32xf32>
    "tpu.trace_stop"() : () -> ()
    %50 = vector.shape_cast %5 : vector<8x32xf32> to vector<8x1x32xf32>
    %cst_29 = arith.constant 0.000000e+00 : f32
    %51 = vector.broadcast %cst_29 : f32 to vector<8x1x32xf32>
    %52 = arith.cmpf ogt, %50, %51 : vector<8x1x32xf32>
    %cst_30 = arith.constant -1.000000e+09 : f32
    %53 = vector.shape_cast %52 : vector<8x1x32xi1> to vector<8x1x32xi1>
    %54 = vector.broadcast %53 : vector<8x1x32xi1> to vector<8x8x32xi1>
    %55 = vector.broadcast %cst_30 : f32 to vector<8x8x32xf32>
    %56 = arith.select %54, %49, %55 : vector<8x8x32xi1>, vector<8x8x32xf32>
    %cst_31 = arith.constant dense<0xFF800000> : vector<8x8xf32>
    %57 = vector.multi_reduction <maximumf>, %56, %cst_31 [2] : vector<8x8x32xf32> to vector<8x8xf32>
    %58 = vector.shape_cast %57 : vector<8x8xf32> to vector<8x8x1xf32>
    %59 = vector.broadcast %58 : vector<8x8x1xf32> to vector<8x8x32xf32>
    %60 = arith.subf %56, %59 : vector<8x8x32xf32>
    %61 = math.exp %60 : vector<8x8x32xf32>
    %cst_32 = arith.constant dense<0.000000e+00> : vector<8x8xf32>
    %62 = vector.multi_reduction <add>, %61, %cst_32 [2] : vector<8x8x32xf32> to vector<8x8xf32>
    %63 = vector.shape_cast %62 : vector<8x8xf32> to vector<8x8x1xf32>
    %64 = tpu.reciprocal %63 {approx = true} : vector<8x8x1xf32> -> vector<8x8x1xf32>
    %65 = vector.broadcast %64 : vector<8x8x1xf32> to vector<8x8x32xf32>
    %66 = arith.mulf %61, %65 : vector<8x8x32xf32>
    %67 = arith.truncf %66 : vector<8x8x32xf32> to vector<8x8x32xbf16>
    %68 = arith.truncf %4 : vector<8x32x32xf32> to vector<8x32x32xbf16>
    "tpu.trace_start"() <{level = 10 : i32, message = "bts,bsd->btd"}> : () -> ()
    %cst_33 = arith.constant dense<0.000000e+00> : vector<8x8x32xf32>
    %69 = tpu.matmul %67, %68, %cst_33 {dimension_numbers = #tpu.dot_dimension_numbers<[2], [1], [1], [2], [0, 0, 0, 1, 1, 2], [0], [0]>} : vector<8x8x32xbf16>, vector<8x32x32xbf16>, vector<8x8x32xf32> -> vector<8x8x32xf32>
    "tpu.trace_stop"() : () -> ()
    %70 = arith.addf %2, %46 : vector<8x8x32xf32>
    %71 = arith.addf %70, %69 : vector<8x8x32xf32>
    %72 = vector.shape_cast %23 : vector<8x32xf32> to vector<8x1x32xf32>
    %73 = vector.broadcast %72 : vector<8x1x32xf32> to vector<8x8x32xf32>
    %74 = arith.addf %71, %73 : vector<8x8x32xf32>
    %75 = math.tanh %74 : vector<8x8x32xf32>
    %76 = vector.shape_cast %75 : vector<8x8x32xf32> to vector<64x32xf32>
    %77 = arith.truncf %76 : vector<64x32xf32> to vector<64x32xbf16>
    %c0_34 = arith.constant 0 : index
    %c0_35 = arith.constant 0 : index
    %78 = vector.load %arg9[%c0_34, %c0_35] : memref<32x32xbf16, #tpu.memory_space<vmem>>, vector<32x32xbf16>
    %cst_36 = arith.constant dense<0.000000e+00> : vector<64x32xf32>
    %79 = tpu.matmul %77, %78, %cst_36 {dimension_numbers = #tpu.dot_dimension_numbers<[1], [0], [0], [1], [0, 0, 1, 1], [], []>} : vector<64x32xbf16>, vector<32x32xbf16>, vector<64x32xf32> -> vector<64x32xf32>
    %80 = vector.shape_cast %79 : vector<64x32xf32> to vector<8x8x32xf32>
    %cst_37 = arith.constant dense<0xFF800000> : vector<8x8xf32>
    %81 = vector.multi_reduction <maximumf>, %80, %cst_37 [2] : vector<8x8x32xf32> to vector<8x8xf32>
    %82 = vector.shape_cast %81 : vector<8x8xf32> to vector<8x8x1xf32>
    %83 = vector.broadcast %82 : vector<8x8x1xf32> to vector<8x8x32xf32>
    %84 = arith.subf %80, %83 : vector<8x8x32xf32>
    %85 = math.exp %84 : vector<8x8x32xf32>
    %cst_38 = arith.constant dense<0.000000e+00> : vector<8x8xf32>
    %86 = vector.multi_reduction <add>, %85, %cst_38 [2] : vector<8x8x32xf32> to vector<8x8xf32>
    %87 = vector.shape_cast %86 : vector<8x8xf32> to vector<8x8x1xf32>
    %88 = tpu.reciprocal %87 {approx = true} : vector<8x8x1xf32> -> vector<8x8x1xf32>
    %89 = vector.broadcast %88 : vector<8x8x1xf32> to vector<8x8x32xf32>
    %90 = arith.mulf %85, %89 : vector<8x8x32xf32>
    %c0_39 = arith.constant 0 : index
    %c0_40 = arith.constant 0 : index
    %c0_41 = arith.constant 0 : index
    %91 = vector.load %arg10[%c0_39, %c0_40, %c0_41] : memref<8x8x32xf32, #tpu.memory_space<vmem>>, vector<8x8x32xf32>
    tpu.vector_store %arg10[%c0_39, %c0_40, %c0_41], %90 {strides = array<i32>} : memref<8x8x32xf32, #tpu.memory_space<vmem>>, vector<8x8x32xf32>,
    %92 = vector.broadcast %82 : vector<8x8x1xf32> to vector<8x8x32xf32>
    %93 = arith.subf %80, %92 : vector<8x8x32xf32>
    %94 = math.log %87 : vector<8x8x1xf32>
    %95 = vector.broadcast %94 : vector<8x8x1xf32> to vector<8x8x32xf32>
    %96 = arith.subf %93, %95 : vector<8x8x32xf32>
    %97 = tpu.iota {dimensions = array<i32: 2>} : vector<8x8x32xi32>
    %98 = vector.broadcast %82 : vector<8x8x1xf32> to vector<8x8x32xf32>
    %99 = arith.cmpf oge, %80, %98 : vector<8x8x32xf32>
    %c32_i32 = arith.constant 32 : i32
    %100 = vector.broadcast %c32_i32 : i32 to vector<8x8x32xi32>
    %101 = arith.select %99, %97, %100 : vector<8x8x32xi1>, vector<8x8x32xi32>
    %cst_42 = arith.constant dense<2147483647> : vector<8x8xi32>
    %102 = vector.multi_reduction <minsi>, %101, %cst_42 [2] : vector<8x8x32xi32> to vector<8x8xi32>
    %c0_43 = arith.constant 0 : index
    %c0_44 = arith.constant 0 : index
    %103 = vector.load %arg11[%c0_43, %c0_44] : memref<8x8xi32, #tpu.memory_space<vmem>>, vector<8x8xi32>
    tpu.vector_store %arg11[%c0_43, %c0_44], %102 {strides = array<i32>} : memref<8x8xi32, #tpu.memory_space<vmem>>, vector<8x8xi32>,
    %c0_i32 = arith.constant 0 : i32
    %104 = vector.broadcast %c0_i32 : i32 to vector<8x8xi32>
    %105 = arith.cmpi ne, %6, %104 : vector<8x8xi32>
    %106 = arith.extui %105 : vector<8x8xi1> to vector<8x8xi32>
    %107 = arith.sitofp %106 : vector<8x8xi32> to vector<8x8xf32>
    %108 = vector.shape_cast %6 : vector<8x8xi32> to vector<8x8x1xi32>
    %109 = vector.broadcast %108 : vector<8x8x1xi32> to vector<8x8x32xi32>
    %110 = arith.cmpi eq, %97, %109 : vector<8x8x32xi32>
    %111 = arith.extui %110 : vector<8x8x32xi1> to vector<8x8x32xi32>
    %112 = arith.sitofp %111 : vector<8x8x32xi32> to vector<8x8x32xf32>
    %113 = arith.mulf %112, %96 : vector<8x8x32xf32>
    %cst_45 = arith.constant dense<0.000000e+00> : vector<8x8xf32>
    %114 = vector.multi_reduction <add>, %113, %cst_45 [2] : vector<8x8x32xf32> to vector<8x8xf32>
    %cst_46 = arith.constant dense<0.000000e+00> : vector<8x8xf32>
    %115 = vector.multi_reduction <add>, %96, %cst_46 [2] : vector<8x8x32xf32> to vector<8x8xf32>
    %cst_47 = arith.constant 3.200000e+01 : f32
    %116 = vector.broadcast %cst_47 : f32 to vector<8x8xf32>
    %117 = arith.divf %115, %116 : vector<8x8xf32>
    %cst_48 = arith.constant 1.000000e+00 : f32
    %118 = vector.broadcast %cst_48 : f32 to vector<8x8xf32>
    %119 = arith.mulf %118, %114 : vector<8x8xf32>
    %cst_49 = arith.constant 0.000000e+00 : f32
    %120 = vector.broadcast %cst_49 : f32 to vector<8x8xf32>
    %121 = arith.mulf %120, %117 : vector<8x8xf32>
    %122 = arith.addf %119, %121 : vector<8x8xf32>
    %cst_50 = arith.constant 0.000000e+00 : f32
    %123 = vector.broadcast %cst_50 : f32 to vector<8x8xf32>
    %124 = arith.subf %123, %122 : vector<8x8xf32>
    %125 = arith.mulf %124, %107 : vector<8x8xf32>
    %cst_51 = arith.constant dense<0.000000e+00> : vector<8xf32>
    %126 = vector.multi_reduction <add>, %125, %cst_51 [1] : vector<8x8xf32> to vector<8xf32>
    %127 = vector.shape_cast %126 : vector<8xf32> to vector<8x1xf32>
    %cst_52 = arith.constant dense<0.000000e+00> : vector<8xf32>
    %128 = vector.multi_reduction <add>, %107, %cst_52 [1] : vector<8x8xf32> to vector<8xf32>
    %129 = vector.shape_cast %128 : vector<8xf32> to vector<8x1xf32>
    %130 = arith.cmpi eq, %102, %6 : vector<8x8xi32>
    %c1_i32 = arith.constant 1 : i32
    %131 = vector.broadcast %c1_i32 : i32 to vector<8x8xi32>
    %132 = arith.cmpi ne, %102, %131 : vector<8x8xi32>
    %133 = arith.andi %130, %132 : vector<8x8xi1>
    %134 = arith.extui %133 : vector<8x8xi1> to vector<8x8xi32>
    %135 = arith.sitofp %134 : vector<8x8xi32> to vector<8x8xf32>
    %136 = arith.mulf %135, %107 : vector<8x8xf32>
    %cst_53 = arith.constant dense<0.000000e+00> : vector<8xf32>
    %137 = vector.multi_reduction <add>, %136, %cst_53 [1] : vector<8x8xf32> to vector<8xf32>
    %138 = vector.shape_cast %137 : vector<8xf32> to vector<8x1xf32>
    %cst_54 = arith.constant 0.000000e+00 : f32
    %139 = vector.broadcast %cst_54 : f32 to vector<8x8xf32>
    %140 = arith.cmpf ogt, %107, %139 : vector<8x8xf32>
    %cst_55 = arith.constant 1.000000e+00 : f32
    %141 = vector.broadcast %cst_55 : f32 to vector<8x8xf32>
    %142 = arith.select %140, %135, %141 : vector<8x8xi1>, vector<8x8xf32>
    %cst_56 = arith.constant dense<0x7F800000> : vector<8xf32>
    %143 = vector.multi_reduction <minimumf>, %142, %cst_56 [1] : vector<8x8xf32> to vector<8xf32>
    %144 = vector.shape_cast %143 : vector<8xf32> to vector<8x1xf32>
    %145 = tpu.iota {dimensions = array<i32: 1>} : vector<8x128xi32>
    %c0_i32_57 = arith.constant 0 : i32
    %146 = vector.broadcast %c0_i32_57 : i32 to vector<8x128xi32>
    %147 = arith.cmpi eq, %145, %146 : vector<8x128xi32>
    %cst_58 = arith.constant 0.000000e+00 : f32
    %148 = vector.shape_cast %127 : vector<8x1xf32> to vector<8x1xf32>
    %149 = vector.broadcast %148 : vector<8x1xf32> to vector<8x128xf32>
    %150 = vector.broadcast %cst_58 : f32 to vector<8x128xf32>
    %151 = arith.select %147, %149, %150 : vector<8x128xi1>, vector<8x128xf32>
    %c1_i32_59 = arith.constant 1 : i32
    %152 = vector.broadcast %c1_i32_59 : i32 to vector<8x128xi32>
    %153 = arith.cmpi eq, %145, %152 : vector<8x128xi32>
    %cst_60 = arith.constant 0.000000e+00 : f32
    %154 = vector.shape_cast %129 : vector<8x1xf32> to vector<8x1xf32>
    %155 = vector.broadcast %154 : vector<8x1xf32> to vector<8x128xf32>
    %156 = vector.broadcast %cst_60 : f32 to vector<8x128xf32>
    %157 = arith.select %153, %155, %156 : vector<8x128xi1>, vector<8x128xf32>
    %158 = arith.addf %151, %157 : vector<8x128xf32>
    %c2_i32 = arith.constant 2 : i32
    %159 = vector.broadcast %c2_i32 : i32 to vector<8x128xi32>
    %160 = arith.cmpi eq, %145, %159 : vector<8x128xi32>
    %cst_61 = arith.constant 0.000000e+00 : f32
    %161 = vector.shape_cast %138 : vector<8x1xf32> to vector<8x1xf32>
    %162 = vector.broadcast %161 : vector<8x1xf32> to vector<8x128xf32>
    %163 = vector.broadcast %cst_61 : f32 to vector<8x128xf32>
    %164 = arith.select %160, %162, %163 : vector<8x128xi1>, vector<8x128xf32>
    %165 = arith.addf %158, %164 : vector<8x128xf32>
    %c3_i32 = arith.constant 3 : i32
    %166 = vector.broadcast %c3_i32 : i32 to vector<8x128xi32>
    %167 = arith.cmpi eq, %145, %166 : vector<8x128xi32>
    %cst_62 = arith.constant 0.000000e+00 : f32
    %168 = vector.shape_cast %144 : vector<8x1xf32> to vector<8x1xf32>
    %169 = vector.broadcast %168 : vector<8x1xf32> to vector<8x128xf32>
    %170 = vector.broadcast %cst_62 : f32 to vector<8x128xf32>
    %171 = arith.select %167, %169, %170 : vector<8x128xi1>, vector<8x128xf32>
    %172 = arith.addf %165, %171 : vector<8x128xf32>
    %c0_63 = arith.constant 0 : index
    %c0_64 = arith.constant 0 : index
    %173 = vector.load %arg12[%c0_63, %c0_64] : memref<8x128xf32, #tpu.memory_space<vmem>>, vector<8x128xf32>
    tpu.vector_store %arg12[%c0_63, %c0_64], %172 {strides = array<i32>} : memref<8x128xf32, #tpu.memory_space<vmem>>, vector<8x128xf32>,
    return
  }
  func.func @transform_0(%arg0: i32) -> (i32, i32, i32) {
    %c0_i32 = arith.constant 0 : i32
    %c0_i32_0 = arith.constant 0 : i32
    %c0_i32_1 = arith.constant 0 : i32
    return %arg0, %c0_i32, %c0_i32_0 : i32, i32, i32
  }
  func.func @transform_1(%arg0: i32) -> (i32, i32) {
    %c0_i32 = arith.constant 0 : i32
    %c0_i32_0 = arith.constant 0 : i32
    return %arg0, %c0_i32 : i32, i32
  }
  func.func @transform_2(%arg0: i32) -> (i32, i32, i32) {
    %c0_i32 = arith.constant 0 : i32
    %c0_i32_0 = arith.constant 0 : i32
    %c0_i32_1 = arith.constant 0 : i32
    return %arg0, %c0_i32, %c0_i32_0 : i32, i32, i32
  }
  func.func @transform_3(%arg0: i32) -> (i32, i32, i32) {
    %c0_i32 = arith.constant 0 : i32
    %c0_i32_0 = arith.constant 0 : i32
    %c0_i32_1 = arith.constant 0 : i32
    return %arg0, %c0_i32, %c0_i32_0 : i32, i32, i32
  }
  func.func @transform_4(%arg0: i32) -> (i32, i32, i32) {
    %c0_i32 = arith.constant 0 : i32
    %c0_i32_0 = arith.constant 0 : i32
    %c0_i32_1 = arith.constant 0 : i32
    return %arg0, %c0_i32, %c0_i32_0 : i32, i32, i32
  }
  func.func @transform_5(%arg0: i32) -> (i32, i32) {
    %c0_i32 = arith.constant 0 : i32
    %c0_i32_0 = arith.constant 0 : i32
    return %arg0, %c0_i32 : i32, i32
  }
  func.func @transform_6(%arg0: i32) -> (i32, i32) {
    %c0_i32 = arith.constant 0 : i32
    %c0_i32_0 = arith.constant 0 : i32
    return %arg0, %c0_i32 : i32, i32
  }
  func.func @transform_7(%arg0: i32) -> (i32, i32) {
    %c0_i32 = arith.constant 0 : i32
    %c0_i32_0 = arith.constant 0 : i32
    %c0_i32_1 = arith.constant 0 : i32
    return %c0_i32, %c0_i32_0 : i32, i32
  }
  func.func @transform_8(%arg0: i32) -> (i32, i32) {
    %c0_i32 = arith.constant 0 : i32
    %c0_i32_0 = arith.constant 0 : i32
    %c0_i32_1 = arith.constant 0 : i32
    return %c0_i32, %c0_i32_0 : i32, i32
  }
  func.func @transform_9(%arg0: i32) -> (i32, i32, i32) {
    %c0_i32 = arith.constant 0 : i32
    %c0_i32_0 = arith.constant 0 : i32
    %c0_i32_1 = arith.constant 0 : i32
    return %arg0, %c0_i32, %c0_i32_0 : i32, i32, i32
  }
  func.func @transform_10(%arg0: i32) -> (i32, i32) {
    %c0_i32 = arith.constant 0 : i32
    %c0_i32_0 = arith.constant 0 : i32
    return %arg0, %c0_i32 : i32, i32
  }
  func.func @transform_11(%arg0: i32) -> (i32, i32) {
    %c0_i32 = arith.constant 0 : i32
    %c0_i32_0 = arith.constant 0 : i32
    return %arg0, %c0_i32 : i32, i32
  }
}

</mosaic_0001>

<bundles_post_ra>
// kernel: train_model_forward.2
= control target key start
LH: loop header
LB: loop body
LE: loop exit
PB: predicated region body
PF: predicated region fallthrough
CT: control target
= control target key end

     0   :  { %vm60_vm0 = vcmask 261120   ;;  %v1740_v14 = vmov 0.0   ;;  %vm1741_vm1 = vmmov 0   ;;  %vm901_vm2 = vcmask 1043456   ;;  %s1744_s11 = smov 96   ;;  %s2224_s3 = inlined_call_operand.vmem [shape: bf16[32,32], index: 3, kind: input, shape index: {}]   ;;  %s2225_s0 = inlined_call_operand.vmem [shape: f32[8,8,32], index: 0, kind: input, shape index: {}]   ;;  %s2226_s2 = inlined_call_operand.vmem [shape: f32[8,8,32], index: 2, kind: input, shape index: {}]   ;;  %s2227_s1 = inlined_call_operand.vmem [shape: f32[8,8], index: 1, kind: input, shape index: {}]   ;;  %s2228_s4 = inlined_call_operand.vmem [shape: bf16[32,64], index: 4, kind: input, shape index: {}]   ;;  %s2229_s5 = inlined_call_operand.vmem [shape: f32[8,8,32], index: 5, kind: output, shape index: {0}]   ;;  %s2230_s6 = inlined_call_operand.vmem [shape: f32[8,8,32], index: 6, kind: output, shape index: {1}]  }
   0x1   :  { %v1669_v0 = vld [vmem:[%s2224_s3] sm:$0xff]   ;;  %v1670_v1 = vld [vmem:[%s2224_s3 + $0x8] sm:$0xff]   ;;  %v25_v4 = vld [vmem:[%s2225_s0 + $0x10] sm:$0xff]  ;;  %vm146_vm9 = vcmask 64512  }
   0x2   :  { %1540 = vmatprep.subr.bf16.mxu0 %v1669_v0  ;;  %1660 = vmatprep.subr.bf16.mxu1 %v1669_v0  ;;  %v23_v2 = vld [vmem:[%s2225_s0] sm:$0xff]  ;;  %v24_v3 = vld [vmem:[%s2225_s0 + $0x8] sm:$0xff]  ;;  %v26_v6 = vld [vmem:[%s2225_s0 + $0x18] sm:$0xff] }
   0x3   :  { %1541 = vmatpush3.bf16.msra.mxu0 %v1669_v0  ;;  %v44_v5 = vpack.c.bf16 %v24_v3, %v23_v2  ;;  %1662 = vmatpush3.bf16.msra.mxu1 %v1669_v0  ;;  %v27_v7 = vld [vmem:[%s2225_s0 + $0x20] sm:$0xff]  ;;  %v28_v8 = vld [vmem:[%s2225_s0 + $0x28] sm:$0xff]  ;;  %v29_v10 = vld [vmem:[%s2225_s0 + $0x30] sm:$0xff]  ;;  %v45_v12 = vpack.c.bf16 %v26_v6, %v25_v4 }
   0x4   :  { %1542 = vmatprep.subr.bf16.mxu0 %v1670_v1  ;;  %1661 = vmatprep.subr.bf16.mxu1 %v1670_v1  ;;  %v46_v9 = vpack.c.bf16 %v28_v8, %v27_v7  ;;  %v30_v11 = vld [vmem:[%s2225_s0 + $0x38] sm:$0xff]  ;;  %v1844_v34 = vld [vmem:[%s2226_s2 + $0x10] sm:$0xff]  ;;  %v1852_v36 = vld [vmem:[%s2226_s2] sm:$0xff]  ;;  %v151_v7 = vlaneseq  ;;  %v1742_v8 = vmov 1966171168  }
   0x5   :  { %1544 = vmatprep.mubr.msk.bf16.mxu0 %vm60_vm0, %v44_v5  ;;  %v47_v13 = vpack.c.bf16 %v30_v11, %v29_v10  ;;  %v298_v42 = vpack.c.bf16 %v1844_v34, %v1844_v34  ;;  %v296_v45 = vpack.c.bf16 %v1852_v36, %v1852_v36  ;;  %v1895_v53 = vld [vmem:[%s2226_s2 + $0x20] sm:$0xff]  ;;  %v1902_v54 = vld [vmem:[%s2226_s2 + $0x8] sm:$0xff]  ;;  %v1919_v59 = vld [vmem:[%s2226_s2 + $0x30] sm:$0xff] }
   0x6   :  { %1548 = vmatprep.mubr.msk.bf16.mxu1 %vm60_vm0, %v46_v9  ;;  %v300_v55 = vpack.c.bf16 %v1895_v53, %v1895_v53  ;;  %v297_v56 = vpack.c.bf16 %v1902_v54, %v1902_v54  ;;  %v1926_v60 = vld [vmem:[%s2226_s2 + $0x18] sm:$0xff]  ;;  %v302_v61 = vpack.c.bf16 %v1919_v59, %v1919_v59  ;;  %v683_v9 = vunpack.c.l.s4 %v1742_v8 }
   0x7   :  { %1543 = vmatpush3.bf16.msra.mxu0 %v1670_v1  ;;  %1663 = vmatpush3.bf16.msra.mxu1 %v1670_v1  ;;  %v299_v62 = vpack.c.bf16 %v1926_v60, %v1926_v60  ;;  %v1945_v1 = vld [vmem:[%s2226_s2 + $0x28] sm:$0xff]  ;;  %v1960_v4 = vld [vmem:[%s2226_s2 + $0x38] sm:$0xff]  ;;  %v1970_v10 = vshrl.u32 %v151_v7, 7 }
   0x8   :  { %1564 = vmatprep.subr.bf16.mxu0 %v1740_v14  ;;  %1552 = vmatprep.subr.bf16.mxu1 %v1740_v14  ;;  %v301_v2 = vpack.c.bf16 %v1945_v1, %v1945_v1  ;;  %v303_v5 = vpack.c.bf16 %v1960_v4, %v1960_v4  ;;  %v684_v11 = vunpack.c.0.s8 %v683_v9 }
   0xa   :  { %1545 = vmatmul.mubr.msk.bf16.vlgmr.msra.gmra.mrb[0].mxu0 %vm60_vm0, %v45_v12  ;;  %1549 = vmatmul.mubr.msk.bf16.vlgmr.msra.gmra.mrb[0].mxu1 %vm60_vm0, %v47_v13  ;;  %v687_v12 = vsub.s32 %v684_v11, %v1970_v10  ;;  %v1976_v13 = vld [vmem:[%s2227_s1] sm:$0xff] }
   0xb   :  { %1566 = vmatprep.mubr.msk.bf16.mxu0 %vm1741_vm1, %v1740_v14  ;;  %1554 = vmatprep.mubr.msk.bf16.mxu1 %vm1741_vm1, %v1740_v14 }
  0xdd   :  { %v1546_v15 = vpop.f32.mrb[0].mxu0  ;;  %v1550_v16 = vpop.f32.mrb[0].mxu1 }
  0xde   :  { %1674 = vtanh.f32 %v1546_v15  ;;  %v107_v17 = vpop.f32.mrb[1].mxu0  ;;  %v123_v18 = vpop.f32.mrb[1].mxu1  ;;  %v688_v15 = vrot.slane %v1976_v13, %v687_v12 }
  0xdf   :  { %1676 = vtanh.f32 %v107_v17  ;;  %v1547_v19 = vpop.f32.mrb[2].mxu0  ;;  %v1551_v20 = vpop.f32.mrb[2].mxu1 }
  0xe0   :  { %1678 = vtanh.f32 %v1547_v19  ;;  %v110_v21 = vpop.f32.mrb[3].mxu0  ;;  %v126_v22 = vpop.f32.mrb[3].mxu1  ;;  %v696_v19 = vcombine.high %v688_v15, %v688_v15 }
  0xe1   :  { %1680 = vtanh.f32 %v110_v21  ;;  %v1982_v21 = vsub.s32 0, %v1970_v10 }
  0xe2   :  { %1682 = vtanh.f32 %v1550_v16  ;;  %v704_v16 = vrot.slane %v688_v15, %v687_v12 }
  0xe3   :  { %1684 = vtanh.f32 %v123_v18  ;;  %v681_v18 = vcombine.high %v1976_v13, %v1976_v13 }
  0xe4   :  { %1686 = vtanh.f32 %v1551_v20  ;;  %v726_v17 = vcombine.high %v704_v16, %v704_v16  ;;  %vm738_vm4 = vcmp.gt.f32.partialorder %v704_v16, 0.0 }
  0xe5   :  { %1688 = vtanh.f32 %v126_v22  ;;  %v695_v20 = vrot.slane %v681_v18, %v687_v12  ;;  %v1743_v22 = vmov 0  }
  0xe6   :  { %vm740_vm3 = vcmp.gt.f32.partialorder %v726_v17, 0.0 }
  0xe8   :  { %v1820_v23 = vpop.eup %1674 }
  0xe9   :  { %v1822_v24 = vpop.eup %1676  ;;  %v306_v25 = vpack.c.bf16 %v1820_v23, %v1820_v23 }
  0xea   :  { %v1826_v26 = vpop.eup %1678  ;;  %v304_v27 = vpack.c.bf16 %v1822_v24, %v1822_v24 }
  0xeb   :  { %v1830_v28 = vpop.eup %1680  ;;  %v408_v29 = vsel %vm60_vm0, %v306_v25, 0  ;;  %v307_v30 = vpack.c.bf16 %v1826_v26, %v1826_v26  ;;  %v1836_v31 = vsel %vm901_vm2, %v306_v25, 0  ;;  %v748_v25 = vsel %vm740_vm3, 1, %v1743_v22 }
  0xec   :  { %v1838_v32 = vpop.eup %1682  ;;  %1565 = vmatpush3.bf16.xpose.msra.mxu0 %v408_v29  ;;  %v316_v33 = vsel %vm60_vm0, %v304_v27, 0  ;;  %v305_v46 = vpack.c.bf16 %v1830_v28, %v1830_v28  ;;  %v902_v63 = vsel %vm901_vm2, %v304_v27, 0  ;;  %v746_v27 = vsel %vm738_vm4, 1, %v1743_v22 }
  0xed   :  { %v1846_v35 = vpop.eup %1684  ;;  %1553 = vmatpush3.bf16.xpose.msra.mxu1 %v316_v33  ;;  %1576 = vmatprep.subr.bf16.mxu0 %v1740_v14  ;;  %v310_v37 = vpack.c.bf16 %v1838_v32, %v1838_v32  ;;  %v1857_v38 = vsel %vm901_vm2, %v307_v30, 0  ;;  %v454_v58 = vsel %vm60_vm0, %v307_v30, 0  ;;  %v718_v29 = vrot.slane %v696_v19, %v687_v12 }
  0xee   :  { %v1859_v39 = vpop.eup %1686  ;;  %1558 = vmatprep.subr.bf16.mxu1 %v1740_v14  ;;  %v308_v40 = vpack.c.bf16 %v1846_v35, %v1846_v35  ;;  %v362_v52 = vsel %vm60_vm0, %v305_v46, 0  ;;  %v947_v6 = vsel %vm901_vm2, %v305_v46, 0  ;;  %v711_v30 = vrot.slane %v695_v20, %v687_v12 }
  0xef   :  { %v1864_v41 = vpop.eup %1688  ;;  %v311_v43 = vpack.c.bf16 %v1859_v39, %v1859_v39  ;;  %v1871_v44 = vsel %vm901_vm2, %v310_v37, 0  ;;  %v592_v57 = vsel %vm60_vm0, %v310_v37, 0  ;;  %v765_v33 = vrot.slane %v748_v25, %v1982_v21 }
  0xf0   :  { %v309_v47 = vpack.c.bf16 %v1864_v41, %v1864_v41  ;;  %v1880_v48 = vsel %vm901_vm2, %v308_v40, 0  ;;  %v500_v49 = vsel %vm60_vm0, %v308_v40, 0  ;;  %v757_v37 = vrot.slane %v746_v27, %v1982_v21 }
  0xf1   :  { %v1884_v50 = vsel %vm901_vm2, %v311_v43, 0  ;;  %v638_v3 = vsel %vm60_vm0, %v311_v43, 0  ;;  %vm739_vm5 = vcmp.gt.f32.partialorder %v718_v29, 0.0  ;;  %vm742_vm6 = vcmp.gt.f32.partialorder %v711_v30, 0.0 }
  0xf2   :  { %v1887_v51 = vsel %vm901_vm2, %v309_v47, 0  ;;  %v546_v0 = vsel %vm60_vm0, %v309_v47, 0  ;;  %vm788_vm7 = vcmp.eq.s32.totalorder %v765_v33, 1  ;;  %vm786_vm8 = vcmp.eq.s32.totalorder %v757_v37, 1 }
  0xf3   :  { %1567 = vmatmul.mubr.msk.bf16.vlgmr.msra.gmra.mrb[4].mxu0 %vm60_vm0, %v298_v42  ;;  %v747_v42 = vsel %vm739_vm5, 1, %v1743_v22  ;;  %v750_v43 = vsel %vm742_vm6, 1, %v1743_v22 }
  0xf4   :  { %1555 = vmatmul.mubr.msk.bf16.vlgmr.msra.gmra.mrb[4].mxu1 %vm60_vm0, %v296_v45  ;;  %1577 = vmatpush3.bf16.xpose.msra.mxu0 %v500_v49  ;;  %v727_v45 = vcombine.high %v711_v30, %v711_v30 }
  0xf5   :  { %1559 = vmatpush3.bf16.xpose.msra.mxu1 %v362_v52  ;;  %1560 = vmatprep.mubr.msk.bf16.mxu1 %vm1741_vm1, %v1740_v14  ;;  %v728_v52 = vcombine.high %v718_v29, %v718_v29 }
  0xf6   :  { %1578 = vmatprep.mubr.msk.bf16.mxu0 %vm1741_vm1, %v1740_v14  ;;  %1588 = vmatprep.subr.bf16.mxu0 %v1740_v14  ;;  %vm744_vm10 = vcmp.gt.f32.partialorder %v727_v45, 0.0 }
  0xf7   :  { %1570 = vmatprep.subr.bf16.mxu1 %v1740_v14  ;;  %vm741_vm11 = vcmp.gt.f32.partialorder %v728_v52, 0.0 }
  0xf8   :  { %v749_v8 = vsel %vm741_vm11, 1, %v1743_v22 }
  0xf9   :  { %v769_v30 = vrot.slane %v749_v8, %v1982_v21 }
  0xfb   :  { %1579 = vmatmul.mubr.msk.bf16.vlgmr.msra.gmra.mrb[8].mxu0 %vm60_vm0, %v300_v55  ;;  %vm789_vm2 = vcmp.eq.s32.totalorder %v769_v30, 1 }
  0xfc   :  { %1561 = vmatmul.mubr.msk.bf16.vlgmr.msra.gmra.mrb[8].mxu1 %vm60_vm0, %v297_v56  ;;  %1589 = vmatpush3.bf16.xpose.msra.mxu0 %v592_v57 }
  0xfd   :  { %1571 = vmatpush3.bf16.xpose.msra.mxu1 %v454_v58  ;;  %1572 = vmatprep.mubr.msk.bf16.mxu1 %vm1741_vm1, %v1740_v14 }
  0xfe   :  { %1590 = vmatprep.mubr.msk.bf16.mxu0 %vm1741_vm1, %v1740_v14  ;;  %1600 = vmatprep.subr.bf16.mxu0 %v1740_v14 }
  0xff   :  { %1582 = vmatprep.subr.bf16.mxu1 %v1740_v14 }
 0x103   :  { %1591 = vmatmul.mubr.msk.bf16.vlgmr.msra.gmra.mrb[12].mxu0 %vm60_vm0, %v302_v61 }
 0x104   :  { %1573 = vmatmul.mubr.msk.bf16.vlgmr.msra.gmra.mrb[12].mxu1 %vm60_vm0, %v299_v62  ;;  %1601 = vmatpush3.bf16.msra.mxu0 %v902_v63  ;;  %v761_v63 = vrot.slane %v747_v42, %v1982_v21 }
 0x105   :  { %1583 = vmatpush3.bf16.xpose.msra.mxu1 %v546_v0  ;;  %1584 = vmatprep.mubr.msk.bf16.mxu1 %vm1741_vm1, %v1740_v14 }
 0x106   :  { %1594 = vmatprep.subr.bf16.mxu1 %v1740_v14  ;;  %1602 = vmatprep.mubr.msk.bf16.mxu0 %vm1741_vm1, %v1740_v14  ;;  %vm787_vm12 = vcmp.eq.s32.totalorder %v761_v63, 1 }
 0x107   :  { %1612 = vmatprep.subr.bf16.mxu0 %v1740_v14 }
 0x10c   :  { %1585 = vmatmul.mubr.msk.bf16.vlgmr.msra.gmra.mrb[16].mxu1 %vm60_vm0, %v301_v2  ;;  %v773_v2 = vrot.slane %v750_v43, %v1982_v21 }
 0x10d   :  { %1595 = vmatpush3.bf16.xpose.msra.mxu1 %v638_v3  ;;  %1596 = vmatprep.mubr.msk.bf16.mxu1 %vm1741_vm1, %v1740_v14 }
 0x10e   :  { %1606 = vmatprep.subr.bf16.mxu1 %v1740_v14  ;;  %vm790_vm13 = vcmp.eq.s32.totalorder %v773_v2, 1 }
 0x114   :  { %1597 = vmatmul.mubr.msk.bf16.vlgmr.msra.gmra.mrb[20].mxu1 %vm60_vm0, %v303_v5  ;;  %v697_v5 = vcombine.high %v695_v20, %v695_v20 }
 0x115   :  { %1607 = vmatpush3.bf16.msra.mxu1 %v947_v6  ;;  %1608 = vmatprep.mubr.msk.bf16.mxu1 %vm1741_vm1, %v1740_v14  ;;  %v752_v6 = vsel %vm744_vm10, 1, %v1743_v22 }
 0x116   :  { %1618 = vmatprep.subr.bf16.mxu1 %v1740_v14  ;;  %v725_v15 = vrot.slane %v697_v5, %v687_v12  ;;  %v781_v25 = vrot.slane %v752_v6, %v1982_v21 }
 0x118   :  { %vm743_vm14 = vcmp.gt.f32.partialorder %v725_v15, 0.0  ;;  %vm792_vm15 = vcmp.eq.s32.totalorder %v781_v25, 1 }
 0x1c6   :  { %v444_v40 = vpop.f32.mrb[4].mxu0 }
 0x1c7   :  { %v1990_v46 = vsel %vm788_vm7, %v444_v40, -1e+09  ;;  %v352_v47 = vpop.f32.mrb[4].mxu1  ;;  %v1568_v49 = vpop.f32.mrb[5].mxu0  ;;  %v751_v40 = vsel %vm743_vm14, 1, %v1743_v22 }
 0x1c8   :  { %v1992_v55 = vsel %vm786_vm8, %v352_v47, -1e+09  ;;  %v1556_v56 = vpop.f32.mrb[5].mxu1  ;;  %v808_v57 = vsel %vm146_vm9, %v1990_v46, -inf  ;;  %v447_v58 = vpop.f32.mrb[6].mxu0  ;;  %v729_v47 = vcombine.high %v725_v15, %v725_v15 }
 0x1c9   :  { %v355_v61 = vpop.f32.mrb[6].mxu1  ;;  %809 = vmax.xlane.f32.xlu1 %v808_v57  ;;  %v802_v62 = vsel %vm146_vm9, %v1992_v55, -inf  ;;  %v1569_v0 = vpop.f32.mrb[7].mxu0 }
 0x1ca   :  { %803 = vmax.xlane.f32.xlu0 %v802_v62  ;;  %v1557_v3 = vpop.f32.mrb[7].mxu1  ;;  %v777_v62 = vrot.slane %v751_v40, %v1982_v21  ;;  %vm745_vm3 = vcmp.gt.f32.partialorder %v729_v47, 0.0 }
 0x1cb   :  { %v753_v2 = vsel %vm745_vm3, 1, %v1743_v22 }
 0x1cc   :  { %vm791_vm4 = vcmp.eq.s32.totalorder %v777_v62, 1 }
 0x1ce   :  { %v536_v7 = vpop.f32.mrb[8].mxu0 }
 0x1cf   :  { %v398_v9 = vpop.f32.mrb[8].mxu1  ;;  %v1580_v11 = vpop.f32.mrb[9].mxu0  ;;  %v2002_v18 = vsel %vm790_vm13, %v536_v7, -1e+09 }
 0x1d0   :  { %v795_v16 = vsel %vm787_vm12, %v398_v9, -1e+09  ;;  %v1562_v17 = vpop.f32.mrb[9].mxu1  ;;  %v539_v19 = vpop.f32.mrb[10].mxu0  ;;  %v814_v37 = vsel %vm146_vm9, %v2002_v18, -inf  ;;  %v785_v9 = vrot.slane %v753_v2, %v1982_v21 }
 0x1d1   :  { %v401_v27 = vpop.f32.mrb[10].mxu1  ;;  %v805_v20 = vsel %vm146_vm9, %v795_v16, -inf  ;;  %v1581_v29 = vpop.f32.mrb[11].mxu0 }
 0x1d2   :  { %806 = vmax.xlane.f32.xlu0 %v805_v20  ;;  %v1563_v33 = vpop.f32.mrb[11].mxu1  ;;  %vm793_vm5 = vcmp.eq.s32.totalorder %v785_v9, 1 }
 0x1d6   :  { %815 = vmax.xlane.f32.xlu0 %v814_v37  ;;  %v628_v12 = vpop.f32.mrb[12].mxu0 }
 0x1d7   :  { %v490_v42 = vpop.f32.mrb[12].mxu1  ;;  %v800_v43 = vsel %vm792_vm15, %v628_v12, -1e+09  ;;  %v1592_v45 = vpop.f32.mrb[13].mxu0 }
 0x1d8   :  { %v797_v49 = vsel %vm789_vm2, %v490_v42, -1e+09  ;;  %v1574_v52 = vpop.f32.mrb[13].mxu1  ;;  %v820_v56 = vsel %vm146_vm9, %v800_v43, -inf  ;;  %v631_v57 = vpop.f32.mrb[14].mxu0 }
 0x1d9   :  { %v493_v58 = vpop.f32.mrb[14].mxu1  ;;  %v811_v61 = vsel %vm146_vm9, %v797_v49, -inf  ;;  %v1593_v63 = vpop.f32.mrb[15].mxu0 }
 0x1da   :  { %821 = vmax.xlane.f32.xlu0 %v820_v56  ;;  %812 = vmax.xlane.f32.xlu1 %v811_v61  ;;  %v1575_v0 = vpop.f32.mrb[15].mxu1 }
 0x1df   :  { %v582_v3 = vpop.f32.mrb[16].mxu1 }
 0x1e0   :  { %v799_v5 = vsel %vm791_vm4, %v582_v3, -1e+09  ;;  %v1586_v6 = vpop.f32.mrb[17].mxu1 }
 0x1e1   :  { %v585_v7 = vpop.f32.mrb[18].mxu1  ;;  %v817_v8 = vsel %vm146_vm9, %v799_v5, -inf }
 0x1e2   :  { %818 = vmax.xlane.f32.xlu1 %v817_v8  ;;  %v1587_v11 = vpop.f32.mrb[19].mxu1 }
 0x1e7   :  { %v674_v15 = vpop.f32.mrb[20].mxu1 }
 0x1e8   :  { %v801_v17 = vsel %vm793_vm5, %v674_v15, -1e+09  ;;  %v1598_v19 = vpop.f32.mrb[21].mxu1 }
 0x1e9   :  { %v677_v25 = vpop.f32.mrb[22].mxu1  ;;  %v823_v27 = vsel %vm146_vm9, %v801_v17, -inf }
 0x1ea   :  { %824 = vmax.xlane.f32.xlu1 %v823_v27  ;;  %v1599_v20 = vpop.f32.mrb[23].mxu1  ;;  %v147_v27 = vsel %vm146_vm9, %v1976_v13, 0.0 }
 0x256   :  { %v810_v22 = vpop.xlane.xlu1 %809 }
 0x257   :  { %v828_v29 = vsub.f32 %v1990_v46, %v810_v22  ;;  %v804_v30 = vpop.xlane.xlu0 %803 }
 0x258   :  { %v826_v33 = vsub.f32 %v1992_v55, %v804_v30 }
 0x259   :  { %v838_v37 = vmul.f32 1.442695, %v828_v29 }
 0x25a   :  { %v834_v12 = vmul.f32 1.442695, %v826_v33  ;;  %v160_v33 = vsub.s32 1, %v1970_v10 }
 0x25c   :  { %1690 = vpow2.f32 %v834_v12  ;;  %v188_v12 = vsub.s32 5, %v1970_v10 }
 0x25d   :  { %1692 = vpow2.f32 %v838_v37  ;;  %v161_v37 = vrot.slane %v1976_v13, %v160_v33 }
 0x25f   :  { %v807_v40 = vpop.xlane.xlu0 %806 }
 0x260   :  { %v827_v42 = vsub.f32 %v795_v16, %v807_v40  ;;  %v189_v40 = vrot.slane %v1976_v13, %v188_v12 }
 0x262   :  { %v836_v45 = vmul.f32 1.442695, %v827_v42  ;;  %v202_v42 = vsub.s32 7, %v1970_v10 }
 0x263   :  { %v816_v47 = vpop.xlane.xlu0 %815 }
 0x264   :  { %1694 = vpow2.f32 %v836_v45  ;;  %v830_v52 = vsub.f32 %v2002_v18, %v816_v47  ;;  %v154_v45 = vrot.slane %v1976_v13, %v1982_v21  ;;  %v167_v47 = vsub.s32 2, %v1970_v10 }
 0x266   :  { %v2020_v56 = vpop.eup %1690  ;;  %v842_v57 = vmul.f32 1.442695, %v830_v52  ;;  %v203_v52 = vrot.slane %v1976_v13, %v202_v42  ;;  %v1673_v42 = vld [vmem:[%s2228_s4 + $0x8] sm:$0xff]  }
 0x267   :  { %v822_v58 = vpop.xlane.xlu0 %821  ;;  %v813_v61 = vpop.xlane.xlu1 %812  ;;  %v850_v46 = vsel %vm146_vm9, %v2020_v56, 0.0 }
 0x268   :  { %v2024_v55 = vpop.eup %1692  ;;  %1696 = vpow2.f32 %v842_v57  ;;  %v832_v62 = vsub.f32 %v800_v43, %v822_v58  ;;  %v829_v63 = vsub.f32 %v797_v49, %v813_v61  ;;  %851 = vadd.xlane.f32.xlu0 %v850_v46  ;;  %v168_v57 = vrot.slane %v1976_v13, %v167_v47 }
 0x269   :  { %v856_v2 = vsel %vm146_vm9, %v2024_v55, 0.0  ;;  %v174_v58 = vsub.s32 3, %v1970_v10  ;;  %v181_v46 = vsub.s32 4, %v1970_v10 }
 0x26a   :  { %v846_v16 = vmul.f32 1.442695, %v832_v62  ;;  %v840_v0 = vmul.f32 1.442695, %v829_v63  ;;  %v195_v63 = vsub.s32 6, %v1970_v10 }
 0x26b   :  { %v175_v61 = vrot.slane %v1976_v13, %v174_v58  ;;  %v182_v62 = vrot.slane %v1976_v13, %v181_v46 }
 0x26c   :  { %1698 = vpow2.f32 %v846_v16  ;;  %857 = vadd.xlane.f32.xlu0 %v856_v2  ;;  %v196_v16 = vrot.slane %v1976_v13, %v195_v63 }
 0x26d   :  { %1700 = vpow2.f32 %v840_v0 }
 0x26e   :  { %v2028_v18 = vpop.eup %1694 }
 0x26f   :  { %v819_v3 = vpop.xlane.xlu1 %818  ;;  %v853_v6 = vsel %vm146_vm9, %v2028_v18, 0.0 }
 0x270   :  { %v831_v7 = vsub.f32 %v799_v5, %v819_v3  ;;  %854 = vadd.xlane.f32.xlu1 %v853_v6 }
 0x272   :  { %v2032_v8 = vpop.eup %1696  ;;  %v844_v43 = vmul.f32 1.442695, %v831_v7 }
 0x273   :  { %v862_v49 = vsel %vm146_vm9, %v2032_v8, 0.0 }
 0x274   :  { %1702 = vpow2.f32 %v844_v43  ;;  %863 = vadd.xlane.f32.xlu0 %v862_v49 }
 0x276   :  { %v2036_v9 = vpop.eup %1698 }
 0x277   :  { %v2038_v11 = vpop.eup %1700  ;;  %v825_v15 = vpop.xlane.xlu1 %824  ;;  %v868_v19 = vsel %vm146_vm9, %v2036_v9, 0.0 }
 0x278   :  { %v833_v25 = vsub.f32 %v801_v17, %v825_v15  ;;  %869 = vadd.xlane.f32.xlu0 %v868_v19  ;;  %v859_v5 = vsel %vm146_vm9, %v2038_v11, 0.0 }
 0x279   :  { %860 = vadd.xlane.f32.xlu1 %v859_v5 }
 0x27a   :  { %v848_v20 = vmul.f32 1.442695, %v833_v25 }
 0x27c   :  { %1704 = vpow2.f32 %v848_v20  ;;  %148 = vadd.xlane.f32.xlu0 %v147_v27 }
 0x27e   :  { %v2046_v22 = vpop.eup %1702 }
 0x27f   :  { %v865_v29 = vsel %vm146_vm9, %v2046_v22, 0.0 }
 0x280   :  { %866 = vadd.xlane.f32.xlu1 %v865_v29 }
 0x286   :  { %v2050_v30 = vpop.eup %1704 }
 0x287   :  { %v871_v17 = vsel %vm146_vm9, %v2050_v30, 0.0 }
 0x288   :  { %872 = vadd.xlane.f32.xlu1 %v871_v17 }
 0x292   :  { %163 = vbcast.lane.b32.xlu0 %v161_v37, 256 }
 0x296   :  { %191 = vbcast.lane.b32.xlu0 %v189_v40, 256 }
 0x299   :  { %156 = vbcast.lane.b32.xlu1 %v154_v45, 256 }
 0x29a   :  { %205 = vbcast.lane.b32.xlu0 %v203_v52, 256 }
 0x29d   :  { %170 = vbcast.lane.b32.xlu1 %v168_v57, 256 }
 0x2a1   :  { %177 = vbcast.lane.b32.xlu1 %v175_v61, 256 }
 0x2a5   :  { %184 = vbcast.lane.b32.xlu1 %v182_v62, 256 }
 0x2a9   :  { %198 = vbcast.lane.b32.xlu1 %v196_v16, 256 }
 0x2f5   :  { %v852_v0 = vpop.xlane.xlu0 %851 }
 0x2f6   :  { %1706 = vrcp.f32 %v852_v0 }
 0x2f9   :  { %v858_v2 = vpop.xlane.xlu0 %857 }
 0x2fa   :  { %1708 = vrcp.f32 %v858_v2 }
 0x2fd   :  { %v855_v3 = vpop.xlane.xlu1 %854 }
 0x2fe   :  { %1710 = vrcp.f32 %v855_v3 }
 0x300   :  { %v1707_v6 = vpop.eup %1706 }
 0x301   :  { %v882_v7 = vmul.f32 %v1707_v6, %v2020_v56  ;;  %v864_v43 = vpop.xlane.xlu0 %863 }
 0x302   :  { %1712 = vrcp.f32 %v864_v43 }
 0x303   :  { %v890_v49 = vpack.c.bf16 %v882_v7, %v882_v7 }
 0x304   :  { %v1709_v15 = vpop.eup %1708 }
 0x305   :  { %1603 = vmatmul.mubr.msk.bf16.vlgmr.msra.gmra.mrb[16].mxu0 %vm146_vm9, %v890_v49  ;;  %v884_v13 = vmul.f32 %v1709_v15, %v2024_v55  ;;  %v870_v19 = vpop.xlane.xlu0 %869 }
 0x306   :  { %1613 = vmatpush3.bf16.msra.mxu0 %v1836_v31  ;;  %v861_v10 = vpop.xlane.xlu1 %860  ;;  %1614 = vmatprep.mubr.msk.bf16.mxu0 %vm1741_vm1, %v1740_v14 }
 0x307   :  { %1714 = vrcp.f32 %v861_v10  ;;  %1624 = vmatprep.subr.bf16.mxu0 %v1740_v14  ;;  %v892_v5 = vpack.c.bf16 %v884_v13, %v884_v13 }
 0x308   :  { %v1711_v25 = vpop.eup %1710  ;;  %1716 = vrcp.f32 %v870_v19 }
 0x309   :  { %v883_v56 = vmul.f32 %v1711_v25, %v2028_v18 }
 0x30b   :  { %v891_v27 = vpack.c.bf16 %v883_v56, %v883_v56 }
 0x30c   :  { %v1713_v20 = vpop.eup %1712 }
 0x30d   :  { %1615 = vmatmul.mubr.msk.bf16.vlgmr.msra.gmra.mrb[20].mxu0 %vm146_vm9, %v892_v5  ;;  %1609 = vmatmul.mubr.msk.bf16.vlgmr.msra.gmra.mrb[24].mxu1 %vm146_vm9, %v891_v27  ;;  %v867_v31 = vpop.xlane.xlu1 %866  ;;  %v886_v55 = vmul.f32 %v1713_v20, %v2032_v8 }
 0x30e   :  { %1625 = vmatpush3.bf16.msra.mxu0 %v1880_v48  ;;  %1619 = vmatpush3.bf16.msra.mxu1 %v1857_v38  ;;  %1718 = vrcp.f32 %v867_v31 }
 0x30f   :  { %1620 = vmatprep.mubr.msk.bf16.mxu1 %vm1741_vm1, %v1740_v14  ;;  %1626 = vmatprep.mubr.msk.bf16.mxu0 %vm1741_vm1, %v1740_v14  ;;  %v894_v17 = vpack.c.bf16 %v886_v55, %v886_v55 }
 0x310   :  { %1630 = vmatprep.subr.bf16.mxu1 %v1740_v14  ;;  %1636 = vmatprep.subr.bf16.mxu0 %v1740_v14 }
 0x311   :  { %v1715_v18 = vpop.eup %1714 }
 0x312   :  { %v885_v29 = vmul.f32 %v1715_v18, %v2038_v11  ;;  %v1717_v48 = vpop.eup %1716 }
 0x313   :  { %v888_v8 = vmul.f32 %v1717_v48, %v2036_v9 }
 0x314   :  { %v893_v33 = vpack.c.bf16 %v885_v29, %v885_v29 }
 0x315   :  { %1627 = vmatmul.mubr.msk.bf16.vlgmr.msra.gmra.mrb[24].mxu0 %vm146_vm9, %v894_v17  ;;  %v873_v38 = vpop.xlane.xlu1 %872 }
 0x316   :  { %1637 = vmatpush3.bf16.msra.mxu0 %v1871_v44  ;;  %1621 = vmatmul.mubr.msk.bf16.vlgmr.msra.gmra.mrb[28].mxu1 %vm146_vm9, %v893_v33  ;;  %1720 = vrcp.f32 %v873_v38  ;;  %v896_v44 = vpack.c.bf16 %v888_v8, %v888_v8 }
 0x317   :  { %1631 = vmatpush3.bf16.msra.mxu1 %v1887_v51  ;;  %1632 = vmatprep.mubr.msk.bf16.mxu1 %vm1741_vm1, %v1740_v14 }
 0x318   :  { %v1719_v37 = vpop.eup %1718  ;;  %1638 = vmatprep.mubr.msk.bf16.mxu0 %vm1741_vm1, %v1740_v14  ;;  %1642 = vmatprep.subr.bf16.mxu1 %v1740_v14 }
 0x319   :  { %v887_v11 = vmul.f32 %v1719_v37, %v2046_v22  ;;  %v1672_v22 = vld [vmem:[%s2228_s4] sm:$0xff]  }
 0x31a   :  { %1648 = vmatprep.subr.bf16.mxu0 %v1672_v22 }
 0x31b   :  { %v895_v12 = vpack.c.bf16 %v887_v11, %v887_v11 }
 0x31d   :  { %1639 = vmatmul.mubr.msk.bf16.vlgmr.msra.gmra.mrb[28].mxu0 %vm146_vm9, %v896_v44 }
 0x31e   :  { %1633 = vmatmul.mubr.msk.bf16.vlgmr.msra.gmra.mrb[32].mxu1 %vm146_vm9, %v895_v12  ;;  %1649 = vmatpush3.bf16.msra.mxu0 %v1672_v22 }
 0x31f   :  { %1643 = vmatpush3.bf16.msra.mxu1 %v1884_v50  ;;  %1644 = vmatprep.mubr.msk.bf16.mxu1 %vm1741_vm1, %v1740_v14  ;;  %v149_v50 = vpop.xlane.xlu0 %148  ;;  %v157_v14 = vpop.permute.xlu1 %156 }
 0x320   :  { %v1721_v51 = vpop.eup %1720  ;;  %1650 = vmatprep.subr.bf16.mxu0 %v1673_v42  ;;  %v150_v2 = vmax.f32 %v149_v50, 1.0 }
 0x321   :  { %v889_v9 = vmul.f32 %v1721_v51, %v2050_v30  ;;  %v207_v30 = vmul.f32 %v1822_v24, %v157_v14 }
 0x322   :  { %1651 = vmatpush3.bf16.msra.mxu0 %v1673_v42  ;;  %1722 = vrcp.f32 %v150_v2 }
 0x323   :  { %v897_v40 = vpack.c.bf16 %v889_v9, %v889_v9  ;;  %v164_v45 = vpop.permute.xlu0 %163  ;;  %v171_v47 = vpop.permute.xlu1 %170  ;;  %v215_v57 = vsel %vm60_vm0, %v207_v30, 0.0 }
 0x324   :  { %v208_v52 = vmul.f32 %v1830_v28, %v164_v45  ;;  %v216_v61 = vrot.slane %v215_v57, 4  ;;  %v209_v62 = vmul.f32 %v1820_v23, %v171_v47 }
 0x326   :  { %1645 = vmatmul.mubr.msk.bf16.vlgmr.msra.gmra.mrb[36].mxu1 %vm146_vm9, %v897_v40  ;;  %v222_v58 = vsel %vm60_vm0, %v208_v52, 0.0  ;;  %v217_v16 = vadd.f32 %v216_v61, %v215_v57  ;;  %v229_v3 = vsel %vm60_vm0, %v209_v62, 0.0 }
 0x327   :  { %v178_v46 = vpop.permute.xlu1 %177  ;;  %v223_v63 = vrot.slane %v222_v58, 4  ;;  %v230_v43 = vrot.slane %v229_v3, 4  ;;  %v192_v49 = vpop.permute.xlu0 %191 }
 0x328   :  { %v210_v0 = vmul.f32 %v1826_v26, %v178_v46  ;;  %v218_v7 = vrot.slane %v217_v16, 2  ;;  %v212_v19 = vmul.f32 %v1864_v41, %v192_v49 }
 0x329   :  { %v224_v6 = vadd.f32 %v223_v63, %v222_v58  ;;  %v231_v25 = vadd.f32 %v230_v43, %v229_v3 }
 0x32a   :  { %v236_v28 = vsel %vm60_vm0, %v210_v0, 0.0  ;;  %v219_v13 = vadd.f32 %v218_v7, %v217_v16  ;;  %v250_v31 = vsel %vm60_vm0, %v212_v19, 0.0 }
 0x32b   :  { %v185_v24 = vpop.permute.xlu1 %184  ;;  %v225_v10 = vrot.slane %v224_v6, 2  ;;  %v237_v23 = vrot.slane %v236_v28, 4  ;;  %v232_v55 = vrot.slane %v231_v25, 2  ;;  %v206_v29 = vpop.permute.xlu0 %205  ;;  %v251_v33 = vrot.slane %v250_v31, 4 }
 0x32c   :  { %v211_v15 = vmul.f32 %v1846_v35, %v185_v24  ;;  %v220_v27 = vrot.slane %v219_v13, 1  ;;  %v2127_v48 = vpop.eup %1722  ;;  %v214_v8 = vmul.f32 %v1859_v39, %v206_v29 }
 0x32d   :  { %v226_v56 = vadd.f32 %v225_v10, %v224_v6  ;;  %v238_v20 = vadd.f32 %v237_v23, %v236_v28  ;;  %v233_v37 = vadd.f32 %v232_v55, %v231_v25  ;;  %v273_v40 = vrot.slane %v2127_v48, 1 }
 0x32e   :  { %v243_v26 = vsel %vm60_vm0, %v211_v15, 0.0  ;;  %v221_v38 = vadd.f32 %v220_v27, %v219_v13  ;;  %v252_v22 = vadd.f32 %v251_v33, %v250_v31  ;;  %v264_v14 = vsel %vm60_vm0, %v214_v8, 0.0 }
 0x32f   :  { %v199_v5 = vpop.permute.xlu1 %198  ;;  %v244_v18 = vrot.slane %v243_v26, 4  ;;  %v227_v35 = vrot.slane %v226_v56, 1  ;;  %v239_v41 = vrot.slane %v238_v20, 2  ;;  %v234_v45 = vrot.slane %v233_v37, 1 }
 0x330   :  { %v213_v17 = vmul.f32 %v1838_v32, %v199_v5  ;;  %v288_v32 = vmul.f32 %v2127_v48, %v221_v38  ;;  %v253_v58 = vrot.slane %v252_v22, 2  ;;  %v265_v61 = vrot.slane %v264_v14, 4 }
 0x331   :  { %v245_v11 = vadd.f32 %v244_v18, %v243_v26  ;;  %v228_v51 = vadd.f32 %v227_v35, %v226_v56  ;;  %v240_v42 = vadd.f32 %v239_v41, %v238_v20  ;;  %v235_v63 = vadd.f32 %v234_v45, %v233_v37 }
 0x332   :  { %v257_v12 = vsel %vm60_vm0, %v213_v17, 0.0  ;;  %v1270_v62 = vrot.slane %v288_v32, %v1982_v21  ;;  %v274_v2 = vrot.slane %v2127_v48, 2  ;;  %v254_v49 = vadd.f32 %v253_v58, %v252_v22 }
 0x333   :  { %v246_v30 = vrot.slane %v245_v11, 2  ;;  %v258_v47 = vrot.slane %v257_v12, 4  ;;  %v289_v57 = vmul.f32 %v273_v40, %v228_v51  ;;  %v241_v46 = vrot.slane %v240_v42, 1 }
 0x334   :  { %v266_v15 = vadd.f32 %v265_v61, %v264_v14  ;;  %v275_v19 = vrot.slane %v2127_v48, 3  ;;  %v290_v5 = vmul.f32 %v274_v2, %v235_v63  ;;  %v255_v31 = vrot.slane %v254_v49, 1 }
 0x335   :  { %v247_v16 = vadd.f32 %v246_v30, %v245_v11  ;;  %v259_v0 = vadd.f32 %v258_v47, %v257_v12  ;;  %v1274_v43 = vrot.slane %v289_v57, %v1982_v21  ;;  %v242_v10 = vadd.f32 %v241_v46, %v240_v42 }
 0x336   :  { %v267_v55 = vrot.slane %v266_v15, 2  ;;  %v1278_v35 = vrot.slane %v290_v5, %v1982_v21  ;;  %v276_v33 = vrot.slane %v2127_v48, 4  ;;  %v277_v11 = vrot.slane %v2127_v48, 5 }
 0x337   :  { %v248_v25 = vrot.slane %v247_v16, 1  ;;  %v260_v26 = vrot.slane %v259_v0, 2  ;;  %v291_v18 = vmul.f32 %v275_v19, %v242_v10  ;;  %v256_v12 = vadd.f32 %v255_v31, %v254_v49 }
 0x338   :  { %v278_v61 = vrot.slane %v2127_v48, 6 }
 0x339   :  { %v249_v29 = vadd.f32 %v248_v25, %v247_v16  ;;  %v261_v17 = vadd.f32 %v260_v26, %v259_v0 }
 0x33b   :  { %v262_v22 = vrot.slane %v261_v17, 1  ;;  %v292_v42 = vmul.f32 %v276_v33, %v249_v29 }
 0x33d   :  { %v263_v58 = vadd.f32 %v262_v22, %v261_v17 }
 0x3d8   :  { %v938_v44 = vpop.f32.mrb[16].mxu0 }
 0x3d9   :  { %v1604_v9 = vpop.f32.mrb[17].mxu0  ;;  %v1259_v52 = vadd.f32 %v938_v44, %v1852_v36  ;;  %v268_v44 = vadd.f32 %v267_v55, %v266_v15 }
 0x3da   :  { %v941_v50 = vpop.f32.mrb[18].mxu0 }
 0x3db   :  { %v1605_v39 = vpop.f32.mrb[19].mxu0  ;;  %v1299_v3 = vadd.f32 %v1270_v62, %v1259_v52  ;;  %v293_v52 = vmul.f32 %v277_v11, %v256_v12 }
 0x3dc   :  { %v269_v39 = vrot.slane %v268_v44, 1 }
 0x3dd   :  { %1724 = vtanh.f32 %v1299_v3 }
 0x3de   :  { %v270_v2 = vadd.f32 %v269_v39, %v268_v44 }
 0x3e0   :  { %v983_v6 = vpop.f32.mrb[24].mxu1  ;;  %v1028_v24 = vpop.f32.mrb[20].mxu0 }
 0x3e1   :  { %v1260_v7 = vadd.f32 %v983_v6, %v1902_v54  ;;  %v1610_v28 = vpop.f32.mrb[25].mxu1  ;;  %v1616_v36 = vpop.f32.mrb[21].mxu0  ;;  %v1261_v54 = vadd.f32 %v1028_v24, %v1844_v34  ;;  %v1282_v34 = vrot.slane %v291_v18, %v1982_v21 }
 0x3e2   :  { %v986_v13 = vpop.f32.mrb[26].mxu1  ;;  %v1031_v23 = vpop.f32.mrb[22].mxu0 }
 0x3e3   :  { %v1300_v56 = vadd.f32 %v1274_v43, %v1260_v7  ;;  %v1611_v27 = vpop.f32.mrb[27].mxu1  ;;  %v1617_v20 = vpop.f32.mrb[23].mxu0  ;;  %v1301_v41 = vadd.f32 %v1278_v35, %v1261_v54  ;;  %v279_v7 = vrot.slane %v2127_v48, 7  ;;  %v294_v43 = vmul.f32 %v278_v61, %v263_v58 }
 0x3e5   :  { %1726 = vtanh.f32 %v1300_v56  ;;  %v295_v13 = vmul.f32 %v279_v7, %v270_v2 }
 0x3e6   :  { %1728 = vtanh.f32 %v1301_v41 }
 0x3e7   :  { %v1725_v47 = vpop.eup %1724  ;;  %v1298_v48 = vrot.slane %v295_v13, %v1982_v21 }
 0x3e8   :  { %v1118_v38 = vpop.f32.mrb[24].mxu0 }
 0x3e9   :  { %v1073_v8 = vpop.f32.mrb[28].mxu1  ;;  %v1628_v37 = vpop.f32.mrb[25].mxu0  ;;  %v1263_v30 = vadd.f32 %v1118_v38, %v1895_v53  ;;  %v1290_v53 = vrot.slane %v293_v52, %v1982_v21 }
 0x3ea   :  { %v1262_v51 = vadd.f32 %v1073_v8, %v1926_v60  ;;  %v1622_v9 = vpop.f32.mrb[29].mxu1  ;;  %v1121_v40 = vpop.f32.mrb[26].mxu0  ;;  %v1286_v60 = vrot.slane %v292_v42, %v1982_v21 }
 0x3eb   :  { %v1076_v32 = vpop.f32.mrb[30].mxu1  ;;  %v1629_v50 = vpop.f32.mrb[27].mxu0 }
 0x3ec   :  { %v1302_v14 = vadd.f32 %v1282_v34, %v1262_v51  ;;  %v1623_v45 = vpop.f32.mrb[31].mxu1  ;;  %v1303_v63 = vadd.f32 %v1286_v60, %v1263_v30 }
 0x3ee   :  { %1730 = vtanh.f32 %v1302_v14 }
 0x3ef   :  { %v1727_v57 = vpop.eup %1726  ;;  %1732 = vtanh.f32 %v1303_v63 }
 0x3f0   :  { %v1208_v46 = vpop.f32.mrb[28].mxu0  ;;  %v1315_v62 = vpack.c.bf16 %v1727_v57, %v1725_v47  ;;  %v1729_v23 = vpop.eup %1728 }
 0x3f1   :  { %v1163_v16 = vpop.f32.mrb[32].mxu1  ;;  %v1640_v0 = vpop.f32.mrb[29].mxu0  ;;  %v1265_v10 = vadd.f32 %v1208_v46, %v1919_v59 }
 0x3f2   :  { %v1264_v3 = vadd.f32 %v1163_v16, %v1945_v1  ;;  %v1634_v6 = vpop.f32.mrb[33].mxu1  ;;  %v1211_v24 = vpop.f32.mrb[30].mxu0  ;;  %1652 = vmatprep.mubr.msk.bf16.mxu0 %vm60_vm0, %v1315_v62  ;;  %v1294_v1 = vrot.slane %v294_v43, %v1982_v21 }
 0x3f3   :  { %v1166_v28 = vpop.f32.mrb[34].mxu1  ;;  %v1641_v36 = vpop.f32.mrb[31].mxu0 }
 0x3f4   :  { %v1304_v49 = vadd.f32 %v1290_v53, %v1264_v3  ;;  %v1635_v15 = vpop.f32.mrb[35].mxu1  ;;  %v1305_v25 = vadd.f32 %v1294_v1, %v1265_v10 }
 0x3f6   :  { %1734 = vtanh.f32 %v1304_v49 }
 0x3f7   :  { %1736 = vtanh.f32 %v1305_v25 }
 0x3f8   :  { %v1731_v19 = vpop.eup %1730 }
 0x3f9   :  { %v1253_v26 = vpop.f32.mrb[36].mxu1  ;;  %v1316_v56 = vpack.c.bf16 %v1731_v19, %v1729_v23  ;;  %v1733_v59 = vpop.eup %1732 }
 0x3fa   :  { %v1266_v5 = vadd.f32 %v1253_v26, %v1960_v4  ;;  %v1646_v27 = vpop.f32.mrb[37].mxu1 }
 0x3fb   :  { %v1256_v20 = vpop.f32.mrb[38].mxu1  ;;  %1653 = vmatmul.mubr.msk.bf16.vlgmr.msra.gmra.mrb[32].mxu0 %vm60_vm0, %v1316_v56 }
 0x3fc   :  { %v1306_v54 = vadd.f32 %v1298_v48, %v1266_v5  ;;  %v1647_v31 = vpop.f32.mrb[39].mxu1 }
 0x3fe   :  { %1738 = vtanh.f32 %v1306_v54 }
 0x400   :  { %v1735_v55 = vpop.eup %1734 }
 0x401   :  { %v1317_v18 = vpack.c.bf16 %v1735_v55, %v1733_v59  ;;  %v1737_v29 = vpop.eup %1736 }
 0x403   :  { %1656 = vmatprep.mubr.msk.bf16.mxu0 %vm60_vm0, %v1317_v18 }
 0x408   :  { %v1739_v17 = vpop.eup %1738 }
 0x409   :  { %v1318_v35 = vpack.c.bf16 %v1739_v17, %v1737_v29 }
 0x40b   :  { %1657 = vmatmul.mubr.msk.bf16.gmra.mrb[36].mxu0 %vm60_vm0, %v1318_v35 }
 0x4ce   :  { %v1654_v4 = vpop.f32.mrb[32].mxu0 }
 0x4cf   :  { %1414 = vst.msk [vmem:[%s2229_s5 + $0x10] sm:$0xff] %vm60_vm0, %v1654_v4  ;;  %1432 = vrot.lane.b32.xlu1 %v1654_v4, %s1744_s11  ;;  %v1381_v21 = vpop.f32.mrb[33].mxu0 }
 0x4d0   :  { %1412 = vst.msk [vmem:[%s2229_s5] sm:$0xff] %vm60_vm0, %v1381_v21  ;;  %v1655_v33 = vpop.f32.mrb[34].mxu0 }
 0x4d1   :  { %1415 = vst.msk [vmem:[%s2229_s5 + $0x18] sm:$0xff] %vm60_vm0, %v1655_v33  ;;  %1434 = vrot.lane.b32.xlu0 %v1655_v33, %s1744_s11  ;;  %v1384_v38 = vpop.f32.mrb[35].mxu0 }
 0x4d2   :  { %1413 = vst.msk [vmem:[%s2229_s5 + $0x8] sm:$0xff] %vm60_vm0, %v1384_v38 }
 0x4d3   :  { %1428 = vrot.lane.b32.xlu1 %v1381_v21, %s1744_s11 }
 0x4d5   :  { %1430 = vrot.lane.b32.xlu0 %v1384_v38, %s1744_s11 }
 0x4de   :  { %v1658_v41 = vpop.f32.mrb[36].mxu0 }
 0x4df   :  { %1418 = vst.msk [vmem:[%s2229_s5 + $0x30] sm:$0xff] %vm60_vm0, %v1658_v41  ;;  %v1397_v8 = vpop.f32.mrb[37].mxu0 }
 0x4e0   :  { %1416 = vst.msk [vmem:[%s2229_s5 + $0x20] sm:$0xff] %vm60_vm0, %v1397_v8  ;;  %1436 = vrot.lane.b32.xlu1 %v1397_v8, %s1744_s11  ;;  %v1659_v37 = vpop.f32.mrb[38].mxu0 }
 0x4e1   :  { %1419 = vst.msk [vmem:[%s2229_s5 + $0x38] sm:$0xff] %vm60_vm0, %v1659_v37  ;;  %v1400_v11 = vpop.f32.mrb[39].mxu0 }
 0x4e2   :  { %1417 = vst.msk [vmem:[%s2229_s5 + $0x28] sm:$0xff] %vm60_vm0, %v1400_v11  ;;  %1438 = vrot.lane.b32.xlu0 %v1400_v11, %s1744_s11 }
 0x4e4   :  { %1440 = vrot.lane.b32.xlu1 %v1658_v41, %s1744_s11 }
 0x4e6   :  { %1442 = vrot.lane.b32.xlu0 %v1659_v37, %s1744_s11 }
 0x541   :  { %v1433_v12 = vpop.permute.xlu1 %1432 }
 0x542   :  { %1454 = vst.msk [vmem:[%s2230_s6 + $0x10] sm:$0xff] %vm60_vm0, %v1433_v12 }
 0x543   :  { %v1435_v44 = vpop.permute.xlu0 %1434 }
 0x544   :  { %1455 = vst.msk [vmem:[%s2230_s6 + $0x18] sm:$0xff] %vm60_vm0, %v1435_v44 }
 0x545   :  { %v1429_v51 = vpop.permute.xlu1 %1428 }
 0x546   :  { %1452 = vst.msk [vmem:[%s2230_s6] sm:$0xff] %vm60_vm0, %v1429_v51 }
 0x547   :  { %v1431_v34 = vpop.permute.xlu0 %1430 }
 0x548   :  { %1453 = vst.msk [vmem:[%s2230_s6 + $0x8] sm:$0xff] %vm60_vm0, %v1431_v34 }
 0x552   :  { %v1437_v9 = vpop.permute.xlu1 %1436 }
 0x553   :  { %1456 = vst.msk [vmem:[%s2230_s6 + $0x20] sm:$0xff] %vm60_vm0, %v1437_v9 }
 0x554   :  { %v1439_v40 = vpop.permute.xlu0 %1438 }
 0x555   :  { %1457 = vst.msk [vmem:[%s2230_s6 + $0x28] sm:$0xff] %vm60_vm0, %v1439_v40 }
 0x556   :  { %v1441_v22 = vpop.permute.xlu1 %1440 }
 0x557   :  { %1458 = vst.msk [vmem:[%s2230_s6 + $0x30] sm:$0xff] %vm60_vm0, %v1441_v22 }
 0x558   :  { %v1443_v42 = vpop.permute.xlu0 %1442 }
 0x559   :  { %1459 = vst.msk [vmem:[%s2230_s6 + $0x38] sm:$0xff] %vm60_vm0, %v1443_v42 }

// kernel: train_model_forward.3
= control target key start
LH: loop header
LB: loop body
LE: loop exit
PB: predicated region body
PF: predicated region fallthrough
CT: control target
= control target key end

     0   :  { %vm139_vm0 = vcmask 261120   ;;  %v3905_v14 = vmov 0.0   ;;  %vm3906_vm1 = vmmov 0   ;;  %vm980_vm2 = vcmask 1043456   ;;  %s5246_s7 = inlined_call_operand.vmem [shape: bf16[32,32], index: 7, kind: input, shape index: {}]   ;;  %s5247_s0 = inlined_call_operand.vmem [shape: f32[8,8,32], index: 0, kind: input, shape index: {}]   ;;  %s5248_s2 = inlined_call_operand.vmem [shape: f32[8,8,32], index: 2, kind: input, shape index: {}]   ;;  %s5249_s1 = inlined_call_operand.vmem [shape: f32[8,8], index: 1, kind: input, shape index: {}]   ;;  %s5250_s3 = inlined_call_operand.vmem [shape: f32[8,32,32], index: 3, kind: input, shape index: {}]   ;;  %s5251_s5 = inlined_call_operand.vmem [shape: f32[8,32], index: 5, kind: input, shape index: {}]   ;;  %s5252_s4 = inlined_call_operand.vmem [shape: f32[8,32,32], index: 4, kind: input, shape index: {}]   ;;  %s5253_s8 = inlined_call_operand.vmem [shape: bf16[32,32], index: 8, kind: input, shape index: {}]   ;;  %s5254_s6 = inlined_call_operand.vmem [shape: s32[8,8], index: 6, kind: input, shape index: {}]   ;;  %s5255_s9 = inlined_call_operand.vmem [shape: f32[8,8,32], index: 9, kind: output, shape index: {0}]   ;;  %s5256_s10 = inlined_call_operand.vmem [shape: s32[8,8], index: 10, kind: output, shape index: {1}]   ;;  %s5257_s11 = inlined_call_operand.vmem [shape: f32[8,128], index: 11, kind: output, shape index: {2}]  }
   0x1   :  { %v3744_v0 = vld [vmem:[%s5246_s7] sm:$0xff]   ;;  %v3745_v1 = vld [vmem:[%s5246_s7 + $0x8] sm:$0xff]   ;;  %v38_v4 = vld [vmem:[%s5247_s0 + $0x10] sm:$0xff]  ;;  %vm225_vm9 = vcmask 64512  }
   0x2   :  { %3466 = vmatprep.subr.bf16.mxu0 %v3744_v0  ;;  %3714 = vmatprep.subr.bf16.mxu1 %v3744_v0  ;;  %v36_v2 = vld [vmem:[%s5247_s0] sm:$0xff]  ;;  %v37_v3 = vld [vmem:[%s5247_s0 + $0x8] sm:$0xff]  ;;  %v39_v6 = vld [vmem:[%s5247_s0 + $0x18] sm:$0xff] }
   0x3   :  { %3467 = vmatpush3.bf16.msra.mxu0 %v3744_v0  ;;  %v123_v5 = vpack.c.bf16 %v37_v3, %v36_v2  ;;  %3716 = vmatpush3.bf16.msra.mxu1 %v3744_v0  ;;  %v40_v7 = vld [vmem:[%s5247_s0 + $0x20] sm:$0xff]  ;;  %v41_v8 = vld [vmem:[%s5247_s0 + $0x28] sm:$0xff]  ;;  %v42_v10 = vld [vmem:[%s5247_s0 + $0x30] sm:$0xff]  ;;  %v124_v12 = vpack.c.bf16 %v39_v6, %v38_v4 }
   0x4   :  { %3468 = vmatprep.subr.bf16.mxu0 %v3745_v1  ;;  %3715 = vmatprep.subr.bf16.mxu1 %v3745_v1  ;;  %v125_v9 = vpack.c.bf16 %v41_v8, %v40_v7  ;;  %v43_v11 = vld [vmem:[%s5247_s0 + $0x38] sm:$0xff]  ;;  %v47_v34 = vld [vmem:[%s5248_s2 + $0x10] sm:$0xff]  ;;  %v45_v36 = vld [vmem:[%s5248_s2] sm:$0xff]  ;;  %v3907_v7 = vmov 0   ;;  %v230_v8 = vlaneseq }
   0x5   :  { %3470 = vmatprep.mubr.msk.bf16.mxu0 %vm139_vm0, %v123_v5  ;;  %v126_v13 = vpack.c.bf16 %v43_v11, %v42_v10  ;;  %v4051_v42 = vpack.c.bf16 %v47_v34, %v47_v34  ;;  %v4058_v45 = vpack.c.bf16 %v45_v36, %v45_v36  ;;  %v49_v53 = vld [vmem:[%s5248_s2 + $0x20] sm:$0xff]  ;;  %v46_v54 = vld [vmem:[%s5248_s2 + $0x8] sm:$0xff]  ;;  %v51_v59 = vld [vmem:[%s5248_s2 + $0x30] sm:$0xff]  ;;  %3722 = vset.pattern.permute.xlu0 %v3907_v7 }
   0x6   :  { %3474 = vmatprep.mubr.msk.bf16.mxu1 %vm139_vm0, %v125_v9  ;;  %v4091_v55 = vpack.c.bf16 %v49_v53, %v49_v53  ;;  %v4093_v56 = vpack.c.bf16 %v46_v54, %v46_v54  ;;  %v48_v60 = vld [vmem:[%s5248_s2 + $0x18] sm:$0xff]  ;;  %v4113_v61 = vpack.c.bf16 %v51_v59, %v51_v59  ;;  %3723 = vset.pattern.permute.xlu1 %v3907_v7  ;;  %v3908_v9 = vmov 1966171168  }
   0x7   :  { %3469 = vmatpush3.bf16.msra.mxu0 %v3745_v1  ;;  %3717 = vmatpush3.bf16.msra.mxu1 %v3745_v1  ;;  %v4115_v62 = vpack.c.bf16 %v48_v60, %v48_v60  ;;  %v50_v1 = vld [vmem:[%s5248_s2 + $0x28] sm:$0xff]  ;;  %v52_v4 = vld [vmem:[%s5248_s2 + $0x38] sm:$0xff]  ;;  %v762_v10 = vunpack.c.l.s4 %v3908_v9  ;;  %v4154_v11 = vshrl.u32 %v230_v8, 7 }
   0x8   :  { %3490 = vmatprep.subr.bf16.mxu0 %v3905_v14  ;;  %3478 = vmatprep.subr.bf16.mxu1 %v3905_v14  ;;  %v4132_v2 = vpack.c.bf16 %v50_v1, %v50_v1  ;;  %v4143_v5 = vpack.c.bf16 %v52_v4, %v52_v4 }
   0xa   :  { %3471 = vmatmul.mubr.msk.bf16.vlgmr.msra.gmra.mrb[0].mxu0 %vm139_vm0, %v124_v12  ;;  %3475 = vmatmul.mubr.msk.bf16.vlgmr.msra.gmra.mrb[0].mxu1 %vm139_vm0, %v126_v13  ;;  %v763_v12 = vunpack.c.0.s8 %v762_v10 }
   0xb   :  { %3492 = vmatprep.mubr.msk.bf16.mxu0 %vm3906_vm1, %v3905_v14  ;;  %3480 = vmatprep.mubr.msk.bf16.mxu1 %vm3906_vm1, %v3905_v14 }
   0xc   :  { %v4157_v13 = vsub.s32 %v763_v12, %v4154_v11 }
  0xdd   :  { %v3472_v15 = vpop.f32.mrb[0].mxu0  ;;  %v3476_v16 = vpop.f32.mrb[0].mxu1 }
  0xde   :  { %3750 = vtanh.f32 %v3472_v15  ;;  %v186_v17 = vpop.f32.mrb[1].mxu0  ;;  %v202_v18 = vpop.f32.mrb[1].mxu1  ;;  %v44_v15 = vld [vmem:[%s5249_s1] sm:$0xff] }
  0xdf   :  { %3752 = vtanh.f32 %v186_v17  ;;  %v3473_v19 = vpop.f32.mrb[2].mxu0  ;;  %v3477_v20 = vpop.f32.mrb[2].mxu1 }
  0xe0   :  { %3754 = vtanh.f32 %v3473_v19  ;;  %v189_v21 = vpop.f32.mrb[3].mxu0  ;;  %v205_v22 = vpop.f32.mrb[3].mxu1  ;;  %v760_v19 = vcombine.high %v44_v15, %v44_v15 }
  0xe1   :  { %3756 = vtanh.f32 %v189_v21 }
  0xe2   :  { %3758 = vtanh.f32 %v3476_v16  ;;  %v767_v16 = vrot.slane %v44_v15, %v4157_v13  ;;  %v774_v21 = vrot.slane %v760_v19, %v4157_v13 }
  0xe3   :  { %3760 = vtanh.f32 %v202_v18 }
  0xe4   :  { %3762 = vtanh.f32 %v3477_v20  ;;  %v783_v17 = vrot.slane %v767_v16, %v4157_v13  ;;  %v775_v20 = vcombine.high %v767_v16, %v767_v16  ;;  %v776_v4 = vcombine.high %v774_v21, %v774_v21 }
  0xe5   :  { %3764 = vtanh.f32 %v205_v22  ;;  %v4166_v22 = vsub.s32 0, %v4154_v11 }
  0xe6   :  { %v805_v18 = vcombine.high %v783_v17, %v783_v17  ;;  %vm817_vm4 = vcmp.gt.f32.partialorder %v783_v17, 0.0  ;;  %v804_v16 = vrot.slane %v776_v4, %v4157_v13 }
  0xe8   :  { %v4009_v23 = vpop.eup %3750  ;;  %vm819_vm3 = vcmp.gt.f32.partialorder %v805_v18, 0.0  ;;  %vm822_vm14 = vcmp.gt.f32.partialorder %v804_v16, 0.0 }
  0xe9   :  { %v4011_v24 = vpop.eup %3752  ;;  %v385_v25 = vpack.c.bf16 %v4009_v23, %v4009_v23 }
  0xea   :  { %v4015_v26 = vpop.eup %3754  ;;  %v383_v27 = vpack.c.bf16 %v4011_v24, %v4011_v24 }
  0xeb   :  { %v4019_v28 = vpop.eup %3756  ;;  %v487_v29 = vsel %vm139_vm0, %v385_v25, 0  ;;  %v386_v30 = vpack.c.bf16 %v4015_v26, %v4015_v26  ;;  %v4025_v31 = vsel %vm980_vm2, %v385_v25, 0  ;;  %v827_v25 = vsel %vm819_vm3, 1, %v3907_v7 }
  0xec   :  { %v4027_v32 = vpop.eup %3758  ;;  %3491 = vmatpush3.bf16.xpose.msra.mxu0 %v487_v29  ;;  %v395_v33 = vsel %vm139_vm0, %v383_v27, 0  ;;  %v384_v46 = vpack.c.bf16 %v4019_v28, %v4019_v28  ;;  %v981_v63 = vsel %vm980_vm2, %v383_v27, 0  ;;  %v825_v27 = vsel %vm817_vm4, 1, %v3907_v7 }
  0xed   :  { %v4033_v35 = vpop.eup %3760  ;;  %3479 = vmatpush3.bf16.xpose.msra.mxu1 %v395_v33  ;;  %3502 = vmatprep.subr.bf16.mxu0 %v3905_v14  ;;  %v389_v37 = vpack.c.bf16 %v4027_v32, %v4027_v32  ;;  %v4042_v38 = vsel %vm980_vm2, %v386_v30, 0  ;;  %v533_v58 = vsel %vm139_vm0, %v386_v30, 0  ;;  %v797_v29 = vrot.slane %v775_v20, %v4157_v13 }
  0xee   :  { %v4044_v39 = vpop.eup %3762  ;;  %3484 = vmatprep.subr.bf16.mxu1 %v3905_v14  ;;  %v387_v40 = vpack.c.bf16 %v4033_v35, %v4033_v35  ;;  %v441_v52 = vsel %vm139_vm0, %v384_v46, 0  ;;  %v1026_v6 = vsel %vm980_vm2, %v384_v46, 0  ;;  %v790_v30 = vrot.slane %v774_v21, %v4157_v13 }
  0xef   :  { %v4049_v41 = vpop.eup %3764  ;;  %v390_v43 = vpack.c.bf16 %v4044_v39, %v4044_v39  ;;  %v4056_v44 = vsel %vm980_vm2, %v389_v37, 0  ;;  %v671_v57 = vsel %vm139_vm0, %v389_v37, 0  ;;  %v844_v33 = vrot.slane %v827_v25, %v4166_v22 }
  0xf0   :  { %v388_v47 = vpack.c.bf16 %v4049_v41, %v4049_v41  ;;  %v4065_v48 = vsel %vm980_vm2, %v387_v40, 0  ;;  %v579_v49 = vsel %vm139_vm0, %v387_v40, 0  ;;  %v836_v34 = vrot.slane %v825_v27, %v4166_v22 }
  0xf1   :  { %v4069_v50 = vsel %vm980_vm2, %v390_v43, 0  ;;  %v717_v3 = vsel %vm139_vm0, %v390_v43, 0  ;;  %vm818_vm5 = vcmp.gt.f32.partialorder %v797_v29, 0.0  ;;  %vm821_vm6 = vcmp.gt.f32.partialorder %v790_v30, 0.0 }
  0xf2   :  { %v4072_v51 = vsel %vm980_vm2, %v388_v47, 0  ;;  %v625_v0 = vsel %vm139_vm0, %v388_v47, 0  ;;  %vm867_vm7 = vcmp.eq.s32.totalorder %v844_v33, 1  ;;  %vm865_vm8 = vcmp.eq.s32.totalorder %v836_v34, 1 }
  0xf3   :  { %3493 = vmatmul.mubr.msk.bf16.vlgmr.msra.gmra.mrb[4].mxu0 %vm139_vm0, %v4051_v42  ;;  %v826_v37 = vsel %vm818_vm5, 1, %v3907_v7  ;;  %v829_v40 = vsel %vm821_vm6, 1, %v3907_v7  ;;  %v806_v43 = vcombine.high %v790_v30, %v790_v30 }
  0xf4   :  { %3481 = vmatmul.mubr.msk.bf16.vlgmr.msra.gmra.mrb[4].mxu1 %vm139_vm0, %v4058_v45  ;;  %3503 = vmatpush3.bf16.xpose.msra.mxu0 %v579_v49  ;;  %v852_v1 = vrot.slane %v829_v40, %v4166_v22 }
  0xf5   :  { %3485 = vmatpush3.bf16.xpose.msra.mxu1 %v441_v52  ;;  %3486 = vmatprep.mubr.msk.bf16.mxu1 %vm3906_vm1, %v3905_v14  ;;  %v807_v52 = vcombine.high %v797_v29, %v797_v29  ;;  %vm823_vm10 = vcmp.gt.f32.partialorder %v806_v43, 0.0 }
  0xf6   :  { %3504 = vmatprep.mubr.msk.bf16.mxu0 %vm3906_vm1, %v3905_v14  ;;  %3514 = vmatprep.subr.bf16.mxu0 %v3905_v14  ;;  %vm869_vm13 = vcmp.eq.s32.totalorder %v852_v1, 1 }
  0xf7   :  { %3496 = vmatprep.subr.bf16.mxu1 %v3905_v14  ;;  %vm820_vm11 = vcmp.gt.f32.partialorder %v807_v52, 0.0 }
  0xf8   :  { %v828_v10 = vsel %vm820_vm11, 1, %v3907_v7 }
  0xf9   :  { %v848_v30 = vrot.slane %v828_v10, %v4166_v22 }
  0xfb   :  { %3505 = vmatmul.mubr.msk.bf16.vlgmr.msra.gmra.mrb[8].mxu0 %vm139_vm0, %v4091_v55  ;;  %vm868_vm2 = vcmp.eq.s32.totalorder %v848_v30, 1 }
  0xfc   :  { %3487 = vmatmul.mubr.msk.bf16.vlgmr.msra.gmra.mrb[8].mxu1 %vm139_vm0, %v4093_v56  ;;  %3515 = vmatpush3.bf16.xpose.msra.mxu0 %v671_v57 }
  0xfd   :  { %3497 = vmatpush3.bf16.xpose.msra.mxu1 %v533_v58  ;;  %3498 = vmatprep.mubr.msk.bf16.mxu1 %vm3906_vm1, %v3905_v14 }
  0xfe   :  { %3516 = vmatprep.mubr.msk.bf16.mxu0 %vm3906_vm1, %v3905_v14  ;;  %3526 = vmatprep.subr.bf16.mxu0 %v3905_v14 }
  0xff   :  { %3508 = vmatprep.subr.bf16.mxu1 %v3905_v14 }
 0x103   :  { %3517 = vmatmul.mubr.msk.bf16.vlgmr.msra.gmra.mrb[12].mxu0 %vm139_vm0, %v4113_v61 }
 0x104   :  { %3499 = vmatmul.mubr.msk.bf16.vlgmr.msra.gmra.mrb[12].mxu1 %vm139_vm0, %v4115_v62  ;;  %3527 = vmatpush3.bf16.msra.mxu0 %v981_v63  ;;  %v840_v63 = vrot.slane %v826_v37, %v4166_v22  ;;  %v830_v37 = vsel %vm822_vm14, 1, %v3907_v7 }
 0x105   :  { %3509 = vmatpush3.bf16.xpose.msra.mxu1 %v625_v0  ;;  %3510 = vmatprep.mubr.msk.bf16.mxu1 %vm3906_vm1, %v3905_v14 }
 0x106   :  { %3520 = vmatprep.subr.bf16.mxu1 %v3905_v14  ;;  %3528 = vmatprep.mubr.msk.bf16.mxu0 %vm3906_vm1, %v3905_v14  ;;  %vm866_vm12 = vcmp.eq.s32.totalorder %v840_v63, 1  ;;  %v856_v63 = vrot.slane %v830_v37, %v4166_v22 }
 0x107   :  { %3538 = vmatprep.subr.bf16.mxu0 %v3905_v14 }
 0x108   :  { %vm870_vm4 = vcmp.eq.s32.totalorder %v856_v63, 1 }
 0x10c   :  { %3511 = vmatmul.mubr.msk.bf16.vlgmr.msra.gmra.mrb[16].mxu1 %vm139_vm0, %v4132_v2 }
 0x10d   :  { %3521 = vmatpush3.bf16.xpose.msra.mxu1 %v717_v3  ;;  %3522 = vmatprep.mubr.msk.bf16.mxu1 %vm3906_vm1, %v3905_v14 }
 0x10e   :  { %3532 = vmatprep.subr.bf16.mxu1 %v3905_v14 }
 0x114   :  { %3523 = vmatmul.mubr.msk.bf16.vlgmr.msra.gmra.mrb[20].mxu1 %vm139_vm0, %v4143_v5 }
 0x115   :  { %3533 = vmatpush3.bf16.msra.mxu1 %v1026_v6  ;;  %3534 = vmatprep.mubr.msk.bf16.mxu1 %vm3906_vm1, %v3905_v14  ;;  %v831_v6 = vsel %vm823_vm10, 1, %v3907_v7 }
 0x116   :  { %3544 = vmatprep.subr.bf16.mxu1 %v3905_v14  ;;  %v860_v25 = vrot.slane %v831_v6, %v4166_v22 }
 0x118   :  { %vm871_vm15 = vcmp.eq.s32.totalorder %v860_v25, 1 }
 0x1c6   :  { %v523_v36 = vpop.f32.mrb[4].mxu0 }
 0x1c7   :  { %v4176_v46 = vsel %vm867_vm7, %v523_v36, -1e+09  ;;  %v431_v47 = vpop.f32.mrb[4].mxu1  ;;  %v3494_v49 = vpop.f32.mrb[5].mxu0 }
 0x1c8   :  { %v4178_v53 = vsel %vm865_vm8, %v431_v47, -1e+09  ;;  %v3482_v54 = vpop.f32.mrb[5].mxu1  ;;  %v887_v57 = vsel %vm225_vm9, %v4176_v46, -inf  ;;  %v526_v58 = vpop.f32.mrb[6].mxu0  ;;  %v808_v49 = vcombine.high %v804_v16, %v804_v16 }
 0x1c9   :  { %v434_v59 = vpop.f32.mrb[6].mxu1  ;;  %888 = vmax.xlane.f32.xlu1 %v887_v57  ;;  %v881_v60 = vsel %vm225_vm9, %v4178_v53, -inf  ;;  %v3495_v0 = vpop.f32.mrb[7].mxu0 }
 0x1ca   :  { %882 = vmax.xlane.f32.xlu0 %v881_v60  ;;  %v3483_v3 = vpop.f32.mrb[7].mxu1  ;;  %vm824_vm3 = vcmp.gt.f32.partialorder %v808_v49, 0.0 }
 0x1cb   :  { %v832_v3 = vsel %vm824_vm3, 1, %v3907_v7 }
 0x1ce   :  { %v615_v9 = vpop.f32.mrb[8].mxu0 }
 0x1cf   :  { %v477_v12 = vpop.f32.mrb[8].mxu1  ;;  %v3506_v15 = vpop.f32.mrb[9].mxu0  ;;  %v4189_v19 = vsel %vm869_vm13, %v615_v9, -1e+09 }
 0x1d0   :  { %v874_v17 = vsel %vm866_vm12, %v477_v12, -1e+09  ;;  %v3488_v18 = vpop.f32.mrb[9].mxu1  ;;  %v618_v20 = vpop.f32.mrb[10].mxu0  ;;  %v893_v34 = vsel %vm225_vm9, %v4189_v19, -inf  ;;  %v864_v15 = vrot.slane %v832_v3, %v4166_v22 }
 0x1d1   :  { %v480_v27 = vpop.f32.mrb[10].mxu1  ;;  %v884_v21 = vsel %vm225_vm9, %v874_v17, -inf  ;;  %v3507_v29 = vpop.f32.mrb[11].mxu0 }
 0x1d2   :  { %885 = vmax.xlane.f32.xlu0 %v884_v21  ;;  %v3489_v33 = vpop.f32.mrb[11].mxu1  ;;  %vm872_vm5 = vcmp.eq.s32.totalorder %v864_v15, 1 }
 0x1d6   :  { %894 = vmax.xlane.f32.xlu0 %v893_v34  ;;  %v707_v36 = vpop.f32.mrb[12].mxu0 }
 0x1d7   :  { %v569_v40 = vpop.f32.mrb[12].mxu1  ;;  %v879_v43 = vsel %vm871_vm15, %v707_v36, -1e+09  ;;  %v3518_v47 = vpop.f32.mrb[13].mxu0 }
 0x1d8   :  { %v876_v52 = vsel %vm868_vm2, %v569_v40, -1e+09  ;;  %v3500_v54 = vpop.f32.mrb[13].mxu1  ;;  %v899_v57 = vsel %vm225_vm9, %v879_v43, -inf  ;;  %v710_v58 = vpop.f32.mrb[14].mxu0 }
 0x1d9   :  { %v572_v59 = vpop.f32.mrb[14].mxu1  ;;  %v890_v60 = vsel %vm225_vm9, %v876_v52, -inf  ;;  %v3519_v0 = vpop.f32.mrb[15].mxu0 }
 0x1da   :  { %900 = vmax.xlane.f32.xlu0 %v899_v57  ;;  %891 = vmax.xlane.f32.xlu1 %v890_v60  ;;  %v3501_v1 = vpop.f32.mrb[15].mxu1 }
 0x1df   :  { %v661_v4 = vpop.f32.mrb[16].mxu1 }
 0x1e0   :  { %v878_v6 = vsel %vm870_vm4, %v661_v4, -1e+09  ;;  %v3512_v9 = vpop.f32.mrb[17].mxu1 }
 0x1e1   :  { %v664_v10 = vpop.f32.mrb[18].mxu1  ;;  %v896_v12 = vsel %vm225_vm9, %v878_v6, -inf }
 0x1e2   :  { %897 = vmax.xlane.f32.xlu1 %v896_v12  ;;  %v3513_v16 = vpop.f32.mrb[19].mxu1 }
 0x1e7   :  { %v753_v18 = vpop.f32.mrb[20].mxu1 }
 0x1e8   :  { %v880_v20 = vsel %vm872_vm5, %v753_v18, -1e+09  ;;  %v3524_v25 = vpop.f32.mrb[21].mxu1 }
 0x1e9   :  { %v756_v27 = vpop.f32.mrb[22].mxu1  ;;  %v902_v21 = vsel %vm225_vm9, %v880_v20, -inf }
 0x1ea   :  { %903 = vmax.xlane.f32.xlu1 %v902_v21  ;;  %v3525_v29 = vpop.f32.mrb[23].mxu1 }
 0x256   :  { %v889_v30 = vpop.xlane.xlu1 %888 }
 0x257   :  { %v907_v33 = vsub.f32 %v4176_v46, %v889_v30  ;;  %v883_v34 = vpop.xlane.xlu0 %882 }
 0x258   :  { %v905_v36 = vsub.f32 %v4178_v53, %v883_v34 }
 0x259   :  { %v917_v37 = vmul.f32 1.442695, %v907_v33 }
 0x25a   :  { %v913_v40 = vmul.f32 1.442695, %v905_v36 }
 0x25c   :  { %3766 = vpow2.f32 %v913_v40 }
 0x25d   :  { %3768 = vpow2.f32 %v917_v37 }
 0x25f   :  { %v886_v47 = vpop.xlane.xlu0 %885 }
 0x260   :  { %v906_v49 = vsub.f32 %v874_v17, %v886_v47 }
 0x262   :  { %v915_v54 = vmul.f32 1.442695, %v906_v49 }
 0x263   :  { %v895_v57 = vpop.xlane.xlu0 %894 }
 0x264   :  { %3770 = vpow2.f32 %v915_v54  ;;  %v909_v58 = vsub.f32 %v4189_v19, %v895_v57 }
 0x266   :  { %v3767_v59 = vpop.eup %3766  ;;  %v921_v60 = vmul.f32 1.442695, %v909_v58 }
 0x267   :  { %v901_v63 = vpop.xlane.xlu0 %900  ;;  %v892_v0 = vpop.xlane.xlu1 %891  ;;  %v929_v46 = vsel %vm225_vm9, %v3767_v59, 0.0 }
 0x268   :  { %v3769_v1 = vpop.eup %3768  ;;  %3772 = vpow2.f32 %v921_v60  ;;  %v911_v53 = vsub.f32 %v879_v43, %v901_v63  ;;  %v908_v3 = vsub.f32 %v876_v52, %v892_v0  ;;  %930 = vadd.xlane.f32.xlu0 %v929_v46 }
 0x269   :  { %v935_v17 = vsel %vm225_vm9, %v3769_v1, 0.0 }
 0x26a   :  { %v925_v4 = vmul.f32 1.442695, %v911_v53  ;;  %v919_v9 = vmul.f32 1.442695, %v908_v3 }
 0x26c   :  { %3774 = vpow2.f32 %v925_v4  ;;  %936 = vadd.xlane.f32.xlu0 %v935_v17 }
 0x26d   :  { %3776 = vpow2.f32 %v919_v9 }
 0x26e   :  { %v3771_v10 = vpop.eup %3770 }
 0x26f   :  { %v898_v19 = vpop.xlane.xlu1 %897  ;;  %v932_v12 = vsel %vm225_vm9, %v3771_v10, 0.0 }
 0x270   :  { %v910_v15 = vsub.f32 %v878_v6, %v898_v19  ;;  %933 = vadd.xlane.f32.xlu1 %v932_v12 }
 0x272   :  { %v3773_v16 = vpop.eup %3772  ;;  %v923_v18 = vmul.f32 1.442695, %v910_v15 }
 0x273   :  { %v941_v25 = vsel %vm225_vm9, %v3773_v16, 0.0 }
 0x274   :  { %3778 = vpow2.f32 %v923_v18  ;;  %942 = vadd.xlane.f32.xlu0 %v941_v25 }
 0x276   :  { %v4211_v43 = vpop.eup %3774 }
 0x277   :  { %v3777_v52 = vpop.eup %3776  ;;  %v904_v27 = vpop.xlane.xlu1 %903  ;;  %v947_v21 = vsel %vm225_vm9, %v4211_v43, 0.0 }
 0x278   :  { %v912_v29 = vsub.f32 %v880_v20, %v904_v27  ;;  %948 = vadd.xlane.f32.xlu0 %v947_v21  ;;  %v938_v30 = vsel %vm225_vm9, %v3777_v52, 0.0 }
 0x279   :  { %939 = vadd.xlane.f32.xlu1 %v938_v30  ;;  %v57_v30 = vld [vmem:[%s5250_s3 + $0x20] sm:$0xff] }
 0x27a   :  { %v927_v6 = vmul.f32 1.442695, %v912_v29  ;;  %v56_v29 = vld [vmem:[%s5250_s3 + $0x18] sm:$0xff] }
 0x27c   :  { %3780 = vpow2.f32 %v927_v6  ;;  %v58_v6 = vld [vmem:[%s5250_s3 + $0x28] sm:$0xff] }
 0x27e   :  { %v4216_v33 = vpop.eup %3778 }
 0x27f   :  { %v944_v34 = vsel %vm225_vm9, %v4216_v33, 0.0 }
 0x280   :  { %945 = vadd.xlane.f32.xlu1 %v944_v34 }
 0x286   :  { %v4220_v36 = vpop.eup %3780 }
 0x287   :  { %v950_v37 = vsel %vm225_vm9, %v4220_v36, 0.0 }
 0x288   :  { %951 = vadd.xlane.f32.xlu1 %v950_v37 }
 0x2f5   :  { %v931_v40 = vpop.xlane.xlu0 %930 }
 0x2f6   :  { %3782 = vrcp.f32 %v931_v40  ;;  %v1340_v40 = vpack.c.bf16 %v58_v6, %v57_v30 }
 0x2f9   :  { %v937_v20 = vpop.xlane.xlu0 %936 }
 0x2fa   :  { %3784 = vrcp.f32 %v937_v20 }
 0x2fd   :  { %v934_v47 = vpop.xlane.xlu1 %933 }
 0x2fe   :  { %3786 = vrcp.f32 %v934_v47 }
 0x300   :  { %v3783_v49 = vpop.eup %3782 }
 0x301   :  { %v943_v54 = vpop.xlane.xlu0 %942  ;;  %v961_v57 = vmul.f32 %v3783_v49, %v3767_v59  ;;  %v1401_v49 = vsel %vm139_vm0, %v1340_v40, 0  ;;  %v81_v40 = vld [vmem:[%s5250_s3 + $0xe0] sm:$0xff] }
 0x302   :  { %3788 = vrcp.f32 %v943_v54  ;;  %v62_v54 = vld [vmem:[%s5250_s3 + $0x48] sm:$0xff] }
 0x303   :  { %v969_v58 = vpack.c.bf16 %v961_v57, %v961_v57  ;;  %v60_v57 = vld [vmem:[%s5250_s3 + $0x38] sm:$0xff] }
 0x304   :  { %v3785_v60 = vpop.eup %3784 }
 0x305   :  { %3529 = vmatmul.mubr.msk.bf16.vlgmr.msra.gmra.mrb[16].mxu0 %vm225_vm9, %v969_v58  ;;  %v949_v0 = vpop.xlane.xlu0 %948  ;;  %v963_v46 = vmul.f32 %v3785_v60, %v3769_v1 }
 0x306   :  { %3539 = vmatpush3.bf16.msra.mxu0 %v4025_v31  ;;  %v940_v63 = vpop.xlane.xlu1 %939  ;;  %3540 = vmatprep.mubr.msk.bf16.mxu0 %vm3906_vm1, %v3905_v14 }
 0x307   :  { %3790 = vrcp.f32 %v940_v63  ;;  %3550 = vmatprep.subr.bf16.mxu0 %v3905_v14  ;;  %v971_v4 = vpack.c.bf16 %v963_v46, %v963_v46  ;;  %v63_v46 = vld [vmem:[%s5250_s3 + $0x50] sm:$0xff] }
 0x308   :  { %v3787_v53 = vpop.eup %3786  ;;  %3792 = vrcp.f32 %v949_v0 }
 0x309   :  { %v962_v3 = vmul.f32 %v3787_v53, %v3771_v10  ;;  %v64_v53 = vld [vmem:[%s5250_s3 + $0x58] sm:$0xff] }
 0x30b   :  { %v970_v59 = vpack.c.bf16 %v962_v3, %v962_v3  ;;  %v65_v3 = vld [vmem:[%s5250_s3 + $0x60] sm:$0xff] }
 0x30c   :  { %v3789_v9 = vpop.eup %3788 }
 0x30d   :  { %3535 = vmatmul.mubr.msk.bf16.vlgmr.msra.gmra.mrb[24].mxu1 %vm225_vm9, %v970_v59  ;;  %3541 = vmatmul.mubr.msk.bf16.vlgmr.msra.gmra.mrb[20].mxu0 %vm225_vm9, %v971_v4  ;;  %v946_v31 = vpop.xlane.xlu1 %945  ;;  %v965_v1 = vmul.f32 %v3789_v9, %v3773_v16  ;;  %v54_v16 = vld [vmem:[%s5250_s3 + $0x8] sm:$0xff]  ;;  %v1343_v4 = vpack.c.bf16 %v64_v53, %v63_v46 }
 0x30e   :  { %3545 = vmatpush3.bf16.msra.mxu1 %v4042_v38  ;;  %3551 = vmatpush3.bf16.msra.mxu0 %v4065_v48  ;;  %3794 = vrcp.f32 %v946_v31  ;;  %v53_v48 = vld [vmem:[%s5250_s3] sm:$0xff]  ;;  %v66_v59 = vld [vmem:[%s5250_s3 + $0x68] sm:$0xff] }
 0x30f   :  { %3546 = vmatprep.mubr.msk.bf16.mxu1 %vm3906_vm1, %v3905_v14  ;;  %3552 = vmatprep.mubr.msk.bf16.mxu0 %vm3906_vm1, %v3905_v14  ;;  %v973_v19 = vpack.c.bf16 %v965_v1, %v965_v1  ;;  %v1344_v9 = vpack.c.bf16 %v66_v59, %v65_v3  ;;  %v69_v1 = vld [vmem:[%s5250_s3 + $0x80] sm:$0xff] }
 0x310   :  { %3556 = vmatprep.subr.bf16.mxu1 %v3905_v14  ;;  %3562 = vmatprep.subr.bf16.mxu0 %v3905_v14 }
 0x311   :  { %v3791_v17 = vpop.eup %3790  ;;  %v1493_v31 = vsel %vm139_vm0, %v1344_v9, 0 }
 0x312   :  { %v964_v10 = vmul.f32 %v3791_v17, %v3777_v52  ;;  %v3793_v12 = vpop.eup %3792  ;;  %v1338_v52 = vpack.c.bf16 %v54_v16, %v53_v48  ;;  %v70_v17 = vld [vmem:[%s5250_s3 + $0x88] sm:$0xff]  ;;  %v71_v16 = vld [vmem:[%s5250_s3 + $0x90] sm:$0xff] }
 0x313   :  { %v967_v18 = vmul.f32 %v3793_v12, %v4211_v43  ;;  %v55_v43 = vld [vmem:[%s5250_s3 + $0x10] sm:$0xff]  ;;  %v1346_v12 = vpack.c.bf16 %v70_v17, %v69_v1 }
 0x314   :  { %v972_v15 = vpack.c.bf16 %v964_v10, %v964_v10  ;;  %v1339_v34 = vpack.c.bf16 %v56_v29, %v55_v43  ;;  %v67_v10 = vld [vmem:[%s5250_s3 + $0x70] sm:$0xff]  ;;  %v76_v29 = vld [vmem:[%s5250_s3 + $0xb8] sm:$0xff] }
 0x315   :  { %3553 = vmatmul.mubr.msk.bf16.vlgmr.msra.gmra.mrb[24].mxu0 %vm225_vm9, %v973_v19  ;;  %v952_v38 = vpop.xlane.xlu1 %951  ;;  %v975_v21 = vpack.c.bf16 %v967_v18, %v967_v18  ;;  %v68_v19 = vld [vmem:[%s5250_s3 + $0x78] sm:$0xff]  ;;  %v73_v18 = vld [vmem:[%s5250_s3 + $0xa0] sm:$0xff]  ;;  %v75_v43 = vld [vmem:[%s5250_s3 + $0xb0] sm:$0xff] }
 0x316   :  { %3547 = vmatmul.mubr.msk.bf16.vlgmr.msra.gmra.mrb[28].mxu1 %vm225_vm9, %v972_v15  ;;  %3563 = vmatpush3.bf16.msra.mxu0 %v4056_v44  ;;  %3796 = vrcp.f32 %v952_v38  ;;  %v1358_v47 = vsel %vm139_vm0, %v1339_v34, 0  ;;  %v1345_v15 = vpack.c.bf16 %v68_v19, %v67_v10  ;;  %v1539_v38 = vsel %vm139_vm0, %v1346_v12, 0  ;;  %v117_v19 = vld [vmem:[%s5251_s5] sm:$0xff] }
 0x317   :  { %3557 = vmatpush3.bf16.msra.mxu1 %v4072_v51  ;;  %3558 = vmatprep.mubr.msk.bf16.mxu1 %vm3906_vm1, %v3905_v14  ;;  %v1355_v51 = vsel %vm139_vm0, %v1338_v52, 0  ;;  %v1349_v6 = vpack.c.bf16 %v76_v29, %v75_v43 }
 0x318   :  { %v3795_v25 = vpop.eup %3794  ;;  %3564 = vmatprep.mubr.msk.bf16.mxu0 %vm3906_vm1, %v3905_v14  ;;  %3568 = vmatprep.subr.bf16.mxu1 %v3905_v14  ;;  %v1496_v48 = vsel %vm139_vm0, %v1345_v15, 0 }
 0x319   :  { %v966_v27 = vmul.f32 %v3795_v25, %v4216_v33  ;;  %3574 = vmatprep.subr.bf16.mxu0 %v3905_v14  ;;  %v74_v25 = vld [vmem:[%s5250_s3 + $0xa8] sm:$0xff]  ;;  %v1588_v34 = vsel %vm139_vm0, %v1349_v6, 0 }
 0x31b   :  { %v974_v44 = vpack.c.bf16 %v966_v27, %v966_v27  ;;  %v1348_v27 = vpack.c.bf16 %v74_v25, %v73_v18 }
 0x31d   :  { %3565 = vmatmul.mubr.msk.bf16.vlgmr.msra.gmra.mrb[28].mxu0 %vm225_vm9, %v975_v21  ;;  %v77_v21 = vld [vmem:[%s5250_s3 + $0xc0] sm:$0xff] }
 0x31e   :  { %3559 = vmatmul.mubr.msk.bf16.vlgmr.msra.gmra.mrb[32].mxu1 %vm225_vm9, %v974_v44  ;;  %3578 = vmatprep.mubr.msk.bf16.mxu0 %vm3906_vm1, %v3905_v14  ;;  %v1585_v44 = vsel %vm139_vm0, %v1348_v27, 0 }
 0x31f   :  { %3569 = vmatpush3.bf16.msra.mxu1 %v4069_v50  ;;  %3575 = vmatpush3.bf16.xpose.msra.mxu0 %v1355_v51  ;;  %v61_v50 = vld [vmem:[%s5250_s3 + $0x40] sm:$0xff]  ;;  %v78_v51 = vld [vmem:[%s5250_s3 + $0xc8] sm:$0xff] }
 0x320   :  { %v3797_v33 = vpop.eup %3796  ;;  %3570 = vmatprep.mubr.msk.bf16.mxu1 %vm3906_vm1, %v3905_v14  ;;  %3576 = vmatprep.subr.bf16.mxu0 %v3905_v14  ;;  %v1342_v58 = vpack.c.bf16 %v62_v54, %v61_v50  ;;  %v1350_v30 = vpack.c.bf16 %v78_v51, %v77_v21  ;;  %v83_v54 = vld [vmem:[%s5250_s3 + $0xf0] sm:$0xff] }
 0x321   :  { %v968_v37 = vmul.f32 %v3797_v33, %v4220_v36  ;;  %3582 = vmatprep.subr.bf16.mxu1 %v3905_v14  ;;  %v59_v36 = vld [vmem:[%s5250_s3 + $0x30] sm:$0xff] }
 0x322   :  { %v1341_v60 = vpack.c.bf16 %v60_v57, %v59_v36  ;;  %v1447_v63 = vsel %vm139_vm0, %v1342_v58, 0  ;;  %v1631_v33 = vsel %vm139_vm0, %v1350_v30, 0  ;;  %v84_v36 = vld [vmem:[%s5250_s3 + $0xf8] sm:$0xff] }
 0x323   :  { %v976_v20 = vpack.c.bf16 %v968_v37, %v968_v37  ;;  %v79_v37 = vld [vmem:[%s5250_s3 + $0xd0] sm:$0xff]  ;;  %v1353_v57 = vpack.c.bf16 %v84_v36, %v83_v54 }
 0x324   :  { %v1404_v0 = vsel %vm139_vm0, %v1341_v60, 0 }
 0x325   :  { %v1680_v58 = vsel %vm139_vm0, %v1353_v57, 0 }
 0x326   :  { %3571 = vmatmul.mubr.msk.bf16.vlgmr.msra.gmra.mrb[36].mxu1 %vm225_vm9, %v976_v20  ;;  %v82_v20 = vld [vmem:[%s5250_s3 + $0xe8] sm:$0xff] }
 0x327   :  { %3577 = vmatpush3.bf16.xpose.msra.mxu0 %v1358_v47  ;;  %3586 = vmatprep.mubr.msk.bf16.mxu1 %vm3906_vm1, %v3905_v14 }
 0x328   :  { %3583 = vmatpush3.bf16.xpose.msra.mxu1 %v1401_v49  ;;  %3590 = vmatprep.subr.bf16.mxu0 %v3905_v14  ;;  %v1352_v49 = vpack.c.bf16 %v82_v20, %v81_v40 }
 0x329   :  { %3584 = vmatprep.subr.bf16.mxu1 %v3905_v14 }
 0x32a   :  { %v1677_v50 = vsel %vm139_vm0, %v1352_v49, 0 }
 0x32e   :  { %3579 = vmatmul.mubr.msk.bf16.vlgmr.msra.gmra.mrb[32].mxu0 %vm139_vm0, %v4058_v45  ;;  %v1450_v45 = vsel %vm139_vm0, %v1343_v4, 0 }
 0x32f   :  { %3591 = vmatpush3.bf16.xpose.msra.mxu0 %v1447_v63  ;;  %3594 = vmatprep.mubr.msk.bf16.mxu0 %vm3906_vm1, %v3905_v14 }
 0x330   :  { %3585 = vmatpush3.bf16.xpose.msra.mxu1 %v1404_v0  ;;  %3592 = vmatprep.subr.bf16.mxu0 %v3905_v14 }
 0x331   :  { %3598 = vmatprep.subr.bf16.mxu1 %v3905_v14 }
 0x337   :  { %3587 = vmatmul.mubr.msk.bf16.vlgmr.msra.gmra.mrb[40].mxu1 %vm139_vm0, %v4093_v56  ;;  %3593 = vmatpush3.bf16.xpose.msra.mxu0 %v1450_v45  ;;  %v72_v56 = vld [vmem:[%s5250_s3 + $0x98] sm:$0xff] }
 0x338   :  { %3599 = vmatpush3.bf16.xpose.msra.mxu1 %v1493_v31  ;;  %3606 = vmatprep.subr.bf16.mxu0 %v3905_v14  ;;  %v1347_v52 = vpack.c.bf16 %v72_v56, %v71_v16 }
 0x339   :  { %3600 = vmatprep.subr.bf16.mxu1 %v3905_v14  ;;  %3602 = vmatprep.mubr.msk.bf16.mxu1 %vm3906_vm1, %v3905_v14 }
 0x33e   :  { %3595 = vmatmul.mubr.msk.bf16.vlgmr.msra.gmra.mrb[36].mxu0 %vm139_vm0, %v4051_v42  ;;  %v1542_v42 = vsel %vm139_vm0, %v1347_v52, 0 }
 0x33f   :  { %3607 = vmatpush3.bf16.xpose.msra.mxu0 %v1539_v38  ;;  %3610 = vmatprep.mubr.msk.bf16.mxu0 %vm3906_vm1, %v3905_v14 }
 0x340   :  { %3601 = vmatpush3.bf16.xpose.msra.mxu1 %v1496_v48  ;;  %3608 = vmatprep.subr.bf16.mxu0 %v3905_v14  ;;  %v1730_v48 = vrot.slane %v117_v19, %v4157_v13 }
 0x341   :  { %3614 = vmatprep.subr.bf16.mxu1 %v3905_v14 }
 0x342   :  { %v1746_v25 = vrot.slane %v1730_v48, %v4157_v13  ;;  %v1738_v51 = vcombine.high %v1730_v48, %v1730_v48 }
 0x344   :  { %vm1780_vm6 = vcmp.gt.f32.partialorder %v1746_v25, 0.0  ;;  %v1760_v6 = vrot.slane %v1738_v51, %v4157_v13  ;;  %v1768_v20 = vcombine.high %v1746_v25, %v1746_v25 }
 0x345   :  { %v1788_v43 = vsel %vm1780_vm6, 1, %v3907_v7 }
 0x346   :  { %vm1781_vm7 = vcmp.gt.f32.partialorder %v1760_v6, 0.0  ;;  %vm1782_vm10 = vcmp.gt.f32.partialorder %v1768_v20, 0.0 }
 0x347   :  { %3603 = vmatmul.mubr.msk.bf16.vlgmr.msra.gmra.mrb[44].mxu1 %vm139_vm0, %v4115_v62  ;;  %3609 = vmatpush3.bf16.xpose.msra.mxu0 %v1542_v42  ;;  %v80_v62 = vld [vmem:[%s5250_s3 + $0xd8] sm:$0xff]  ;;  %v1789_v40 = vsel %vm1781_vm7, 1, %v3907_v7  ;;  %v1790_v57 = vsel %vm1782_vm10, 1, %v3907_v7 }
 0x348   :  { %3615 = vmatpush3.bf16.xpose.msra.mxu1 %v1585_v44  ;;  %3622 = vmatprep.subr.bf16.mxu0 %v3905_v14  ;;  %v1351_v47 = vpack.c.bf16 %v80_v62, %v79_v37  ;;  %v1803_v54 = vrot.slane %v1789_v40, %v4166_v22 }
 0x349   :  { %3616 = vmatprep.subr.bf16.mxu1 %v3905_v14  ;;  %3618 = vmatprep.mubr.msk.bf16.mxu1 %vm3906_vm1, %v3905_v14 }
 0x34a   :  { %vm1829_vm11 = vcmp.eq.s32.totalorder %v1803_v54, 1 }
 0x34e   :  { %3611 = vmatmul.mubr.msk.bf16.vlgmr.msra.gmra.mrb[40].mxu0 %vm139_vm0, %v4091_v55  ;;  %v1634_v55 = vsel %vm139_vm0, %v1351_v47, 0 }
 0x34f   :  { %3623 = vmatpush3.bf16.xpose.msra.mxu0 %v1631_v33  ;;  %3626 = vmatprep.mubr.msk.bf16.mxu0 %vm3906_vm1, %v3905_v14 }
 0x350   :  { %3617 = vmatpush3.bf16.xpose.msra.mxu1 %v1588_v34  ;;  %3624 = vmatprep.subr.bf16.mxu0 %v3905_v14  ;;  %v1799_v34 = vrot.slane %v1788_v43, %v4166_v22 }
 0x351   :  { %3630 = vmatprep.subr.bf16.mxu1 %v3905_v14 }
 0x352   :  { %vm1828_vm8 = vcmp.eq.s32.totalorder %v1799_v34, 1 }
 0x357   :  { %3619 = vmatmul.mubr.msk.bf16.vlgmr.msra.gmra.mrb[48].mxu1 %vm139_vm0, %v4132_v2  ;;  %3625 = vmatpush3.bf16.xpose.msra.mxu0 %v1634_v55 }
 0x358   :  { %3631 = vmatpush3.bf16.xpose.msra.mxu1 %v1677_v50  ;;  %3634 = vmatprep.mubr.msk.bf16.mxu1 %vm3906_vm1, %v3905_v14 }
 0x359   :  { %3632 = vmatprep.subr.bf16.mxu1 %v3905_v14  ;;  %3638 = vmatprep.subr.bf16.mxu0 %v3905_v14 }
 0x35e   :  { %3627 = vmatmul.mubr.msk.bf16.vlgmr.msra.gmra.mrb[44].mxu0 %vm139_vm0, %v4113_v61 }
 0x35f   :  { %3642 = vmatprep.mubr.msk.bf16.mxu0 %vm3906_vm1, %v3905_v14 }
 0x360   :  { %3633 = vmatpush3.bf16.xpose.msra.mxu1 %v1680_v58  ;;  %v1723_v58 = vcombine.high %v117_v19, %v117_v19 }
 0x361   :  { %3646 = vmatprep.subr.bf16.mxu1 %v3905_v14 }
 0x367   :  { %3635 = vmatmul.mubr.msk.bf16.vlgmr.msra.gmra.mrb[52].mxu1 %vm139_vm0, %v4143_v5 }
 0x368   :  { %3650 = vmatprep.mubr.msk.bf16.mxu1 %vm3906_vm1, %v3905_v14 }
 0x3d8   :  { %v4423_v2 = vpop.f32.mrb[16].mxu0 }
 0x3d9   :  { %v3530_v60 = vpop.f32.mrb[17].mxu0 }
 0x3da   :  { %v1020_v63 = vpop.f32.mrb[18].mxu0 }
 0x3db   :  { %v3531_v0 = vpop.f32.mrb[19].mxu0  ;;  %v1770_v63 = vcombine.high %v1760_v6, %v1760_v6 }
 0x3dd   :  { %vm1783_vm12 = vcmp.gt.f32.partialorder %v1770_v63, 0.0 }
 0x3e0   :  { %v4425_v46 = vpop.f32.mrb[24].mxu1  ;;  %v4427_v61 = vpop.f32.mrb[20].mxu0 }
 0x3e1   :  { %v3536_v53 = vpop.f32.mrb[25].mxu1  ;;  %v3542_v3 = vpop.f32.mrb[21].mxu0 }
 0x3e2   :  { %v1065_v59 = vpop.f32.mrb[26].mxu1  ;;  %v1110_v4 = vpop.f32.mrb[22].mxu0  ;;  %v1807_v3 = vrot.slane %v1790_v57, %v4166_v22 }
 0x3e3   :  { %v3537_v9 = vpop.f32.mrb[27].mxu1  ;;  %v3543_v45 = vpop.f32.mrb[23].mxu0 }
 0x3e4   :  { %v1737_v45 = vrot.slane %v1723_v58, %v4157_v13  ;;  %vm1830_vm13 = vcmp.eq.s32.totalorder %v1807_v3, 1 }
 0x3e6   :  { %v1739_v25 = vcombine.high %v1737_v45, %v1737_v45 }
 0x3e8   :  { %v4429_v31 = vpop.f32.mrb[24].mxu0 }
 0x3e9   :  { %v4431_v5 = vpop.f32.mrb[28].mxu1  ;;  %v3554_v1 = vpop.f32.mrb[25].mxu0 }
 0x3ea   :  { %v3548_v17 = vpop.f32.mrb[29].mxu1  ;;  %v1200_v10 = vpop.f32.mrb[26].mxu0 }
 0x3eb   :  { %v1155_v12 = vpop.f32.mrb[30].mxu1  ;;  %v3555_v15 = vpop.f32.mrb[27].mxu0  ;;  %v1791_v17 = vsel %vm1783_vm12, 1, %v3907_v7  ;;  %v1753_v10 = vrot.slane %v1737_v45, %v4157_v13 }
 0x3ec   :  { %v3549_v38 = vpop.f32.mrb[31].mxu1  ;;  %v1811_v48 = vrot.slane %v1791_v17, %v4166_v22 }
 0x3ed   :  { %vm1784_vm14 = vcmp.gt.f32.partialorder %v1753_v10, 0.0 }
 0x3ee   :  { %vm1831_vm15 = vcmp.eq.s32.totalorder %v1811_v48, 1 }
 0x3f0   :  { %v4437_v16 = vpop.f32.mrb[28].mxu0 }
 0x3f1   :  { %v4439_v56 = vpop.f32.mrb[32].mxu1  ;;  %v3566_v18 = vpop.f32.mrb[29].mxu0 }
 0x3f2   :  { %v3560_v52 = vpop.f32.mrb[33].mxu1  ;;  %v1290_v27 = vpop.f32.mrb[30].mxu0 }
 0x3f3   :  { %v1245_v42 = vpop.f32.mrb[34].mxu1  ;;  %v3567_v44 = vpop.f32.mrb[31].mxu0  ;;  %v1792_v52 = vsel %vm1784_vm14, 1, %v3907_v7 }
 0x3f4   :  { %v3561_v21 = vpop.f32.mrb[35].mxu1  ;;  %v1767_v42 = vrot.slane %v1739_v25, %v4157_v13  ;;  %v1815_v51 = vrot.slane %v1792_v52, %v4166_v22 }
 0x3f6   :  { %vm1785_vm2 = vcmp.gt.f32.partialorder %v1767_v42, 0.0  ;;  %vm1832_vm3 = vcmp.eq.s32.totalorder %v1815_v51, 1 }
 0x3f7   :  { %v1793_v34 = vsel %vm1785_vm2, 1, %v3907_v7 }
 0x3f9   :  { %v4443_v29 = vpop.f32.mrb[36].mxu1 }
 0x3fa   :  { %v3572_v30 = vpop.f32.mrb[37].mxu1 }
 0x3fb   :  { %v1335_v33 = vpop.f32.mrb[38].mxu1 }
 0x3fc   :  { %v3573_v37 = vpop.f32.mrb[39].mxu1 }
 0x3fd   :  { %v1769_v37 = vcombine.high %v1753_v10, %v1753_v10 }
 0x3ff   :  { %vm1786_vm4 = vcmp.gt.f32.partialorder %v1769_v37, 0.0 }
 0x401   :  { %v1394_v62 = vpop.f32.mrb[32].mxu0 }
 0x402   :  { %v4448_v47 = vsel %vm1828_vm8, %v1394_v62, -1e+09  ;;  %v3580_v49 = vpop.f32.mrb[33].mxu0 }
 0x403   :  { %v1844_v55 = vsel %vm139_vm0, %v4448_v47, -inf  ;;  %v1397_v50 = vpop.f32.mrb[34].mxu0  ;;  %v1819_v49 = vrot.slane %v1793_v34, %v4166_v22 }
 0x404   :  { %1845 = vmax.xlane.f32.xlu0 %v1844_v55  ;;  %v3581_v36 = vpop.f32.mrb[35].mxu0  ;;  %v1794_v50 = vsel %vm1786_vm4, 1, %v3907_v7 }
 0x405   :  { %vm1833_vm5 = vcmp.eq.s32.totalorder %v1819_v49, 1  ;;  %v1771_v36 = vcombine.high %v1767_v42, %v1767_v42 }
 0x407   :  { %vm1787_vm6 = vcmp.gt.f32.partialorder %v1771_v36, 0.0  ;;  %v85_v36 = vld [vmem:[%s5252_s4] sm:$0xff] }
 0x40a   :  { %v1440_v60 = vpop.f32.mrb[40].mxu1 }
 0x40b   :  { %v4454_v0 = vsel %vm1829_vm11, %v1440_v60, -1e+09  ;;  %v3588_v53 = vpop.f32.mrb[41].mxu1  ;;  %v1823_v60 = vrot.slane %v1794_v50, %v4166_v22 }
 0x40c   :  { %v1443_v59 = vpop.f32.mrb[42].mxu1  ;;  %v1847_v4 = vsel %vm139_vm0, %v4454_v0, -inf }
 0x40d   :  { %1848 = vmax.xlane.f32.xlu1 %v1847_v4  ;;  %v3589_v9 = vpop.f32.mrb[43].mxu1  ;;  %vm1834_vm7 = vcmp.eq.s32.totalorder %v1823_v60, 1  ;;  %v1795_v4 = vsel %vm1787_vm6, 1, %v3907_v7 }
 0x40e   :  { %v1827_v10 = vrot.slane %v1795_v4, %v4166_v22 }
 0x410   :  { %vm1835_vm8 = vcmp.eq.s32.totalorder %v1827_v10, 1 }
 0x411   :  { %v1486_v1 = vpop.f32.mrb[36].mxu0 }
 0x412   :  { %v4462_v19 = vsel %vm1830_vm13, %v1486_v1, -1e+09  ;;  %v3596_v12 = vpop.f32.mrb[37].mxu0 }
 0x413   :  { %v1850_v15 = vsel %vm139_vm0, %v4462_v19, -inf  ;;  %v1489_v38 = vpop.f32.mrb[38].mxu0 }
 0x414   :  { %1851 = vmax.xlane.f32.xlu0 %v1850_v15  ;;  %v3597_v18 = vpop.f32.mrb[39].mxu0 }
 0x41a   :  { %v1532_v27 = vpop.f32.mrb[44].mxu1 }
 0x41b   :  { %v4469_v44 = vsel %vm1831_vm15, %v1532_v27, -1e+09  ;;  %v3604_v21 = vpop.f32.mrb[45].mxu1 }
 0x41c   :  { %v1535_v43 = vpop.f32.mrb[46].mxu1  ;;  %v1853_v30 = vsel %vm139_vm0, %v4469_v44, -inf }
 0x41d   :  { %1854 = vmax.xlane.f32.xlu1 %v1853_v30  ;;  %v3605_v6 = vpop.f32.mrb[47].mxu1 }
 0x421   :  { %v1578_v33 = vpop.f32.mrb[40].mxu0 }
 0x422   :  { %v4475_v62 = vsel %vm1832_vm3, %v1578_v33, -1e+09  ;;  %v3612_v13 = vpop.f32.mrb[41].mxu0 }
 0x423   :  { %v1856_v40 = vsel %vm139_vm0, %v4475_v62, -inf  ;;  %v1581_v20 = vpop.f32.mrb[42].mxu0 }
 0x424   :  { %1857 = vmax.xlane.f32.xlu0 %v1856_v40  ;;  %v3613_v55 = vpop.f32.mrb[43].mxu0 }
 0x42a   :  { %v1624_v54 = vpop.f32.mrb[48].mxu1 }
 0x42b   :  { %v4481_v57 = vsel %vm1833_vm5, %v1624_v54, -1e+09  ;;  %v3620_v58 = vpop.f32.mrb[49].mxu1 }
 0x42c   :  { %v1627_v63 = vpop.f32.mrb[50].mxu1  ;;  %v1859_v53 = vsel %vm139_vm0, %v4481_v57, -inf }
 0x42d   :  { %1860 = vmax.xlane.f32.xlu1 %v1859_v53  ;;  %v3621_v3 = vpop.f32.mrb[51].mxu1  ;;  %v87_v63 = vld [vmem:[%s5252_s4 + $0x10] sm:$0xff] }
 0x431   :  { %v1670_v59 = vpop.f32.mrb[44].mxu0 }
 0x432   :  { %v4487_v9 = vsel %vm1834_vm7, %v1670_v59, -1e+09  ;;  %v3628_v45 = vpop.f32.mrb[45].mxu0 }
 0x433   :  { %v1862_v1 = vsel %vm139_vm0, %v4487_v9, -inf  ;;  %v1673_v17 = vpop.f32.mrb[46].mxu0 }
 0x434   :  { %1863 = vmax.xlane.f32.xlu0 %v1862_v1  ;;  %v3629_v12 = vpop.f32.mrb[47].mxu0  ;;  %v89_v1 = vld [vmem:[%s5252_s4 + $0x20] sm:$0xff]  ;;  %v90_v17 = vld [vmem:[%s5252_s4 + $0x28] sm:$0xff] }
 0x435   :  { %v1942_v10 = vpack.c.bf16 %v90_v17, %v89_v1  ;;  %v94_v1 = vld [vmem:[%s5252_s4 + $0x48] sm:$0xff] }
 0x437   :  { %3647 = vmatpush3.bf16.msra.mxu1 %v1942_v10 }
 0x438   :  { %3648 = vmatprep.subr.bf16.mxu1 %v3905_v14 }
 0x43a   :  { %v1716_v15 = vpop.f32.mrb[52].mxu1 }
 0x43b   :  { %v4492_v38 = vsel %vm1835_vm8, %v1716_v15, -1e+09  ;;  %v3636_v48 = vpop.f32.mrb[53].mxu1  ;;  %v92_v15 = vld [vmem:[%s5252_s4 + $0x38] sm:$0xff] }
 0x43c   :  { %v1719_v18 = vpop.f32.mrb[54].mxu1  ;;  %v1865_v7 = vsel %vm139_vm0, %v4492_v38, -inf }
 0x43d   :  { %1866 = vmax.xlane.f32.xlu1 %v1865_v7  ;;  %v3637_v25 = vpop.f32.mrb[55].mxu1 }
 0x491   :  { %v1846_v52 = vpop.xlane.xlu0 %1845 }
 0x492   :  { %v1868_v27 = vsub.f32 %v4448_v47, %v1846_v52 }
 0x494   :  { %v1876_v42 = vmul.f32 1.442695, %v1868_v27 }
 0x496   :  { %3798 = vpow2.f32 %v1876_v42 }
 0x49a   :  { %v1849_v21 = vpop.xlane.xlu1 %1848 }
 0x49b   :  { %v1869_v51 = vsub.f32 %v4454_v0, %v1849_v21 }
 0x49d   :  { %v1878_v43 = vmul.f32 1.442695, %v1869_v51 }
 0x49f   :  { %3800 = vpow2.f32 %v1878_v43 }
 0x4a0   :  { %v4498_v30 = vpop.eup %3798 }
 0x4a1   :  { %v1852_v6 = vpop.xlane.xlu0 %1851  ;;  %v1892_v33 = vsel %vm139_vm0, %v4498_v30, 0.0 }
 0x4a2   :  { %v1870_v34 = vsub.f32 %v4462_v19, %v1852_v6  ;;  %1893 = vadd.xlane.f32.xlu0 %v1892_v33  ;;  %v3896_v33 = vld [vmem:[%s5249_s1] sm:$0xff] }
 0x4a4   :  { %v1880_v37 = vmul.f32 1.442695, %v1870_v34  ;;  %v226_v34 = vsel %vm225_vm9, %v3896_v33, 0.0 }
 0x4a6   :  { %3802 = vpow2.f32 %v1880_v37 }
 0x4a9   :  { %v4503_v13 = vpop.eup %3800 }
 0x4aa   :  { %v1855_v47 = vpop.xlane.xlu1 %1854  ;;  %v1895_v40 = vsel %vm139_vm0, %v4503_v13, 0.0 }
 0x4ab   :  { %v1871_v0 = vsub.f32 %v4469_v44, %v1855_v47  ;;  %1896 = vadd.xlane.f32.xlu1 %v1895_v40  ;;  %v86_v44 = vld [vmem:[%s5252_s4 + $0x8] sm:$0xff]  ;;  %v4569_v47 = vsub.s32 1, %v4154_v11 }
 0x4ac   :  { %v1940_v58 = vpack.c.bf16 %v86_v44, %v85_v36  ;;  %v4585_v36 = vsub.s32 3, %v4154_v11 }
 0x4ad   :  { %v1882_v20 = vmul.f32 1.442695, %v1871_v0  ;;  %v240_v40 = vrot.slane %v3896_v33, %v4569_v47  ;;  %v4573_v0 = vsub.s32 5, %v4154_v11 }
 0x4ae   :  { %3639 = vmatpush3.bf16.msra.mxu0 %v1940_v58  ;;  %v254_v58 = vrot.slane %v3896_v33, %v4585_v36 }
 0x4af   :  { %3804 = vpow2.f32 %v1882_v20  ;;  %3640 = vmatprep.subr.bf16.mxu0 %v3905_v14  ;;  %v233_v20 = vrot.slane %v3896_v33, %v4166_v22 }
 0x4b0   :  { %v4508_v49 = vpop.eup %3802 }
 0x4b1   :  { %v1858_v55 = vpop.xlane.xlu0 %1857  ;;  %v1898_v19 = vsel %vm139_vm0, %v4508_v49, 0.0 }
 0x4b2   :  { %v1872_v50 = vsub.f32 %v4475_v62, %v1858_v55  ;;  %1899 = vadd.xlane.f32.xlu0 %v1898_v19  ;;  %v88_v62 = vld [vmem:[%s5252_s4 + $0x18] sm:$0xff]  ;;  %v4577_v55 = vsub.s32 2, %v4154_v11  ;;  %v268_v19 = vrot.slane %v3896_v33, %v4573_v0 }
 0x4b3   :  { %v1941_v59 = vpack.c.bf16 %v88_v62, %v87_v63  ;;  %v4590_v63 = vsub.s32 4, %v4154_v11 }
 0x4b4   :  { %v1884_v54 = vmul.f32 1.442695, %v1872_v50  ;;  %v4581_v50 = vsub.s32 7, %v4154_v11 }
 0x4b5   :  { %3641 = vmatpush3.bf16.msra.mxu0 %v1941_v59  ;;  %v261_v62 = vrot.slane %v3896_v33, %v4590_v63 }
 0x4b6   :  { %3806 = vpow2.f32 %v1884_v54  ;;  %3654 = vmatprep.subr.bf16.mxu0 %v3905_v14  ;;  %v247_v54 = vrot.slane %v3896_v33, %v4577_v55  ;;  %v282_v44 = vrot.slane %v3896_v33, %v4581_v50 }
 0x4b9   :  { %v4519_v60 = vpop.eup %3804 }
 0x4ba   :  { %v1861_v53 = vpop.xlane.xlu1 %1860  ;;  %v1901_v3 = vsel %vm139_vm0, %v4519_v60, 0.0 }
 0x4bb   :  { %v1873_v4 = vsub.f32 %v4481_v57, %v1861_v53  ;;  %1902 = vadd.xlane.f32.xlu1 %v1901_v3  ;;  %v91_v57 = vld [vmem:[%s5252_s4 + $0x30] sm:$0xff]  ;;  %v4594_v53 = vsub.s32 6, %v4154_v11 }
 0x4bc   :  { %v1943_v7 = vpack.c.bf16 %v92_v15, %v91_v57 }
 0x4bd   :  { %v1886_v45 = vmul.f32 1.442695, %v1873_v4  ;;  %v275_v3 = vrot.slane %v3896_v33, %v4594_v53  ;;  %v100_v33 = vld [vmem:[%s5252_s4 + $0x78] sm:$0xff] }
 0x4be   :  { %3649 = vmatpush3.bf16.msra.mxu1 %v1943_v7 }
 0x4bf   :  { %3808 = vpow2.f32 %v1886_v45  ;;  %3662 = vmatprep.subr.bf16.mxu1 %v3905_v14  ;;  %v93_v45 = vld [vmem:[%s5252_s4 + $0x40] sm:$0xff] }
 0x4c0   :  { %v4538_v12 = vpop.eup %3806  ;;  %v1944_v57 = vpack.c.bf16 %v94_v1, %v93_v45 }
 0x4c1   :  { %v1864_v48 = vpop.xlane.xlu0 %1863  ;;  %v1904_v18 = vsel %vm139_vm0, %v4538_v12, 0.0 }
 0x4c2   :  { %v1874_v25 = vsub.f32 %v4487_v9, %v1864_v48  ;;  %1905 = vadd.xlane.f32.xlu0 %v1904_v18  ;;  %v95_v48 = vld [vmem:[%s5252_s4 + $0x50] sm:$0xff]  ;;  %v96_v18 = vld [vmem:[%s5252_s4 + $0x58] sm:$0xff] }
 0x4c4   :  { %v1888_v52 = vmul.f32 1.442695, %v1874_v25  ;;  %v1945_v25 = vpack.c.bf16 %v96_v18, %v95_v48 }
 0x4c6   :  { %3810 = vpow2.f32 %v1888_v52  ;;  %v98_v52 = vld [vmem:[%s5252_s4 + $0x68] sm:$0xff] }
 0x4c9   :  { %v4551_v27 = vpop.eup %3808 }
 0x4ca   :  { %v1867_v42 = vpop.xlane.xlu1 %1866  ;;  %v1907_v21 = vsel %vm139_vm0, %v4551_v27, 0.0 }
 0x4cb   :  { %v1875_v51 = vsub.f32 %v4492_v38, %v1867_v42  ;;  %1908 = vadd.xlane.f32.xlu1 %v1907_v21 }
 0x4cd   :  { %v1890_v43 = vmul.f32 1.442695, %v1875_v51 }
 0x4cf   :  { %3812 = vpow2.f32 %v1890_v43 }
 0x4d0   :  { %v4556_v9 = vpop.eup %3810 }
 0x4d1   :  { %v1910_v6 = vsel %vm139_vm0, %v4556_v9, 0.0 }
 0x4d2   :  { %1911 = vadd.xlane.f32.xlu0 %v1910_v6  ;;  %v99_v6 = vld [vmem:[%s5252_s4 + $0x70] sm:$0xff] }
 0x4d6   :  { %227 = vadd.xlane.f32.xlu0 %v226_v34 }
 0x4d9   :  { %v4564_v37 = vpop.eup %3812 }
 0x4da   :  { %v1913_v38 = vsel %vm139_vm0, %v4564_v37, 0.0 }
 0x4db   :  { %1914 = vadd.xlane.f32.xlu1 %v1913_v38  ;;  %v1947_v38 = vpack.c.bf16 %v100_v33, %v99_v6  ;;  %v114_v33 = vld [vmem:[%s5252_s4 + $0xe8] sm:$0xff] }
 0x4ec   :  { %242 = vbcast.lane.b32.xlu0 %v240_v40, 256  ;;  %235 = vbcast.lane.b32.xlu1 %v233_v20, 256  ;;  %v102_v40 = vld [vmem:[%s5252_s4 + $0x88] sm:$0xff] }
 0x4f0   :  { %270 = vbcast.lane.b32.xlu0 %v268_v19, 256  ;;  %249 = vbcast.lane.b32.xlu1 %v247_v54, 256 }
 0x4f4   :  { %284 = vbcast.lane.b32.xlu0 %v282_v44, 256  ;;  %256 = vbcast.lane.b32.xlu1 %v254_v58, 256  ;;  %v103_v58 = vld [vmem:[%s5252_s4 + $0x90] sm:$0xff] }
 0x4f8   :  { %263 = vbcast.lane.b32.xlu1 %v261_v62, 256  ;;  %v104_v62 = vld [vmem:[%s5252_s4 + $0x98] sm:$0xff] }
 0x4fc   :  { %277 = vbcast.lane.b32.xlu1 %v275_v3, 256 }
 0x52f   :  { %v1894_v59 = vpop.xlane.xlu0 %1893 }
 0x530   :  { %3814 = vrcp.f32 %v1894_v59  ;;  %v1949_v59 = vpack.c.bf16 %v104_v62, %v103_v58 }
 0x538   :  { %v1897_v4 = vpop.xlane.xlu1 %1896 }
 0x539   :  { %3816 = vrcp.f32 %v1897_v4  ;;  %v106_v4 = vld [vmem:[%s5252_s4 + $0xa8] sm:$0xff] }
 0x53a   :  { %v3815_v17 = vpop.eup %3814 }
 0x53b   :  { %v1924_v10 = vmul.f32 %v3815_v17, %v4498_v30  ;;  %v97_v30 = vld [vmem:[%s5252_s4 + $0x60] sm:$0xff] }
 0x53c   :  { %v1946_v51 = vpack.c.bf16 %v98_v52, %v97_v30 }
 0x53d   :  { %v1932_v15 = vpack.c.bf16 %v1924_v10, %v1924_v10 }
 0x53f   :  { %3643 = vmatmul.mubr.msk.bf16.vlgmr.msra.gmra.mrb[48].mxu0 %vm139_vm0, %v1932_v15  ;;  %v1900_v7 = vpop.xlane.xlu0 %1899  ;;  %v108_v15 = vld [vmem:[%s5252_s4 + $0xb8] sm:$0xff] }
 0x540   :  { %3818 = vrcp.f32 %v1900_v7  ;;  %3655 = vmatpush3.bf16.msra.mxu0 %v1944_v57  ;;  %3658 = vmatprep.mubr.msk.bf16.mxu0 %vm3906_vm1, %v3905_v14  ;;  %v107_v57 = vld [vmem:[%s5252_s4 + $0xb0] sm:$0xff]  ;;  %v110_v7 = vld [vmem:[%s5252_s4 + $0xc8] sm:$0xff] }
 0x541   :  { %3656 = vmatprep.subr.bf16.mxu0 %v3905_v14  ;;  %v1951_v18 = vpack.c.bf16 %v108_v15, %v107_v57 }
 0x543   :  { %v3817_v42 = vpop.eup %3816 }
 0x544   :  { %v1925_v21 = vmul.f32 %v3817_v42, %v4503_v13  ;;  %3657 = vmatpush3.bf16.msra.mxu0 %v1945_v25  ;;  %v101_v13 = vld [vmem:[%s5252_s4 + $0x80] sm:$0xff] }
 0x545   :  { %3670 = vmatprep.subr.bf16.mxu0 %v3905_v14  ;;  %v1948_v54 = vpack.c.bf16 %v102_v40, %v101_v13 }
 0x546   :  { %v1933_v43 = vpack.c.bf16 %v1925_v21, %v1925_v21  ;;  %v111_v21 = vld [vmem:[%s5252_s4 + $0xd0] sm:$0xff] }
 0x548   :  { %3651 = vmatmul.mubr.msk.bf16.vlgmr.msra.gmra.mrb[56].mxu1 %vm139_vm0, %v1933_v43  ;;  %v1903_v34 = vpop.xlane.xlu1 %1902 }
 0x549   :  { %3820 = vrcp.f32 %v1903_v34  ;;  %3663 = vmatpush3.bf16.msra.mxu1 %v1946_v51  ;;  %3666 = vmatprep.mubr.msk.bf16.mxu1 %vm3906_vm1, %v3905_v14  ;;  %v112_v51 = vld [vmem:[%s5252_s4 + $0xd8] sm:$0xff] }
 0x54a   :  { %v3819_v20 = vpop.eup %3818  ;;  %3664 = vmatprep.subr.bf16.mxu1 %v3905_v14  ;;  %v1953_v6 = vpack.c.bf16 %v112_v51, %v111_v21 }
 0x54b   :  { %v1926_v19 = vmul.f32 %v3819_v20, %v4508_v49  ;;  %v105_v49 = vld [vmem:[%s5252_s4 + $0xa0] sm:$0xff]  ;;  %v115_v20 = vld [vmem:[%s5252_s4 + $0xf0] sm:$0xff] }
 0x54c   :  { %v1950_v17 = vpack.c.bf16 %v106_v4, %v105_v49  ;;  %v3748_v4 = vld [vmem:[%s5253_s8] sm:$0xff]  }
 0x54d   :  { %v1934_v44 = vpack.c.bf16 %v1926_v19, %v1926_v19  ;;  %3665 = vmatpush3.bf16.msra.mxu1 %v1947_v38  ;;  %v116_v19 = vld [vmem:[%s5252_s4 + $0xf8] sm:$0xff] }
 0x54e   :  { %3678 = vmatprep.subr.bf16.mxu1 %v3905_v14 }
 0x54f   :  { %3659 = vmatmul.mubr.msk.bf16.vlgmr.msra.gmra.mrb[52].mxu0 %vm139_vm0, %v1934_v44  ;;  %v1906_v3 = vpop.xlane.xlu0 %1905  ;;  %v1955_v44 = vpack.c.bf16 %v116_v19, %v115_v20 }
 0x550   :  { %3822 = vrcp.f32 %v1906_v3  ;;  %3671 = vmatpush3.bf16.msra.mxu0 %v1948_v54  ;;  %3674 = vmatprep.mubr.msk.bf16.mxu0 %vm3906_vm1, %v3905_v14 }
 0x551   :  { %3672 = vmatprep.subr.bf16.mxu0 %v3905_v14 }
 0x553   :  { %v3821_v45 = vpop.eup %3820 }
 0x554   :  { %v1927_v1 = vmul.f32 %v3821_v45, %v4519_v60  ;;  %3673 = vmatpush3.bf16.msra.mxu0 %v1949_v59  ;;  %v109_v60 = vld [vmem:[%s5252_s4 + $0xc0] sm:$0xff] }
 0x555   :  { %3686 = vmatprep.subr.bf16.mxu0 %v3905_v14  ;;  %v1952_v52 = vpack.c.bf16 %v110_v7, %v109_v60  ;;  %v118_v45 = vld [vmem:[%s5254_s6] sm:$0xff] }
 0x556   :  { %v1935_v10 = vpack.c.bf16 %v1927_v1, %v1927_v1  ;;  %v2772_v1 = vrot.slane %v118_v45, %v4166_v22  ;;  %v2793_v57 = vrot.slane %v118_v45, %v4585_v36  ;;  %v2814_v15 = vrot.slane %v118_v45, %v4594_v53 }
 0x558   :  { %3667 = vmatmul.mubr.msk.bf16.vlgmr.msra.gmra.mrb[60].mxu1 %vm139_vm0, %v1935_v10  ;;  %v1909_v48 = vpop.xlane.xlu1 %1908  ;;  %2774 = vbcast.lane.b32.xlu0 %v2772_v1, 256  ;;  %v2800_v10 = vrot.slane %v118_v45, %v4590_v63 }
 0x559   :  { %3824 = vrcp.f32 %v1909_v48  ;;  %3679 = vmatpush3.bf16.msra.mxu1 %v1950_v17  ;;  %3682 = vmatprep.mubr.msk.bf16.mxu1 %vm3906_vm1, %v3905_v14  ;;  %v2786_v17 = vrot.slane %v118_v45, %v4577_v55  ;;  %v2807_v48 = vrot.slane %v118_v45, %v4573_v0 }
 0x55a   :  { %v3823_v25 = vpop.eup %3822  ;;  %3680 = vmatprep.subr.bf16.mxu1 %v3905_v14 }
 0x55b   :  { %v1928_v30 = vmul.f32 %v3823_v25, %v4538_v12  ;;  %v113_v12 = vld [vmem:[%s5252_s4 + $0xe0] sm:$0xff] }
 0x55c   :  { %v1954_v13 = vpack.c.bf16 %v114_v33, %v113_v12  ;;  %2802 = vbcast.lane.b32.xlu0 %v2800_v10, 256 }
 0x55d   :  { %v1936_v42 = vpack.c.bf16 %v1928_v30, %v1928_v30  ;;  %3681 = vmatpush3.bf16.msra.mxu1 %v1951_v18  ;;  %v2821_v18 = vrot.slane %v118_v45, %v4581_v50 }
 0x55e   :  { %3694 = vmatprep.subr.bf16.mxu1 %v3905_v14 }
 0x55f   :  { %3675 = vmatmul.mubr.msk.bf16.vlgmr.msra.gmra.mrb[56].mxu0 %vm139_vm0, %v1936_v42  ;;  %v1912_v43 = vpop.xlane.xlu0 %1911 }
 0x560   :  { %3826 = vrcp.f32 %v1912_v43  ;;  %3687 = vmatpush3.bf16.msra.mxu0 %v1952_v52  ;;  %3690 = vmatprep.mubr.msk.bf16.mxu0 %vm3906_vm1, %v3905_v14 }
 0x561   :  { %3688 = vmatprep.subr.bf16.mxu0 %v3905_v14  ;;  %2816 = vbcast.lane.b32.xlu0 %v2814_v15, 256 }
 0x563   :  { %v3825_v34 = vpop.eup %3824  ;;  %v228_v7 = vpop.xlane.xlu0 %227 }
 0x564   :  { %v1929_v38 = vmul.f32 %v3825_v34, %v4551_v27  ;;  %3689 = vmatpush3.bf16.msra.mxu0 %v1953_v6 }
 0x565   :  { %3702 = vmatprep.subr.bf16.mxu0 %v3748_v4 }
 0x566   :  { %v1937_v40 = vpack.c.bf16 %v1929_v38, %v1929_v38  ;;  %v229_v38 = vmax.f32 %v228_v7, 1.0 }
 0x567   :  { %v243_v52 = vpop.permute.xlu0 %242 }
 0x568   :  { %3683 = vmatmul.mubr.msk.bf16.vlgmr.msra.gmra.mrb[64].mxu1 %vm139_vm0, %v1937_v40  ;;  %v1915_v54 = vpop.xlane.xlu1 %1914  ;;  %v287_v21 = vmul.f32 %v4019_v28, %v243_v52 }
 0x569   :  { %3828 = vrcp.f32 %v1915_v54  ;;  %3695 = vmatpush3.bf16.msra.mxu1 %v1954_v13  ;;  %3698 = vmatprep.mubr.msk.bf16.mxu1 %vm3906_vm1, %v3905_v14  ;;  %vm2766_vm1 = vcmp.ne.s32.totalorder %v118_v45, 0 }
 0x56a   :  { %v3827_v27 = vpop.eup %3826  ;;  %3696 = vmatprep.subr.bf16.mxu1 %v3905_v14  ;;  %v4725_v60 = vsel %vm2766_vm1, 1.0, %v3905_v14  ;;  %v301_v43 = vsel %vm139_vm0, %v287_v21, 0.0  ;;  %3830 = vrcp.f32 %v229_v38 }
 0x56b   :  { %v1930_v58 = vmul.f32 %v3827_v27, %v4556_v9  ;;  %v3749_v9 = vld [vmem:[%s5253_s8 + $0x8] sm:$0xff]   ;;  %v2942_v25 = vrot.slane %v4725_v60, %v4166_v22  ;;  %v302_v12 = vrot.slane %v301_v43, 4  ;;  %v271_v52 = vpop.permute.xlu0 %270 }
 0x56c   :  { %v236_v30 = vpop.permute.xlu1 %235 }
 0x56d   :  { %v1938_v62 = vpack.c.bf16 %v1930_v58, %v1930_v58  ;;  %3697 = vmatpush3.bf16.msra.mxu1 %v1955_v44  ;;  %v286_v42 = vmul.f32 %v4011_v24, %v236_v30  ;;  %v303_v13 = vadd.f32 %v302_v12, %v301_v43  ;;  %v3898_v12 = vld [vmem:[%s5248_s2 + $0x8] sm:$0xff] }
 0x56f   :  { %3691 = vmatmul.mubr.msk.bf16.vlgmr.msra.gmra.mrb[60].mxu0 %vm139_vm0, %v1938_v62  ;;  %v294_v51 = vsel %vm139_vm0, %v286_v42, 0.0  ;;  %v304_v54 = vrot.slane %v303_v13, 2 }
 0x570   :  { %3703 = vmatpush3.bf16.msra.mxu0 %v3748_v4  ;;  %v295_v6 = vrot.slane %v294_v51, 4  ;;  %v250_v33 = vpop.permute.xlu1 %249 }
 0x571   :  { %3704 = vmatprep.subr.bf16.mxu0 %v3749_v9  ;;  %v288_v20 = vmul.f32 %v4009_v23, %v250_v33  ;;  %v305_v27 = vadd.f32 %v304_v54, %v303_v13  ;;  %v3897_v23 = vld [vmem:[%s5248_s2] sm:$0xff]  ;;  %v2301_v33 = vadd.f32 %v3898_v12, %v4425_v46  ;;  %v3899_v46 = vld [vmem:[%s5248_s2 + $0x10] sm:$0xff] }
 0x572   :  { %v296_v34 = vadd.f32 %v295_v6, %v294_v51  ;;  %v291_v51 = vmul.f32 %v4049_v41, %v271_v52 }
 0x573   :  { %v3829_v3 = vpop.eup %3828  ;;  %v308_v28 = vsel %vm139_vm0, %v288_v20, 0.0 }
 0x574   :  { %v1931_v59 = vmul.f32 %v3829_v3, %v4564_v37  ;;  %3705 = vmatpush3.bf16.msra.mxu0 %v3749_v9  ;;  %v2779_v37 = vrot.slane %v118_v45, %v4569_v47  ;;  %v297_v40 = vrot.slane %v296_v34, 2  ;;  %v257_v19 = vpop.permute.xlu1 %256  ;;  %v309_v62 = vrot.slane %v308_v28, 4  ;;  %v4737_v4 = vpop.eup %3830 }
 0x575   :  { %v289_v24 = vmul.f32 %v4015_v26, %v257_v19  ;;  %v2300_v9 = vadd.f32 %v3897_v23, %v4423_v2  ;;  %v329_v41 = vsel %vm139_vm0, %v291_v51, 0.0  ;;  %v353_v23 = vrot.slane %v4737_v4, 2 }
 0x576   :  { %v1939_v49 = vpack.c.bf16 %v1931_v59, %v1931_v59  ;;  %2781 = vbcast.lane.b32.xlu1 %v2779_v37, 256  ;;  %v298_v44 = vadd.f32 %v297_v40, %v296_v34  ;;  %v306_v59 = vrot.slane %v305_v27, 1  ;;  %v310_v37 = vadd.f32 %v309_v62, %v308_v28 }
 0x577   :  { %v315_v3 = vsel %vm139_vm0, %v289_v24, 0.0 }
 0x578   :  { %3699 = vmatmul.mubr.msk.bf16.vlgmr.msra.gmra.mrb[68].mxu1 %vm139_vm0, %v1939_v49  ;;  %v299_v58 = vrot.slane %v298_v44, 1  ;;  %v316_v49 = vrot.slane %v315_v3, 4  ;;  %v264_v1 = vpop.permute.xlu1 %263  ;;  %v311_v7 = vrot.slane %v310_v37, 2 }
 0x579   :  { %v290_v42 = vmul.f32 %v4033_v35, %v264_v1 }
 0x57a   :  { %2788 = vbcast.lane.b32.xlu1 %v2786_v17, 256  ;;  %v300_v45 = vadd.f32 %v299_v58, %v298_v44  ;;  %v317_v15 = vadd.f32 %v316_v49, %v315_v3  ;;  %v312_v43 = vadd.f32 %v311_v7, %v310_v37  ;;  %v330_v58 = vrot.slane %v329_v41, 4  ;;  %v285_v7 = vpop.permute.xlu0 %284 }
 0x57b   :  { %v322_v34 = vsel %vm139_vm0, %v290_v42, 0.0  ;;  %v2302_v3 = vadd.f32 %v3899_v46, %v4427_v61  ;;  %v293_v42 = vmul.f32 %v4044_v39, %v285_v7  ;;  %v355_v46 = vrot.slane %v4737_v4, 4  ;;  %v3902_v7 = vld [vmem:[%s5248_s2 + $0x28] sm:$0xff] }
 0x57c   :  { %v318_v21 = vrot.slane %v317_v15, 2  ;;  %v313_v54 = vrot.slane %v312_v43, 1  ;;  %v323_v44 = vrot.slane %v322_v34, 4  ;;  %v331_v1 = vadd.f32 %v330_v58, %v329_v41 }
 0x57e   :  { %2795 = vbcast.lane.b32.xlu1 %v2793_v57, 256  ;;  %v307_v57 = vadd.f32 %v306_v59, %v305_v27  ;;  %v319_v40 = vadd.f32 %v318_v21, %v317_v15  ;;  %v314_v59 = vadd.f32 %v313_v54, %v312_v43  ;;  %v324_v49 = vadd.f32 %v323_v44, %v322_v34  ;;  %v3900_v43 = vld [vmem:[%s5248_s2 + $0x18] sm:$0xff] }
 0x57f   :  { %v332_v61 = vrot.slane %v331_v1, 2 }
 0x580   :  { %v320_v62 = vrot.slane %v319_v40, 1  ;;  %v325_v15 = vrot.slane %v324_v49, 2 }
 0x582   :  { %2809 = vbcast.lane.b32.xlu1 %v2807_v48, 256  ;;  %v326_v21 = vadd.f32 %v325_v15, %v324_v49 }
 0x586   :  { %2823 = vbcast.lane.b32.xlu1 %v2821_v18, 256  ;;  %v352_v18 = vrot.slane %v4737_v4, 1 }
 0x588   :  { %v368_v2 = vmul.f32 %v352_v18, %v307_v57  ;;  %v354_v57 = vrot.slane %v4737_v4, 3 }
 0x58a   :  { %2944 = vbcast.lane.b32.xlu1 %v2942_v25, 256  ;;  %v367_v25 = vmul.f32 %v4737_v4, %v300_v45  ;;  %v2323_v35 = vrot.slane %v368_v2, %v4166_v22  ;;  %v278_v45 = vpop.permute.xlu1 %277 }
 0x58c   :  { %v2319_v6 = vrot.slane %v367_v25, %v4166_v22  ;;  %v292_v25 = vmul.f32 %v4027_v32, %v278_v45 }
 0x58e   :  { %v336_v12 = vsel %vm139_vm0, %v292_v25, 0.0  ;;  %v2305_v25 = vadd.f32 %v3902_v7, %v4439_v56  ;;  %v3903_v56 = vld [vmem:[%s5248_s2 + $0x30] sm:$0xff] }
 0x612   :  { %v1993_v26 = vpop.f32.mrb[48].mxu0 }
 0x613   :  { %v2308_v17 = vadd.f32 %v2300_v9, %v1993_v26  ;;  %v3644_v10 = vpop.f32.mrb[49].mxu0 }
 0x614   :  { %v1996_v48 = vpop.f32.mrb[50].mxu0 }
 0x615   :  { %v3645_v30 = vpop.f32.mrb[51].mxu0  ;;  %v2348_v38 = vadd.f32 %v2319_v6, %v2308_v17  ;;  %v321_v17 = vadd.f32 %v320_v62, %v319_v40  ;;  %v369_v48 = vmul.f32 %v353_v23, %v314_v59  ;;  %v2303_v6 = vadd.f32 %v3900_v43, %v4431_v5 }
 0x617   :  { %3832 = vtanh.f32 %v2348_v38  ;;  %v370_v30 = vmul.f32 %v354_v57, %v321_v17  ;;  %v2327_v2 = vrot.slane %v369_v48, %v4166_v22  ;;  %v333_v38 = vadd.f32 %v332_v61, %v331_v1 }
 0x619   :  { %v2331_v40 = vrot.slane %v370_v30, %v4166_v22  ;;  %v334_v5 = vrot.slane %v333_v38, 1 }
 0x61b   :  { %v2036_v13 = vpop.f32.mrb[56].mxu1  ;;  %v335_v23 = vadd.f32 %v334_v5, %v333_v38 }
 0x61c   :  { %v2309_v20 = vadd.f32 %v2301_v33, %v2036_v13  ;;  %v3652_v19 = vpop.f32.mrb[57].mxu1 }
 0x61d   :  { %v2039_v24 = vpop.f32.mrb[58].mxu1  ;;  %v337_v19 = vrot.slane %v336_v12, 4 }
 0x61e   :  { %v2349_v28 = vadd.f32 %v2323_v35, %v2309_v20  ;;  %v3653_v27 = vpop.f32.mrb[59].mxu1  ;;  %v343_v20 = vsel %vm139_vm0, %v293_v42, 0.0  ;;  %v327_v35 = vrot.slane %v326_v21, 1 }
 0x61f   :  { %v344_v24 = vrot.slane %v343_v20, 4  ;;  %v338_v62 = vadd.f32 %v337_v19, %v336_v12 }
 0x620   :  { %3834 = vtanh.f32 %v2349_v28  ;;  %v3901_v28 = vld [vmem:[%s5248_s2 + $0x20] sm:$0xff]  ;;  %v328_v58 = vadd.f32 %v327_v35, %v326_v21 }
 0x621   :  { %v3833_v52 = vpop.eup %3832  ;;  %v2304_v27 = vadd.f32 %v3901_v28, %v4429_v31 }
 0x622   :  { %v2079_v9 = vpop.f32.mrb[52].mxu0  ;;  %v371_v1 = vmul.f32 %v355_v46, %v328_v58 }
 0x623   :  { %v2310_v37 = vadd.f32 %v2302_v3, %v2079_v9  ;;  %v3660_v26 = vpop.f32.mrb[53].mxu0  ;;  %v345_v9 = vadd.f32 %v344_v24, %v343_v20 }
 0x624   :  { %v2082_v10 = vpop.f32.mrb[54].mxu0  ;;  %v339_v26 = vrot.slane %v338_v62, 2  ;;  %v2335_v31 = vrot.slane %v371_v1, %v4166_v22 }
 0x625   :  { %v3661_v18 = vpop.f32.mrb[55].mxu0  ;;  %v2350_v33 = vadd.f32 %v2327_v2, %v2310_v37  ;;  %v356_v37 = vrot.slane %v4737_v4, 5  ;;  %v346_v10 = vrot.slane %v345_v9, 2 }
 0x626   :  { %v340_v48 = vadd.f32 %v339_v26, %v338_v62 }
 0x627   :  { %3836 = vtanh.f32 %v2350_v33  ;;  %v372_v57 = vmul.f32 %v356_v37, %v335_v23  ;;  %v347_v42 = vadd.f32 %v346_v10, %v345_v9 }
 0x628   :  { %v341_v43 = vrot.slane %v340_v48, 1 }
 0x629   :  { %v2339_v2 = vrot.slane %v372_v57, %v4166_v22 }
 0x62a   :  { %v3835_v51 = vpop.eup %3834  ;;  %v342_v38 = vadd.f32 %v341_v43, %v340_v48  ;;  %v2949_v43 = vrot.slane %v4725_v60, %v4569_v47  ;;  %v4847_v47 = vand.u32 127, %v230_v8 }
 0x62b   :  { %v2122_v34 = vpop.f32.mrb[60].mxu1  ;;  %v2364_v32 = vpack.c.bf16 %v3835_v51, %v3833_v52 }
 0x62c   :  { %v2311_v13 = vadd.f32 %v2303_v6, %v2122_v34  ;;  %v3668_v39 = vpop.f32.mrb[61].mxu1  ;;  %v348_v34 = vrot.slane %v347_v42, 1 }
 0x62d   :  { %v2125_v41 = vpop.f32.mrb[62].mxu1  ;;  %3706 = vmatprep.mubr.msk.bf16.mxu0 %vm139_vm0, %v2364_v32  ;;  %v2306_v32 = vadd.f32 %v3903_v56, %v4437_v16  ;;  %v3904_v16 = vld [vmem:[%s5248_s2 + $0x38] sm:$0xff] }
 0x62e   :  { %v2351_v54 = vadd.f32 %v2331_v40, %v2311_v13  ;;  %v3669_v44 = vpop.f32.mrb[63].mxu1  ;;  %v357_v13 = vrot.slane %v4737_v4, 6  ;;  %v349_v35 = vadd.f32 %v348_v34, %v347_v42  ;;  %v358_v41 = vrot.slane %v4737_v4, 7  ;;  %v4834_v34 = vpop.permute.xlu0 %2774 }
 0x62f   :  { %v2307_v58 = vadd.f32 %v3904_v16, %v4443_v29 }
 0x630   :  { %3838 = vtanh.f32 %v2351_v54  ;;  %v373_v54 = vmul.f32 %v357_v13, %v342_v38  ;;  %v374_v5 = vmul.f32 %v358_v41, %v349_v35 }
 0x631   :  { %v3837_v15 = vpop.eup %3836 }
 0x632   :  { %v2165_v3 = vpop.f32.mrb[56].mxu0  ;;  %v2343_v28 = vrot.slane %v373_v54, %v4166_v22 }
 0x633   :  { %v2312_v59 = vadd.f32 %v2304_v27, %v2165_v3  ;;  %v3676_v49 = vpop.f32.mrb[57].mxu0 }
 0x634   :  { %v2168_v45 = vpop.f32.mrb[58].mxu0  ;;  %v2347_v49 = vrot.slane %v374_v5, %v4166_v22 }
 0x635   :  { %v3677_v17 = vpop.f32.mrb[59].mxu0  ;;  %v2352_v61 = vadd.f32 %v2335_v31, %v2312_v59 }
 0x637   :  { %3840 = vtanh.f32 %v2352_v61 }
 0x63a   :  { %v3839_v18 = vpop.eup %3838 }
 0x63b   :  { %v2208_v30 = vpop.f32.mrb[64].mxu1  ;;  %v2365_v52 = vpack.c.bf16 %v3839_v18, %v3837_v15 }
 0x63c   :  { %v2313_v21 = vadd.f32 %v2305_v25, %v2208_v30  ;;  %v3684_v51 = vpop.f32.mrb[65].mxu1 }
 0x63d   :  { %v2211_v6 = vpop.f32.mrb[66].mxu1  ;;  %3707 = vmatmul.mubr.msk.bf16.vlgmr.msra.gmra.mrb[64].mxu0 %vm139_vm0, %v2365_v52  ;;  %v2963_v51 = vrot.slane %v4725_v60, %v4585_v36 }
 0x63e   :  { %v2353_v12 = vadd.f32 %v2339_v2, %v2313_v21  ;;  %v3685_v33 = vpop.f32.mrb[67].mxu1  ;;  %v2956_v2 = vrot.slane %v4725_v60, %v4577_v55  ;;  %v4828_v6 = vpop.permute.xlu1 %2781 }
 0x63f   :  { %v4838_v55 = vpop.permute.xlu0 %2802  ;;  %vm2826_vm1 = vcmp.eq.s32.totalorder %v4847_v47, %v4828_v6 }
 0x640   :  { %3842 = vtanh.f32 %v2353_v12 }
 0x641   :  { %v3841_v24 = vpop.eup %3840 }
 0x642   :  { %v2251_v40 = vpop.f32.mrb[60].mxu0  ;;  %v4830_v12 = vpop.permute.xlu1 %2788 }
 0x643   :  { %v2314_v39 = vadd.f32 %v2306_v32, %v2251_v40  ;;  %v3692_v20 = vpop.f32.mrb[61].mxu0  ;;  %v4842_v36 = vpop.permute.xlu0 %2816  ;;  %vm2827_vm8 = vcmp.eq.s32.totalorder %v4847_v47, %v4830_v12 }
 0x644   :  { %v2254_v19 = vpop.f32.mrb[62].mxu0 }
 0x645   :  { %v3693_v44 = vpop.f32.mrb[63].mxu0  ;;  %v2354_v62 = vadd.f32 %v2343_v28, %v2314_v39 }
 0x646   :  { %v4832_v33 = vpop.permute.xlu1 %2795 }
 0x647   :  { %3844 = vtanh.f32 %v2354_v62 }
 0x64a   :  { %v3843_v27 = vpop.eup %3842  ;;  %v4836_v56 = vpop.permute.xlu1 %2809 }
 0x64b   :  { %v2294_v46 = vpop.f32.mrb[68].mxu1  ;;  %v2366_v3 = vpack.c.bf16 %v3843_v27, %v3841_v24 }
 0x64c   :  { %v2315_v59 = vadd.f32 %v2307_v58, %v2294_v46  ;;  %v3700_v4 = vpop.f32.mrb[69].mxu1 }
 0x64d   :  { %v2297_v23 = vpop.f32.mrb[70].mxu1  ;;  %3710 = vmatprep.mubr.msk.bf16.mxu0 %vm139_vm0, %v2366_v3 }
 0x64e   :  { %v2355_v9 = vadd.f32 %v2347_v49, %v2315_v59  ;;  %v3701_v45 = vpop.f32.mrb[71].mxu1  ;;  %v4840_v32 = vpop.permute.xlu1 %2823 }
 0x650   :  { %3846 = vtanh.f32 %v2355_v9 }
 0x651   :  { %v3845_v37 = vpop.eup %3844 }
 0x652   :  { %v4844_v38 = vpop.permute.xlu1 %2944 }
 0x65a   :  { %v3847_v26 = vpop.eup %3846 }
 0x65b   :  { %v2367_v1 = vpack.c.bf16 %v3847_v26, %v3845_v37 }
 0x65d   :  { %3711 = vmatmul.mubr.msk.bf16.gmra.mrb[68].mxu0 %vm139_vm0, %v2367_v1 }
 0x710   :  { %v3708_v29 = vpop.f32.mrb[64].mxu0 }
 0x711   :  { %v2430_v17 = vpop.f32.mrb[65].mxu0  ;;  %v2467_v10 = vsel %vm139_vm0, %v3708_v29, -inf }
 0x712   :  { %2468 = vmax.xlane.f32.xlu0 %v2467_v10  ;;  %v3709_v57 = vpop.f32.mrb[66].mxu0  ;;  %v2461_v22 = vsel %vm139_vm0, %v2430_v17, -inf }
 0x713   :  { %2462 = vmax.xlane.f32.xlu1 %v2461_v22  ;;  %v4801_v15 = vpop.f32.mrb[67].mxu0  ;;  %v2470_v48 = vsel %vm139_vm0, %v3709_v57, -inf }
 0x714   :  { %v2464_v31 = vsel %vm139_vm0, %v4801_v15, -inf }
 0x716   :  { %2471 = vmax.xlane.f32.xlu0 %v2470_v48 }
 0x71a   :  { %2465 = vmax.xlane.f32.xlu0 %v2464_v31 }
 0x730   :  { %v4806_v18 = vpop.f32.mrb[68].mxu0 }
 0x731   :  { %v4808_v7 = vpop.f32.mrb[69].mxu0  ;;  %v2479_v25 = vsel %vm139_vm0, %v4806_v18, -inf }
 0x732   :  { %2480 = vmax.xlane.f32.xlu1 %v2479_v25  ;;  %v4812_v61 = vpop.f32.mrb[70].mxu0  ;;  %v2473_v42 = vsel %vm139_vm0, %v4808_v7, -inf }
 0x733   :  { %v4814_v30 = vpop.f32.mrb[71].mxu0  ;;  %v2482_v52 = vsel %vm139_vm0, %v4812_v61, -inf }
 0x734   :  { %2483 = vmax.xlane.f32.xlu0 %v2482_v52  ;;  %v2476_v21 = vsel %vm139_vm0, %v4814_v30, -inf }
 0x736   :  { %2474 = vmax.xlane.f32.xlu1 %v2473_v42 }
 0x738   :  { %2477 = vmax.xlane.f32.xlu0 %v2476_v21 }
 0x747   :  { %2958 = vbcast.lane.b32.xlu1 %v2956_v2, 256 }
 0x74b   :  { %2965 = vbcast.lane.b32.xlu1 %v2963_v51, 256 }
 0x74e   :  { %2951 = vbcast.lane.b32.xlu0 %v2949_v43, 256 }
 0x79f   :  { %v2469_v13 = vpop.xlane.xlu0 %2468 }
 0x7a0   :  { %v4849_v40 = vsub.f32 %v3708_v29, %v2469_v13  ;;  %vm2585_vm10 = vcmp.ge.f32.partialorder %v3708_v29, %v2469_v13  ;;  %v2463_v39 = vpop.xlane.xlu1 %2462 }
 0x7a1   :  { %v2593_v20 = vsel %vm2585_vm10, %v4847_v47, 32  ;;  %v4852_v35 = vsub.f32 %v2430_v17, %v2463_v39  ;;  %vm2583_vm11 = vcmp.ge.f32.partialorder %v2430_v17, %v2463_v39  ;;  %vm2825_vm10 = vcmp.eq.s32.totalorder %v4847_v47, %v4834_v34 }
 0x7a2   :  { %v2497_v19 = vmul.f32 1.442695, %v4849_v40  ;;  %v2591_v41 = vsel %vm2583_vm11, %v4847_v47, 32  ;;  %v4857_v54 = vsel %vm139_vm0, %v2593_v20, 2147483647  ;;  %vm2828_vm11 = vcmp.eq.s32.totalorder %v4847_v47, %v4832_v33 }
 0x7a3   :  { %v2472_v44 = vpop.xlane.xlu0 %2471  ;;  %v2631_v8 = vshra.s32 %v4857_v54, 16  ;;  %v4861_v5 = vsel %vm139_vm0, %v2591_v41, 2147483647  ;;  %v2493_v27 = vmul.f32 1.442695, %v4852_v35 }
 0x7a4   :  { %v4863_v24 = vsub.f32 %v3709_v57, %v2472_v44  ;;  %vm2586_vm12 = vcmp.ge.f32.partialorder %v3709_v57, %v2472_v44  ;;  %v2601_v28 = vshra.s32 %v4861_v5, 16  ;;  %3848 = vpow2.f32 %v2497_v19 }
 0x7a5   :  { %v2594_v16 = vsel %vm2586_vm12, %v4847_v47, 32  ;;  %v4868_v58 = vcvt.s32.f32 %v2631_v8 }
 0x7a6   :  { %v2499_v62 = vmul.f32 1.442695, %v4863_v24  ;;  %v4871_v46 = vcvt.s32.f32 %v2601_v28  ;;  %v4874_v3 = vsel %vm139_vm0, %v2594_v16, 2147483647 }
 0x7a7   :  { %v2466_v59 = vpop.xlane.xlu0 %2465  ;;  %2634 = vmin.xlane.f32.xlu0 %v4868_v58  ;;  %v2646_v49 = vshra.s32 %v4874_v3, 16 }
 0x7a8   :  { %3850 = vpow2.f32 %v2499_v62  ;;  %v4879_v4 = vsub.f32 %v4801_v15, %v2466_v59  ;;  %vm2584_vm13 = vcmp.ge.f32.partialorder %v4801_v15, %v2466_v59  ;;  %2604 = vmin.xlane.f32.xlu1 %v4871_v46 }
 0x7a9   :  { %v2592_v23 = vsel %vm2584_vm13, %v4847_v47, 32  ;;  %v4884_v9 = vcvt.s32.f32 %v2646_v49  ;;  %3852 = vpow2.f32 %v2493_v27 }
 0x7aa   :  { %v2495_v45 = vmul.f32 1.442695, %v4879_v4  ;;  %v4888_v37 = vsel %vm139_vm0, %v2592_v23, 2147483647 }
 0x7ab   :  { %v2616_v26 = vshra.s32 %v4888_v37, 16 }
 0x7ac   :  { %3854 = vpow2.f32 %v2495_v45  ;;  %2649 = vmin.xlane.f32.xlu1 %v4884_v9 }
 0x7ad   :  { %v4892_v1 = vcvt.s32.f32 %v2616_v26 }
 0x7ae   :  { %v4894_v29 = vpop.eup %3848 }
 0x7af   :  { %v2515_v10 = vsel %vm139_vm0, %v4894_v29, 0.0 }
 0x7b0   :  { %2619 = vmin.xlane.f32.xlu1 %v4892_v1 }
 0x7b2   :  { %v4897_v17 = vpop.eup %3850 }
 0x7b3   :  { %v2518_v57 = vsel %vm139_vm0, %v4897_v17, 0.0  ;;  %v4903_v22 = vpop.eup %3852 }
 0x7b4   :  { %2516 = vadd.xlane.f32.xlu1 %v2515_v10  ;;  %2519 = vadd.xlane.f32.xlu0 %v2518_v57  ;;  %v2509_v48 = vsel %vm139_vm0, %v4903_v22, 0.0 }
 0x7b6   :  { %v4905_v15 = vpop.eup %3854 }
 0x7b7   :  { %v2512_v31 = vsel %vm139_vm0, %v4905_v15, 0.0 }
 0x7b8   :  { %2510 = vadd.xlane.f32.xlu1 %v2509_v48  ;;  %2513 = vadd.xlane.f32.xlu0 %v2512_v31 }
 0x7bf   :  { %v2481_v25 = vpop.xlane.xlu1 %2480 }
 0x7c0   :  { %v4912_v52 = vsub.f32 %v4806_v18, %v2481_v25  ;;  %vm2589_vm14 = vcmp.ge.f32.partialorder %v4806_v18, %v2481_v25 }
 0x7c1   :  { %v2597_v42 = vsel %vm2589_vm14, %v4847_v47, 32  ;;  %v2484_v21 = vpop.xlane.xlu0 %2483 }
 0x7c2   :  { %v2505_v2 = vmul.f32 1.442695, %v4912_v52  ;;  %v4918_v51 = vsub.f32 %v4812_v61, %v2484_v21  ;;  %vm2590_vm15 = vcmp.ge.f32.partialorder %v4812_v61, %v2484_v21  ;;  %v4922_v43 = vsel %vm139_vm0, %v2597_v42, 2147483647 }
 0x7c3   :  { %v2598_v13 = vsel %vm2590_vm15, %v4847_v47, 32  ;;  %v2475_v39 = vpop.xlane.xlu1 %2474  ;;  %v2691_v20 = vshra.s32 %v4922_v43, 16 }
 0x7c4   :  { %3856 = vpow2.f32 %v2505_v2  ;;  %v2507_v18 = vmul.f32 1.442695, %v4918_v51  ;;  %v4928_v19 = vsub.f32 %v4808_v7, %v2475_v39  ;;  %vm2587_vm2 = vcmp.ge.f32.partialorder %v4808_v7, %v2475_v39 }
 0x7c5   :  { %v2595_v41 = vsel %vm2587_vm2, %v4847_v47, 32  ;;  %v2478_v44 = vpop.xlane.xlu0 %2477  ;;  %v4932_v61 = vcvt.s32.f32 %v2691_v20  ;;  %v4935_v8 = vsel %vm139_vm0, %v2598_v13, 2147483647  ;;  %v2970_v39 = vrot.slane %v4725_v60, %v4590_v63 }
 0x7c6   :  { %3858 = vpow2.f32 %v2507_v18  ;;  %v2501_v28 = vmul.f32 1.442695, %v4928_v19  ;;  %v4939_v27 = vsub.f32 %v4814_v30, %v2478_v44  ;;  %vm2588_vm3 = vcmp.ge.f32.partialorder %v4814_v30, %v2478_v44 }
 0x7c7   :  { %v2596_v16 = vsel %vm2588_vm3, %v4847_v47, 32  ;;  %2694 = vmin.xlane.f32.xlu0 %v4932_v61  ;;  %v2706_v7 = vshra.s32 %v4935_v8, 16  ;;  %v4946_v62 = vsel %vm139_vm0, %v2595_v41, 2147483647  ;;  %v2977_v20 = vrot.slane %v4725_v60, %v4573_v0  ;;  %v4983_v18 = vpop.permute.xlu1 %2958 }
 0x7c8   :  { %3860 = vpow2.f32 %v2501_v28  ;;  %v2503_v59 = vmul.f32 1.442695, %v4939_v27  ;;  %v2661_v49 = vshra.s32 %v4946_v62, 16  ;;  %v4951_v23 = vsel %vm139_vm0, %v2596_v16, 2147483647 }
 0x7c9   :  { %v4953_v45 = vcvt.s32.f32 %v2706_v7  ;;  %v2676_v30 = vshra.s32 %v4951_v23, 16  ;;  %v4985_v41 = vpop.permute.xlu0 %2951  ;;  %v2630_v44 = vand.u32 65535, %v4857_v54  ;;  %v2600_v16 = vand.u32 65535, %v4861_v5 }
 0x7ca   :  { %3862 = vpow2.f32 %v2503_v59  ;;  %v4956_v26 = vcvt.s32.f32 %v2661_v49  ;;  %v2645_v63 = vand.u32 65535, %v4874_v3  ;;  %vm2831_vm2 = vcmp.eq.s32.totalorder %v4847_v47, %v4842_v36 }
 0x7cb   :  { %2709 = vmin.xlane.f32.xlu1 %v4953_v45  ;;  %v4959_v10 = vcvt.s32.f32 %v2676_v30  ;;  %v4988_v28 = vpop.permute.xlu1 %2965  ;;  %v2632_v59 = vcvt.s32.f32 %v2630_v44  ;;  %v2602_v0 = vcvt.s32.f32 %v2600_v16  ;;  %vm2832_vm3 = vcmp.eq.s32.totalorder %v4847_v47, %v4840_v32 }
 0x7cc   :  { %2664 = vmin.xlane.f32.xlu0 %v4956_v26  ;;  %v2647_v5 = vcvt.s32.f32 %v2645_v63 }
 0x7ce   :  { %v4962_v57 = vpop.eup %3856 }
 0x7cf   :  { %2679 = vmin.xlane.f32.xlu1 %v4959_v10  ;;  %v2527_v31 = vsel %vm139_vm0, %v4962_v57, 0.0 }
 0x7d0   :  { %v4965_v48 = vpop.eup %3858 }
 0x7d1   :  { %v2530_v25 = vsel %vm139_vm0, %v4965_v48, 0.0 }
 0x7d2   :  { %v4971_v42 = vpop.eup %3860  ;;  %2531 = vadd.xlane.f32.xlu0 %v2530_v25  ;;  %v2615_v25 = vand.u32 65535, %v4888_v37 }
 0x7d3   :  { %2528 = vadd.xlane.f32.xlu1 %v2527_v31  ;;  %v2521_v2 = vsel %vm139_vm0, %v4971_v42, 0.0 }
 0x7d4   :  { %v4973_v21 = vpop.eup %3862  ;;  %v2617_v3 = vcvt.s32.f32 %v2615_v25 }
 0x7d5   :  { %v2524_v13 = vsel %vm139_vm0, %v4973_v21, 0.0 }
 0x7d6   :  { %2525 = vadd.xlane.f32.xlu0 %v2524_v13 }
 0x7d7   :  { %2522 = vadd.xlane.f32.xlu1 %v2521_v2 }
 0x7e8   :  { %2972 = vbcast.lane.b32.xlu1 %v2970_v39, 256 }
 0x7ec   :  { %2979 = vbcast.lane.b32.xlu0 %v2977_v20, 256 }
 0x834   :  { %v4991_v7 = vpop.xlane.xlu0 %2634 }
 0x835   :  { %v4993_v49 = vpop.xlane.xlu1 %2604  ;;  %vm2636_vm4 = vcmp.eq.f32.partialorder %v4868_v58, %v4991_v7 }
 0x836   :  { %v2637_v30 = vsel %vm2636_vm4, %v2632_v59, inf  ;;  %vm2606_vm5 = vcmp.eq.f32.partialorder %v4871_v46, %v4993_v49  ;;  %vm2829_vm4 = vcmp.eq.s32.totalorder %v4847_v47, %v4838_v55 }
 0x837   :  { %2638 = vmin.xlane.f32.xlu1 %v2637_v30  ;;  %v2607_v54 = vsel %vm2606_vm5, %v2602_v0, inf  ;;  %vm2830_vm5 = vcmp.eq.s32.totalorder %v4847_v47, %v4836_v56 }
 0x838   :  { %2608 = vmin.xlane.f32.xlu0 %v2607_v54 }
 0x839   :  { %v5000_v31 = vpop.xlane.xlu1 %2649 }
 0x83a   :  { %vm2651_vm6 = vcmp.eq.f32.partialorder %v4884_v9, %v5000_v31 }
 0x83b   :  { %v2652_v2 = vsel %vm2651_vm6, %v2647_v5, inf }
 0x83c   :  { %2653 = vmin.xlane.f32.xlu0 %v2652_v2 }
 0x83d   :  { %v5005_v58 = vpop.xlane.xlu1 %2619 }
 0x83e   :  { %vm2621_vm7 = vcmp.eq.f32.partialorder %v4892_v1, %v5005_v58 }
 0x83f   :  { %v2622_v46 = vsel %vm2621_vm7, %v2617_v3, inf }
 0x840   :  { %2623 = vmin.xlane.f32.xlu0 %v2622_v46 }
 0x841   :  { %v2517_v13 = vpop.xlane.xlu1 %2516  ;;  %v2520_v39 = vpop.xlane.xlu0 %2519 }
 0x842   :  { %3864 = vrcp.f32 %v2517_v13 }
 0x843   :  { %3866 = vlog2.f32 %v2517_v13 }
 0x844   :  { %3868 = vrcp.f32 %v2520_v39 }
 0x845   :  { %3870 = vlog2.f32 %v2520_v39  ;;  %v2511_v37 = vpop.xlane.xlu1 %2510  ;;  %v2514_v20 = vpop.xlane.xlu0 %2513 }
 0x846   :  { %3872 = vrcp.f32 %v2511_v37 }
 0x847   :  { %3874 = vlog2.f32 %v2511_v37 }
 0x848   :  { %3876 = vrcp.f32 %v2514_v20 }
 0x849   :  { %3878 = vlog2.f32 %v2514_v20  ;;  %v3360_v20 = vsel %vm2827_vm8, 1.0, %v3905_v14 }
 0x84c   :  { %v3865_v9 = vpop.eup %3864 }
 0x84d   :  { %v3867_v44 = vpop.eup %3866  ;;  %v2543_v16 = vmul.f32 %v3865_v9, %v4894_v29 }
 0x84e   :  { %v3869_v59 = vpop.eup %3868  ;;  %v2562_v1 = vmul.f32 0.6931472, %v3867_v44 }
 0x84f   :  { %v3871_v0 = vpop.eup %3870  ;;  %2551 = vst.msk [vmem:[%s5255_s9 + $0x10] sm:$0xff] %vm139_vm0, %v2543_v16  ;;  %v2544_v63 = vmul.f32 %v3869_v59, %v4897_v17  ;;  %v3359_v16 = vsel %vm2826_vm1, 1.0, %v3905_v14 }
 0x850   :  { %v3873_v30 = vpop.eup %3872  ;;  %v2575_v54 = vsub.f32 %v4849_v40, %v2562_v1  ;;  %v2564_v5 = vmul.f32 0.6931472, %v3871_v0  ;;  %v3358_v0 = vsel %vm2825_vm10, 1.0, %v3905_v14 }
 0x851   :  { %v3875_v25 = vpop.eup %3874  ;;  %2552 = vst.msk [vmem:[%s5255_s9 + $0x18] sm:$0xff] %vm139_vm0, %v2544_v63  ;;  %v2541_v29 = vmul.f32 %v3873_v30, %v4903_v22 }
 0x852   :  { %v3877_v2 = vpop.eup %3876  ;;  %v2887_v3 = vsel %vm139_vm0, %v2575_v54, 0.0  ;;  %v2576_v17 = vsub.f32 %v4863_v24, %v2564_v5  ;;  %v2558_v46 = vmul.f32 0.6931472, %v3875_v25  ;;  %v2851_v44 = vmul.f32 %v3360_v20, %v2575_v54 }
 0x853   :  { %v3879_v13 = vpop.eup %3878  ;;  %2549 = vst.msk [vmem:[%s5255_s9] sm:$0xff] %vm139_vm0, %v2541_v29  ;;  %v2542_v40 = vmul.f32 %v3877_v2, %v4905_v15  ;;  %2888 = vadd.xlane.f32.xlu1 %v2887_v3  ;;  %v2660_v54 = vand.u32 65535, %v4946_v62  ;;  %v3361_v29 = vsel %vm2828_vm11, 1.0, %v3905_v14 }
 0x854   :  { %v2890_v22 = vsel %vm139_vm0, %v2576_v17, 0.0  ;;  %v5033_v39 = vpop.xlane.xlu0 %2694  ;;  %v2573_v37 = vsub.f32 %v4852_v35, %v2558_v46  ;;  %v2560_v24 = vmul.f32 0.6931472, %v3879_v13  ;;  %v2863_v30 = vsel %vm139_vm0, %v2851_v44, 0.0 }
 0x855   :  { %2550 = vst.msk [vmem:[%s5255_s9 + $0x8] sm:$0xff] %vm139_vm0, %v2542_v40  ;;  %2891 = vadd.xlane.f32.xlu0 %v2890_v22  ;;  %v2662_v3 = vcvt.s32.f32 %v2660_v54  ;;  %v2852_v46 = vmul.f32 %v3361_v29, %v2576_v17  ;;  %v2705_v13 = vand.u32 65535, %v4935_v8  ;;  %v2675_v17 = vand.u32 65535, %v4951_v23 }
 0x856   :  { %v2881_v15 = vsel %vm139_vm0, %v2573_v37, 0.0  ;;  %v2574_v9 = vsub.f32 %v4879_v4, %v2560_v24  ;;  %v2849_v4 = vmul.f32 %v3358_v0, %v2573_v37  ;;  %v2690_v37 = vand.u32 65535, %v4922_v43 }
 0x857   :  { %2882 = vadd.xlane.f32.xlu1 %v2881_v15  ;;  %v2707_v24 = vcvt.s32.f32 %v2705_v13  ;;  %vm2696_vm14 = vcmp.eq.f32.partialorder %v4932_v61, %v5033_v39 }
 0x858   :  { %v5046_v35 = vpop.xlane.xlu1 %2709  ;;  %v2884_v59 = vsel %vm139_vm0, %v2574_v9, 0.0  ;;  %v2850_v1 = vmul.f32 %v3359_v16, %v2574_v9  ;;  %v2857_v2 = vsel %vm139_vm0, %v2849_v4, 0.0  ;;  %v2692_v43 = vcvt.s32.f32 %v2690_v37 }
 0x859   :  { %2885 = vadd.xlane.f32.xlu0 %v2884_v59  ;;  %v5052_v63 = vpop.xlane.xlu0 %2664  ;;  %vm2711_vm13 = vcmp.eq.f32.partialorder %v4953_v45, %v5046_v35  ;;  %v2677_v9 = vcvt.s32.f32 %v2675_v17  ;;  %v3362_v37 = vsel %vm2829_vm4, 1.0, %v3905_v14 }
 0x85a   :  { %v2860_v25 = vsel %vm139_vm0, %v2850_v1, 0.0  ;;  %vm2666_vm12 = vcmp.eq.f32.partialorder %v4956_v26, %v5052_v63  ;;  %v2866_v26 = vsel %vm139_vm0, %v2852_v46, 0.0  ;;  %v2712_v15 = vsel %vm2711_vm13, %v2707_v24, inf }
 0x85b   :  { %2864 = vadd.xlane.f32.xlu1 %v2863_v30  ;;  %v2667_v22 = vsel %vm2666_vm12, %v2662_v3, inf  ;;  %v2697_v45 = vsel %vm2696_vm14, %v2692_v43, inf  ;;  %vm2751_vm14 = vcmask 1041409  }
 0x85c   :  { %v5056_v5 = vpop.xlane.xlu1 %2679 }
 0x85d   :  { %2861 = vadd.xlane.f32.xlu0 %v2860_v25  ;;  %vm2681_vm15 = vcmp.eq.f32.partialorder %v4959_v10, %v5056_v5 }
 0x85e   :  { %v2682_v23 = vsel %vm2681_vm15, %v2677_v9, inf  ;;  %v2984_v9 = vrot.slane %v4725_v60, %v4594_v53  ;;  %vm2753_vm15 = vcmask 1042434  }
 0x85f   :  { %2858 = vadd.xlane.f32.xlu1 %v2857_v2  ;;  %v2532_v40 = vpop.xlane.xlu0 %2531 }
 0x860   :  { %v2529_v62 = vpop.xlane.xlu1 %2528  ;;  %3880 = vrcp.f32 %v2532_v40 }
 0x861   :  { %3882 = vrcp.f32 %v2529_v62  ;;  %2668 = vmin.xlane.f32.xlu0 %v2667_v22 }
 0x862   :  { %3884 = vlog2.f32 %v2529_v62 }
 0x863   :  { %3886 = vlog2.f32 %v2532_v40  ;;  %2867 = vadd.xlane.f32.xlu1 %v2866_v26  ;;  %v2526_v8 = vpop.xlane.xlu0 %2525 }
 0x864   :  { %v2523_v20 = vpop.xlane.xlu1 %2522  ;;  %3888 = vrcp.f32 %v2526_v8 }
 0x865   :  { %3890 = vrcp.f32 %v2523_v20  ;;  %2713 = vmin.xlane.f32.xlu0 %v2712_v15 }
 0x866   :  { %3892 = vlog2.f32 %v2523_v20  ;;  %v3363_v20 = vsel %vm2830_vm5, 1.0, %v3905_v14  ;;  %vm2755_vm5 = vcmask 1043459  }
 0x867   :  { %3894 = vlog2.f32 %v2526_v8  ;;  %2698 = vmin.xlane.f32.xlu1 %v2697_v45 }
 0x869   :  { %2683 = vmin.xlane.f32.xlu0 %v2682_v23  ;;  %v2991_v23 = vrot.slane %v4725_v60, %v4581_v50 }
 0x86a   :  { %v3881_v44 = vpop.eup %3880 }
 0x86b   :  { %v3883_v16 = vpop.eup %3882  ;;  %v2548_v61 = vmul.f32 %v3881_v44, %v4965_v48  ;;  %v5121_v44 = vpop.permute.xlu1 %2972 }
 0x86c   :  { %v3885_v59 = vpop.eup %3884  ;;  %v2547_v1 = vmul.f32 %v3883_v16, %v4962_v57  ;;  %v2641_v16 = vcvt.f32.s32 %v4991_v7  ;;  %v2626_v7 = vcvt.f32.s32 %v5005_v58 }
 0x86d   :  { %v3887_v0 = vpop.eup %3886  ;;  %2556 = vst.msk [vmem:[%s5255_s9 + $0x38] sm:$0xff] %vm139_vm0, %v2548_v61  ;;  %v2570_v10 = vmul.f32 0.6931472, %v3885_v59  ;;  %v5124_v61 = vpop.permute.xlu0 %2979  ;;  %v2611_v59 = vcvt.f32.s32 %v4993_v49 }
 0x86e   :  { %v3889_v30 = vpop.eup %3888  ;;  %2555 = vst.msk [vmem:[%s5255_s9 + $0x30] sm:$0xff] %vm139_vm0, %v2547_v1  ;;  %v2572_v4 = vmul.f32 0.6931472, %v3887_v0  ;;  %v2642_v0 = vshll.u32 %v2641_v16, 16 }
 0x86f   :  { %v3891_v54 = vpop.eup %3890  ;;  %v2546_v48 = vmul.f32 %v3889_v30, %v4973_v21  ;;  %v2579_v25 = vsub.f32 %v4912_v52, %v2570_v10  ;;  %v3364_v21 = vsel %vm2831_vm2, 1.0, %v3905_v14  ;;  %v2656_v10 = vcvt.f32.s32 %v5000_v31 }
 0x870   :  { %v3893_v57 = vpop.eup %3892  ;;  %v2545_v29 = vmul.f32 %v3891_v54, %v4971_v42  ;;  %v2580_v13 = vsub.f32 %v4918_v51, %v2572_v4  ;;  %v2612_v53 = vshll.u32 %v2611_v59, 16 }
 0x871   :  { %v3895_v2 = vpop.eup %3894  ;;  %v2566_v3 = vmul.f32 0.6931472, %v3893_v57  ;;  %2554 = vst.msk [vmem:[%s5255_s9 + $0x28] sm:$0xff] %vm139_vm0, %v2546_v48  ;;  %v2899_v46 = vsel %vm139_vm0, %v2579_v25, 0.0  ;;  %v2855_v62 = vmul.f32 %v3364_v21, %v2579_v25  ;;  %v2657_v50 = vshll.u32 %v2656_v10, 16 }
 0x872   :  { %2553 = vst.msk [vmem:[%s5255_s9 + $0x20] sm:$0xff] %vm139_vm0, %v2545_v29  ;;  %2900 = vadd.xlane.f32.xlu0 %v2899_v46  ;;  %v2568_v52 = vmul.f32 0.6931472, %v3895_v2  ;;  %v2902_v51 = vsel %vm139_vm0, %v2580_v13, 0.0 }
 0x873   :  { %v2577_v42 = vsub.f32 %v4928_v19, %v2566_v3  ;;  %v3365_v19 = vsel %vm2832_vm3, 1.0, %v3905_v14  ;;  %v2875_v26 = vsel %vm139_vm0, %v2855_v62, 0.0  ;;  %v5135_v3 = vsub.s32 %v4847_v47, %v4154_v11 }
 0x874   :  { %v2578_v22 = vsub.f32 %v4939_v27, %v2568_v52  ;;  %v2856_v8 = vmul.f32 %v3365_v19, %v2580_v13  ;;  %v2627_v13 = vshll.u32 %v2626_v7, 16 }
 0x875   :  { %v2893_v40 = vsel %vm139_vm0, %v2577_v42, 0.0  ;;  %v2853_v17 = vmul.f32 %v3362_v37, %v2577_v42 }
 0x876   :  { %2894 = vadd.xlane.f32.xlu1 %v2893_v40  ;;  %2903 = vadd.xlane.f32.xlu0 %v2902_v51  ;;  %v2896_v24 = vsel %vm139_vm0, %v2578_v22, 0.0  ;;  %v2878_v15 = vsel %vm139_vm0, %v2856_v8, 0.0  ;;  %v2854_v43 = vmul.f32 %v3363_v20, %v2578_v22 }
 0x877   :  { %v2869_v27 = vsel %vm139_vm0, %v2853_v17, 0.0 }
 0x878   :  { %v2872_v45 = vsel %vm139_vm0, %v2854_v43, 0.0 }
 0x87a   :  { %2876 = vadd.xlane.f32.xlu1 %v2875_v26  ;;  %2897 = vadd.xlane.f32.xlu0 %v2896_v24 }
 0x87e   :  { %2870 = vadd.xlane.f32.xlu1 %v2869_v27  ;;  %2879 = vadd.xlane.f32.xlu0 %v2878_v15 }
 0x882   :  { %2873 = vadd.xlane.f32.xlu0 %v2872_v45 }
 0x88f   :  { %2986 = vbcast.lane.b32.xlu1 %v2984_v9, 256 }
 0x898   :  { %2993 = vbcast.lane.b32.xlu0 %v2991_v23, 256 }
 0x8c4   :  { %v2639_v1 = vpop.xlane.xlu1 %2638 }
 0x8c5   :  { %v2640_v30 = vcvt.f32.s32 %v2639_v1  ;;  %v2609_v4 = vpop.xlane.xlu0 %2608  ;;  %v2671_v1 = vcvt.f32.s32 %v5052_v63  ;;  %v2701_v63 = vcvt.f32.s32 %v5033_v39 }
 0x8c6   :  { %v2610_v54 = vcvt.f32.s32 %v2609_v4 }
 0x8c7   :  { %v2643_v48 = vadd.s32 %v2642_v0, %v2640_v30  ;;  %v2702_v39 = vshll.u32 %v2701_v63, 16 }
 0x8c8   :  { %v2613_v25 = vadd.s32 %v2612_v53, %v2610_v54 }
 0x8c9   :  { %vm3091_vm0 = vcmp.eq.s32.totalorder %v2643_v48, %v4830_v12  ;;  %vm3099_vm6 = vcmp.ne.s32.totalorder %v2643_v48, 1  ;;  %v2654_v57 = vpop.xlane.xlu0 %2653 }
 0x8ca   :  { %vm3107_vm7 = vmand %vm3091_vm0, %vm3099_vm6  ;;  %vm3089_vm8 = vcmp.eq.s32.totalorder %v2613_v25, %v4834_v34  ;;  %vm3097_vm1 = vcmp.ne.s32.totalorder %v2613_v25, 1  ;;  %v2655_v49 = vcvt.f32.s32 %v2654_v57  ;;  %v2722_v11 = vrot.slane %v2613_v25, %v5135_v3 }
 0x8cb   :  { %vm3105_vm10 = vmand %vm3089_vm8, %vm3097_vm1  ;;  %v3368_v31 = vsel %vm3107_vm7, 1.0, %v3905_v14  ;;  %v2672_v57 = vshll.u32 %v2671_v1, 16  ;;  %vm5258_vm0 = vcmask 1044484  }
 0x8cc   :  { %v2658_v29 = vadd.s32 %v2657_v50, %v2655_v49  ;;  %v3131_v2 = vmul.f32 %v3368_v31, %v4983_v18  ;;  %v3366_v46 = vsel %vm3105_vm10, 1.0, %v3905_v14 }
 0x8cd   :  { %v2624_v12 = vpop.xlane.xlu0 %2623  ;;  %v3129_v52 = vmul.f32 %v3366_v46, %v4844_v38 }
 0x8ce   :  { %vm3092_vm11 = vcmp.eq.s32.totalorder %v2658_v29, %v4832_v33  ;;  %vm3100_vm12 = vcmp.ne.s32.totalorder %v2658_v29, 1  ;;  %v2625_v34 = vcvt.f32.s32 %v2624_v12  ;;  %3152 = vperm.xlu0 %3722, %v3131_v2   ;;  %v2730_v33 = vrot.slane %v2643_v48, %v5135_v3 }
 0x8cf   :  { %vm3108_vm13 = vmand %vm3092_vm11, %vm3100_vm12  ;;  %v2734_v51 = vrot.slane %v2658_v29, %v5135_v3  ;;  %v2716_v12 = vcvt.f32.s32 %v5046_v35 }
 0x8d0   :  { %v2628_v58 = vadd.s32 %v2627_v13, %v2625_v34  ;;  %v3369_v42 = vsel %vm3108_vm13, 1.0, %v3905_v14 }
 0x8d1   :  { %v3724_v21 = vpack.i.bf16 %v3369_v42, %v3368_v31  ;;  %v3132_v62 = vmul.f32 %v3369_v42, %v4988_v28 }
 0x8d2   :  { %v2726_v40 = vrot.slane %v2628_v58, %v5135_v3  ;;  %vm3090_vm2 = vcmp.eq.s32.totalorder %v2628_v58, %v4828_v6  ;;  %vm3098_vm3 = vcmp.ne.s32.totalorder %v2628_v58, 1  ;;  %3146 = vperm.xlu0 %3722, %v3129_v52   ;;  %v2686_v58 = vcvt.f32.s32 %v5056_v5 }
 0x8d3   :  { %vm3106_vm4 = vmand %vm3090_vm2, %vm3098_vm3  ;;  %3725 = vperm.xlu1 %3723, %v3724_v21   ;;  %v2717_v21 = vshll.u32 %v2716_v12, 16  ;;  %vm2759_vm3 = vcmask 1045509  }
 0x8d4   :  { %v3367_v22 = vsel %vm3106_vm4, 1.0, %v3905_v14  ;;  %v2752_v19 = vsel %vm2751_vm14, %v2726_v40, %v2722_v11  ;;  %vm2761_vm4 = vcmask 1046534  }
 0x8d5   :  { %v3729_v37 = vpack.i.bf16 %v3367_v22, %v3366_v46  ;;  %v2754_v26 = vsel %vm2753_vm15, %v2730_v33, %v2752_v19  ;;  %v3130_v24 = vmul.f32 %v3367_v22, %v4985_v41  ;;  %v2687_v22 = vshll.u32 %v2686_v58, 16 }
 0x8d6   :  { %3155 = vperm.xlu0 %3722, %v3132_v62   ;;  %v2756_v6 = vsel %vm2755_vm5, %v2734_v51, %v2754_v26 }
 0x8d7   :  { %3730 = vperm.xlu1 %3723, %v3729_v37  }
 0x8db   :  { %3149 = vperm.xlu1 %3723, %v3130_v24  }
 0x8e0   :  { %v2889_v17 = vpop.xlane.xlu1 %2888 }
 0x8e1   :  { %v2908_v20 = vmul.f32 0.03125, %v2889_v17 }
 0x8e2   :  { %v2892_v8 = vpop.xlane.xlu0 %2891 }
 0x8e3   :  { %v2916_v43 = vmul.f32 0.0, %v2908_v20  ;;  %v2909_v10 = vmul.f32 0.03125, %v2892_v8 }
 0x8e4   :  { %v2883_v27 = vpop.xlane.xlu1 %2882 }
 0x8e5   :  { %v2906_v45 = vmul.f32 0.03125, %v2883_v27  ;;  %v2917_v49 = vmul.f32 0.0, %v2909_v10 }
 0x8e6   :  { %v2886_v15 = vpop.xlane.xlu0 %2885 }
 0x8e7   :  { %v2907_v9 = vmul.f32 0.03125, %v2886_v15  ;;  %v2914_v30 = vmul.f32 0.0, %v2906_v45 }
 0x8e8   :  { %v2865_v23 = vpop.xlane.xlu1 %2864 }
 0x8e9   :  { %v2915_v16 = vmul.f32 0.0, %v2907_v9  ;;  %v2924_v59 = vadd.f32 %v2916_v43, %v2865_v23 }
 0x8ea   :  { %v2862_v0 = vpop.xlane.xlu0 %2861 }
 0x8eb   :  { %v2932_v4 = vsub.f32 0.0, %v2924_v59  ;;  %v2923_v53 = vadd.f32 %v2915_v16, %v2862_v0 }
 0x8ec   :  { %v2859_v54 = vpop.xlane.xlu1 %2858 }
 0x8ed   :  { %v3005_v48 = vmul.f32 %v4983_v18, %v2932_v4  ;;  %v2931_v25 = vsub.f32 0.0, %v2923_v53  ;;  %v2922_v50 = vadd.f32 %v2914_v30, %v2859_v54 }
 0x8ee   :  { %v2669_v7 = vpop.xlane.xlu0 %2668 }
 0x8ef   :  { %v3004_v31 = vmul.f32 %v4985_v41, %v2931_v25  ;;  %v2930_v29 = vsub.f32 0.0, %v2922_v50  ;;  %v2670_v2 = vcvt.f32.s32 %v2669_v7  ;;  %3026 = vperm.xlu1 %3723, %v3005_v48  }
 0x8f0   :  { %v2868_v46 = vpop.xlane.xlu1 %2867 }
 0x8f1   :  { %v3003_v13 = vmul.f32 %v4844_v38, %v2930_v29  ;;  %v2673_v34 = vadd.s32 %v2672_v57, %v2670_v2  ;;  %3023 = vperm.xlu0 %3722, %v3004_v31   ;;  %v2925_v18 = vadd.f32 %v2917_v49, %v2868_v46 }
 0x8f2   :  { %v2714_v52 = vpop.xlane.xlu0 %2713 }
 0x8f3   :  { %v2738_v42 = vrot.slane %v2673_v34, %v5135_v3  ;;  %vm3093_vm6 = vcmp.eq.s32.totalorder %v2673_v34, %v4838_v55  ;;  %vm3101_vm7 = vcmp.ne.s32.totalorder %v2673_v34, 1  ;;  %v2933_v41 = vsub.f32 0.0, %v2925_v18  ;;  %3020 = vperm.xlu1 %3723, %v3003_v13  }
 0x8f4   :  { %vm3109_vm8 = vmand %vm3093_vm6, %vm3101_vm7  ;;  %v2715_v35 = vcvt.f32.s32 %v2714_v52  ;;  %v2699_v11 = vpop.xlane.xlu1 %2698 }
 0x8f5   :  { %v3006_v38 = vmul.f32 %v4988_v28, %v2933_v41  ;;  %v2700_v40 = vcvt.f32.s32 %v2699_v11  ;;  %v5163_v33 = vsel %vm3109_vm8, 1.0, %v3905_v14  ;;  %v2758_v5 = vsel %vm5258_vm0, %v2738_v42, %v2756_v6 }
 0x8f6   :  { %v2718_v51 = vadd.s32 %v2717_v21, %v2715_v35  ;;  %v2684_v62 = vpop.xlane.xlu0 %2683  ;;  %v3133_v55 = vmul.f32 %v5163_v33, %v5121_v44  ;;  %vm2763_vm0 = vcmask 1047559  }
 0x8f7   :  { %v2703_v19 = vadd.s32 %v2702_v39, %v2700_v40  ;;  %v2685_v37 = vcvt.f32.s32 %v2684_v62  ;;  %3029 = vperm.xlu1 %3723, %v3006_v38   ;;  %v3086_v39 = vsel %vm225_vm9, %v4725_v60, 0.0 }
 0x8f8   :  { %3158 = vperm.xlu0 %3722, %v3133_v55   ;;  %vm3096_vm1 = vcmp.eq.s32.totalorder %v2718_v51, %v4840_v32  ;;  %vm3104_vm10 = vcmp.ne.s32.totalorder %v2718_v51, 1 }
 0x8f9   :  { %v2688_v28 = vadd.s32 %v2687_v22, %v2685_v37  ;;  %vm3095_vm11 = vcmp.eq.s32.totalorder %v2703_v19, %v4842_v36  ;;  %vm3103_vm12 = vcmp.ne.s32.totalorder %v2703_v19, 1  ;;  %vm3112_vm13 = vmand %vm3096_vm1, %vm3104_vm10  ;;  %v2746_v26 = vrot.slane %v2703_v19, %v5135_v3 }
 0x8fa   :  { %vm3111_vm2 = vmand %vm3095_vm11, %vm3103_vm12  ;;  %v3373_v6 = vsel %vm3112_vm13, 1.0, %v3905_v14  ;;  %v2750_v36 = vrot.slane %v2718_v51, %v5135_v3  ;;  %vm3291_vm10 = vcmp.eq.s32.totalorder %v4847_v47, 1  ;;  %vm3289_vm11 = vcmp.eq.s32.totalorder %v4847_v47, 0 }
 0x8fb   :  { %v2742_v24 = vrot.slane %v2688_v28, %v5135_v3  ;;  %vm3094_vm6 = vcmp.eq.s32.totalorder %v2688_v28, %v4836_v56  ;;  %vm3102_vm7 = vcmp.ne.s32.totalorder %v2688_v28, 1  ;;  %v3372_v32 = vsel %vm3111_vm2, 1.0, %v3905_v14 }
 0x8fc   :  { %vm3110_vm8 = vmand %vm3094_vm6, %vm3102_vm7  ;;  %v3739_v17 = vpack.i.bf16 %v3373_v6, %v3372_v32  ;;  %vm3294_vm12 = vcmp.eq.s32.totalorder %v4847_v47, 2 }
 0x8fd   :  { %v3371_v8 = vsel %vm3110_vm8, 1.0, %v3905_v14  ;;  %v2760_v20 = vsel %vm2759_vm3, %v2742_v24, %v2758_v5 }
 0x8fe   :  { %v3134_v27 = vmul.f32 %v3371_v8, %v5124_v61  ;;  %v3734_v15 = vpack.i.bf16 %v3371_v8, %v5163_v33  ;;  %v2762_v43 = vsel %vm2761_vm4, %v2746_v26, %v2760_v20 }
 0x8ff   :  { %v2901_v45 = vpop.xlane.xlu0 %2900  ;;  %v2764_v56 = vsel %vm2763_vm0, %v2750_v36, %v2762_v43 }
 0x900   :  { %3161 = vperm.xlu1 %3723, %v3134_v27   ;;  %2765 = vst.msk [vmem:[%s5256_s10] sm:$0xff] %vm225_vm9, %v2764_v56  ;;  %v2912_v14 = vmul.f32 0.03125, %v2901_v45 }
 0x902   :  { %v2920_v0 = vmul.f32 0.0, %v2912_v14 }
 0x903   :  { %v2895_v9 = vpop.xlane.xlu1 %2894  ;;  %v2904_v23 = vpop.xlane.xlu0 %2903 }
 0x904   :  { %v2910_v16 = vmul.f32 0.03125, %v2895_v9  ;;  %v2913_v10 = vmul.f32 0.03125, %v2904_v23 }
 0x906   :  { %v2918_v30 = vmul.f32 0.0, %v2910_v16  ;;  %v2921_v25 = vmul.f32 0.0, %v2913_v10 }
 0x907   :  { %v2877_v59 = vpop.xlane.xlu1 %2876  ;;  %v2898_v1 = vpop.xlane.xlu0 %2897 }
 0x908   :  { %v2928_v4 = vadd.f32 %v2920_v0, %v2877_v59  ;;  %v2911_v53 = vmul.f32 0.03125, %v2898_v1 }
 0x90a   :  { %v2936_v57 = vsub.f32 0.0, %v2928_v4  ;;  %v2919_v7 = vmul.f32 0.0, %v2911_v53 }
 0x90b   :  { %v2871_v54 = vpop.xlane.xlu1 %2870  ;;  %v2880_v48 = vpop.xlane.xlu0 %2879 }
 0x90c   :  { %v2926_v50 = vadd.f32 %v2918_v30, %v2871_v54  ;;  %v2929_v49 = vadd.f32 %v2921_v25, %v2880_v48 }
 0x90e   :  { %v2934_v2 = vsub.f32 0.0, %v2926_v50  ;;  %v2937_v13 = vsub.f32 0.0, %v2929_v49 }
 0x90f   :  { %v2987_v31 = vpop.permute.xlu1 %2986  ;;  %v2874_v29 = vpop.xlane.xlu0 %2873 }
 0x910   :  { %v3009_v63 = vmul.f32 %v2987_v31, %v2936_v57  ;;  %v3135_v12 = vmul.f32 %v3372_v32, %v2987_v31  ;;  %v2927_v46 = vadd.f32 %v2919_v7, %v2874_v29  ;;  %v3007_v18 = vmul.f32 %v5121_v44, %v2934_v2 }
 0x912   :  { %3164 = vperm.xlu1 %3723, %v3135_v12   ;;  %3038 = vperm.xlu0 %3722, %v3009_v63   ;;  %v2935_v58 = vsub.f32 0.0, %v2927_v46 }
 0x913   :  { %v2994_v34 = vpop.permute.xlu0 %2993 }
 0x914   :  { %v3010_v52 = vmul.f32 %v2994_v34, %v2937_v13  ;;  %v3008_v42 = vmul.f32 %v5124_v61, %v2935_v58  ;;  %v3136_v41 = vmul.f32 %v3373_v6, %v2994_v34 }
 0x916   :  { %3032 = vperm.xlu0 %3722, %v3007_v18   ;;  %3041 = vperm.xlu1 %3723, %v3010_v52  }
 0x91a   :  { %3735 = vperm.xlu0 %3722, %v3734_v15   ;;  %3035 = vperm.xlu1 %3723, %v3008_v42  }
 0x91e   :  { %3740 = vperm.xlu1 %3723, %v3739_v17   ;;  %3167 = vperm.xlu0 %3722, %v3136_v41  }
 0x942   :  { %3087 = vadd.xlane.f32.xlu1 %v3086_v39 }
 0x94d   :  { %v3153_v11 = vpop.permute.xlu0 %3152 }
 0x94e   :  { %v3180_v43 = vrot.slane %v3153_v11, %v5135_v3 }
 0x951   :  { %v3147_v40 = vpop.permute.xlu0 %3146 }
 0x952   :  { %v3726_v21 = vpop.permute.xlu1 %3725  ;;  %v3172_v17 = vrot.slane %v3147_v40, %v5135_v3 }
 0x953   :  { %v3727_v36 = vunpack.i.l.bf16 %v3726_v21  ;;  %v3728_v23 = vunpack.i.h.bf16 %v3726_v21 }
 0x955   :  { %v3156_v5 = vpop.permute.xlu0 %3155  ;;  %v3256_v14 = vrot.slane %v3727_v36, %v5135_v3  ;;  %v3260_v49 = vrot.slane %v3728_v23, %v5135_v3 }
 0x956   :  { %v3731_v35 = vpop.permute.xlu1 %3730  ;;  %v3184_v10 = vrot.slane %v3156_v5, %v5135_v3 }
 0x957   :  { %v3733_v22 = vunpack.i.h.bf16 %v3731_v35  ;;  %v3732_v19 = vunpack.i.l.bf16 %v3731_v35 }
 0x959   :  { %v3252_v6 = vrot.slane %v3733_v22, %v5135_v3  ;;  %v3248_v24 = vrot.slane %v3732_v19, %v5135_v3 }
 0x95a   :  { %v3150_v38 = vpop.permute.xlu1 %3149 }
 0x95b   :  { %v3176_v37 = vrot.slane %v3150_v38, %v5135_v3  ;;  %v3277_v45 = vsel %vm2751_vm14, %v3252_v6, %v3248_v24 }
 0x95c   :  { %v3278_v30 = vsel %vm2753_vm15, %v3256_v14, %v3277_v45 }
 0x95d   :  { %v3201_v20 = vsel %vm2751_vm14, %v3176_v37, %v3172_v17  ;;  %v3279_v18 = vsel %vm2755_vm5, %v3260_v49, %v3278_v30 }
 0x95e   :  { %v3202_v1 = vsel %vm2753_vm15, %v3180_v43, %v3201_v20 }
 0x95f   :  { %v3203_v31 = vsel %vm2755_vm5, %v3184_v10, %v3202_v1 }
 0x96e   :  { %v3027_v44 = vpop.permute.xlu1 %3026 }
 0x96f   :  { %v3054_v16 = vrot.slane %v3027_v44, %v5135_v3 }
 0x970   :  { %v3024_v51 = vpop.permute.xlu0 %3023 }
 0x971   :  { %v3050_v8 = vrot.slane %v3024_v51, %v5135_v3 }
 0x972   :  { %v3021_v33 = vpop.permute.xlu1 %3020 }
 0x973   :  { %v3046_v32 = vrot.slane %v3021_v33, %v5135_v3 }
 0x975   :  { %v3075_v56 = vsel %vm2751_vm14, %v3050_v8, %v3046_v32  ;;  %vm5259_vm14 = vcmask 1044484  }
 0x976   :  { %v3030_v62 = vpop.permute.xlu1 %3029  ;;  %v3076_v4 = vsel %vm2753_vm15, %v3054_v16, %v3075_v56  ;;  %vm5260_vm1 = vmmov %vm5259_vm14 }
 0x977   :  { %v3159_v61 = vpop.permute.xlu0 %3158  ;;  %v3058_v9 = vrot.slane %v3030_v62, %v5135_v3  ;;  %vm5261_vm15 = vmmov %vm5260_vm1 }
 0x978   :  { %v3188_v0 = vrot.slane %v3159_v61, %v5135_v3 }
 0x979   :  { %v3077_v25 = vsel %vm2755_vm5, %v3058_v9, %v3076_v4  ;;  %vm3212_vm5 = vcmp.gt.f32.partialorder %v4725_v60, 0.0 }
 0x97a   :  { %v3204_v63 = vsel %vm5260_vm1, %v3188_v0, %v3203_v31 }
 0x97f   :  { %v3162_v55 = vpop.permute.xlu1 %3161 }
 0x980   :  { %v3192_v53 = vrot.slane %v3162_v55, %v5135_v3 }
 0x982   :  { %v3205_v13 = vsel %vm2759_vm3, %v3192_v53, %v3204_v63 }
 0x991   :  { %v3165_v28 = vpop.permute.xlu1 %3164  ;;  %v3039_v26 = vpop.permute.xlu0 %3038 }
 0x992   :  { %v3196_v29 = vrot.slane %v3165_v28, %v5135_v3  ;;  %v3070_v34 = vrot.slane %v3039_v26, %v5135_v3 }
 0x994   :  { %v3206_v11 = vsel %vm2761_vm4, %v3196_v29, %v3205_v13 }
 0x995   :  { %v3042_v27 = vpop.permute.xlu1 %3041  ;;  %v3033_v15 = vpop.permute.xlu0 %3032 }
 0x996   :  { %v3062_v59 = vrot.slane %v3033_v15, %v5135_v3  ;;  %v3074_v44 = vrot.slane %v3042_v27, %v5135_v3 }
 0x998   :  { %v3078_v2 = vsel %vm5259_vm14, %v3062_v59, %v3077_v25 }
 0x999   :  { %v3036_v54 = vpop.permute.xlu1 %3035  ;;  %v3736_v48 = vpop.permute.xlu0 %3735 }
 0x99a   :  { %v3066_v50 = vrot.slane %v3036_v54, %v5135_v3  ;;  %v3738_v57 = vunpack.i.h.bf16 %v3736_v48  ;;  %v3737_v7 = vunpack.i.l.bf16 %v3736_v48 }
 0x99c   :  { %v3079_v12 = vsel %vm2759_vm3, %v3066_v50, %v3078_v2  ;;  %v3264_v46 = vrot.slane %v3737_v7, %v5135_v3  ;;  %v3268_v58 = vrot.slane %v3738_v57, %v5135_v3 }
 0x99d   :  { %v3741_v52 = vpop.permute.xlu1 %3740  ;;  %v3168_v42 = vpop.permute.xlu0 %3167  ;;  %v3080_v38 = vsel %vm2761_vm4, %v3070_v34, %v3079_v12 }
 0x99e   :  { %v3280_v41 = vsel %vm5261_vm15, %v3264_v46, %v3279_v18  ;;  %v3743_v39 = vunpack.i.h.bf16 %v3741_v52  ;;  %v3742_v21 = vunpack.i.l.bf16 %v3741_v52  ;;  %v3200_v35 = vrot.slane %v3168_v42, %v5135_v3 }
 0x99f   :  { %v3281_v62 = vsel %vm2759_vm3, %v3268_v58, %v3280_v41  ;;  %v3081_v61 = vsel %vm2763_vm0, %v3074_v44, %v3080_v38 }
 0x9a0   :  { %v3276_v40 = vrot.slane %v3743_v39, %v5135_v3  ;;  %v3272_v33 = vrot.slane %v3742_v21, %v5135_v3  ;;  %v3207_v5 = vsel %vm2763_vm0, %v3200_v35, %v3206_v11  ;;  %v3083_v19 = vsel %vm225_vm9, %v3081_v61, 0.0 }
 0x9a1   :  { %v3209_v51 = vsel %vm225_vm9, %v3207_v5, 0.0 }
 0x9a2   :  { %3210 = vadd.xlane.f32.xlu0 %v3209_v51  ;;  %v3282_v55 = vsel %vm2761_vm4, %v3272_v33, %v3281_v62 }
 0x9a3   :  { %v3283_v22 = vsel %vm2763_vm0, %v3276_v40, %v3282_v55  ;;  %vm3297_vm0 = vcmp.eq.s32.totalorder %v4847_v47, 3 }
 0x9a4   :  { %v3285_v37 = vsel %vm3212_vm5, %v3283_v22, 1.0 }
 0x9a5   :  { %v3286_v3 = vsel %vm225_vm9, %v3285_v37, inf }
 0x9a6   :  { %3084 = vadd.xlane.f32.xlu0 %v3083_v19 }
 0x9aa   :  { %3287 = vmin.xlane.f32.xlu0 %v3286_v3 }
 0x9cf   :  { %v3088_v26 = vpop.xlane.xlu1 %3087 }
 0x9d0   :  { %v3292_v6 = vsel %vm3291_vm10, %v3088_v26, 0.0 }
 0xa2f   :  { %v3211_v28 = vpop.xlane.xlu0 %3210 }
 0xa30   :  { %v3295_v17 = vsel %vm3294_vm12, %v3211_v28, 0.0 }
 0xa33   :  { %v3085_v24 = vpop.xlane.xlu0 %3084 }
 0xa34   :  { %v3290_v60 = vsel %vm3289_vm11, %v3085_v24, 0.0 }
 0xa35   :  { %v3293_v32 = vadd.f32 %v3292_v6, %v3290_v60 }
 0xa37   :  { %v3296_v36 = vadd.f32 %v3295_v17, %v3293_v32  ;;  %v3288_v8 = vpop.xlane.xlu0 %3287 }
 0xa38   :  { %v3298_v20 = vsel %vm3297_vm0, %v3288_v8, 0.0 }
 0xa39   :  { %v3299_v27 = vadd.f32 %v3298_v20, %v3296_v36 }
 0xa3b   :  { %3300 = vst [vmem:[%s5257_s11] sm:$0xff] %v3299_v27 }

</bundles_post_ra>
